<compile_context>
chip_gen: v7x
topology: tpu7x:2x2x1
jax: 0.10.0
libtpu: 0.0.40
codegen_flags: <defaults>
</compile_context>

<pallas_src>
import functools

import jax
import jax.numpy as jnp
from jax import lax
from jax.experimental import pallas as pl
from jax.experimental.pallas import tpu as pltpu


def _round_up(n, m):
    return ((n + m - 1) // m) * m


# --------------------------------- kernel ---------------------------------

def lstm_kernel(xproj_ref, whh0_ref, wih1_ref, whh1_ref, b1_ref, wfc_ref, bfc_ref,
                out_ref, h1_ref, c1_ref, h2_ref, c2_ref,
                *, t_total, ragged, unroll):
    """One (batch-block, time-chunk) grid step of the 2-layer LSTM + FC head.

    xproj_ref : (tc, Bb, 4Hp) f32   pre-projected inputs  x @ W_ih^l0 + b0   (lane-dense)
    whh0/wih1/whh1 : (Hp, 4Hp)      recurrent weights (bf16), gate order [i, f, o, g]
    b1 : (1, 4Hp) f32   wfc : (1, Hp) f32   bfc : (1, 1) f32
    out_ref : (Bb, 1)
    h*/c*   : (Bb, Hp) f32 scratch, persistent across the time-chunk grid axis.
    """
    tc, Bb, G4 = xproj_ref.shape
    Hp = G4 // 4
    t_idx = pl.program_id(1)

    @pl.when(t_idx == 0)
    def _init():
        h1_ref[...] = jnp.zeros_like(h1_ref)
        c1_ref[...] = jnp.zeros_like(c1_ref)
        h2_ref[...] = jnp.zeros_like(h2_ref)
        c2_ref[...] = jnp.zeros_like(c2_ref)

    # Hoisted loop-invariant weight reads / bias broadcast.
    whh0 = whh0_ref[...]                                    # (Hp, 4Hp) bf16
    wih1 = wih1_ref[...]
    whh1 = whh1_ref[...]
    cdt = whh0.dtype
    b1 = jnp.broadcast_to(b1_ref[...].astype(jnp.float32), (Bb, G4))

    def gate_combine(gates, c_prev):
        # gate column order [i, f, o, g]; each block is Hp wide (lane-aligned).
        sig = jax.nn.sigmoid(gates[:, :3 * Hp])             # i, f, o in one EUP slab
        g = jnp.tanh(gates[:, 3 * Hp:])
        i = sig[:, :Hp]
        f = sig[:, Hp:2 * Hp]
        o = sig[:, 2 * Hp:]
        c_new = f * c_prev + i * g
        h_new = o * jnp.tanh(c_new)
        return h_new, c_new

    t_base = t_idx * tc

    def step(t, carry):
        h1, c1, h2, c2 = carry
        xp = xproj_ref[t]                                    # (Bb, 4Hp) f32
        # Layer 1: only the recurrent matmul is on the serial path (bf16xbf16, f32 acc).
        gates1 = xp + jnp.dot(h1.astype(cdt), whh0,
                              preferred_element_type=jnp.float32)
        h1n, c1n = gate_combine(gates1, c1)
        # Layer 2: split dots (no lane-domain concat); the h2-dot only depends on the
        # previous step, so the scheduler can overlap it with layer 1's gate combine.
        gates2 = (jnp.dot(h1n.astype(cdt), wih1, preferred_element_type=jnp.float32)
                  + jnp.dot(h2.astype(cdt), whh1, preferred_element_type=jnp.float32)
                  + b1)
        h2n, c2n = gate_combine(gates2, c2)
        if ragged:
            # Masked ragged tail: padded timesteps must NOT update LSTM state.
            valid = (t_base + t) < t_total
            h1n = jnp.where(valid, h1n, h1)
            c1n = jnp.where(valid, c1n, c1)
            h2n = jnp.where(valid, h2n, h2)
            c2n = jnp.where(valid, c2n, c2)
        return h1n, c1n, h2n, c2n

    carry = (h1_ref[...], c1_ref[...], h2_ref[...], c2_ref[...])
    if tc <= 8:
        # Short chunk: static indices, fully unrolled, full LLO scheduler visibility.
        for t in range(tc):
            carry = step(t, carry)
    else:
        # Long chunk: bounded fori_loop with modest unroll (keeps live ranges bounded).
        carry = lax.fori_loop(0, tc, step, carry, unroll=unroll)
    h1, c1, h2, c2 = carry

    h1_ref[...], c1_ref[...] = h1, c1
    h2_ref[...], c2_ref[...] = h2, c2

    # FC head: VPU multiply + lane reduction. Written every chunk (same output block is
    # revisited along the "arbitrary" time axis), so no chunk emits uninitialized data.
    out_ref[...] = (jnp.sum(h2 * wfc_ref[...].astype(jnp.float32),
                            axis=-1, keepdims=True)
                    + bfc_ref[...]).astype(out_ref.dtype)


# --------------------------------- wrapper ---------------------------------

def lstm_anomaly_detect(x, params, *, t_chunk=32, batch_block_cap=32):
    """x: (B, T, F) float32 -> (B, 1) float32 (matches LSTMAnomalyDetect.forward, eval)."""
    B, T, F = x.shape
    Hp = params["whh0"].shape[0]          # lane-padded hidden size
    G4 = 4 * Hp
    compute_dtype = params["whh0"].dtype

    # ---- batch blocking: multiple of 8; >= 2 blocks when batch allows (v7x dual-TC) ----
    Bp = _round_up(B, 8)
    Bb = min(_round_up(batch_block_cap, 8), Bp)
    if Bp >= 16:
        Bb = min(Bb, _round_up((Bp + 1) // 2, 8))
    Bp = _round_up(Bp, Bb)
    nb = Bp // Bb
    if Bp != B:
        x = jnp.pad(x, ((0, Bp - B), (0, 0), (0, 0)))   # batch padding is state-safe

    # ---- time chunking; ragged tail handled by in-kernel masking (NOT zero-padded state) --
    tc = max(1, min(t_chunk, T))
    Tp = _round_up(T, tc)
    nt = Tp // tc
    ragged = Tp != T
    unroll = tc if tc <= 8 else 4

    # ---- bulk layer-1 input projection in the wrapper: one big lane-dense XLA matmul ----
    # TODO(synk): optionally stream xproj in bf16 to halve DMA if HBM-bound.
    x_tbf = jnp.transpose(x, (1, 0, 2)).astype(jnp.float32)        # (T, Bp, F)
    xproj = (jnp.dot(x_tbf.reshape(T * Bp, F), params["wih0"],
                     preferred_element_type=jnp.float32)
             + params["b0"]).reshape(T, Bp, G4)
    if ragged:
        xproj = jnp.pad(xproj, ((0, Tp - T), (0, 0), (0, 0)))

    # ---- VMEM budget derived from real chip capacity (v7x: 64 MiB per TC) ----
    wbytes = jnp.dtype(compute_dtype).itemsize
    need = (2 * tc * Bb * G4 * 4                 # double-buffered xproj stream
            + 3 * Hp * G4 * wbytes               # recurrent weights (single-buffered)
            + (G4 + Hp + 1) * 4 * 2              # small biases / fc weights
            + 4 * Bb * Hp * 4                    # h/c scratch
            + 8 * Bb * G4 * 4                    # live gate values headroom
            + 2 * Bb * 4)
    try:
        vmem_cap = pltpu.get_tpu_info().vmem_capacity_bytes
    except Exception:
        vmem_cap = 64 << 20                      # conservative default (v7x per-TC VMEM)
    vmem_limit = int(min(max(2 * need + (8 << 20), 32 << 20), int(0.85 * vmem_cap)))

    _const = lambda b, t: (0, 0)
    kernel = functools.partial(lstm_kernel, t_total=T, ragged=ragged, unroll=unroll)

    def _call(weight_pipeline_mode):
        wkw = ({} if weight_pipeline_mode is None
               else {"pipeline_mode": weight_pipeline_mode})
        grid_spec = pltpu.PrefetchScalarGridSpec(
            num_scalar_prefetch=0,
            grid=(nb, nt),                       # (batch blocks, time chunks)
            in_specs=[
                pl.BlockSpec((tc, Bb, G4), lambda b, t: (t, b, 0)),   # xproj chunk
                pl.BlockSpec((Hp, G4), _const, **wkw),                # whh0
                pl.BlockSpec((Hp, G4), _const, **wkw),                # wih1
                pl.BlockSpec((Hp, G4), _const, **wkw),                # whh1
                pl.BlockSpec((1, G4), _const, **wkw),                 # b1
                pl.BlockSpec((1, Hp), _const, **wkw),                 # wfc
                pl.BlockSpec((1, 1), _const, **wkw),                  # bfc
            ],
            out_specs=pl.BlockSpec((Bb, 1), lambda b, t: (b, 0)),
            scratch_shapes=[pltpu.VMEM((Bb, Hp), jnp.float32) for _ in range(4)],
        )
        return pl.pallas_call(
            kernel,
            out_shape=jax.ShapeDtypeStruct((Bp, 1), jnp.float32),
            grid_spec=grid_spec,
            compiler_params=pltpu.CompilerParams(
                dimension_semantics=("parallel", "arbitrary"),
                vmem_limit_bytes=vmem_limit),
        )(xproj, params["whh0"], params["wih1"], params["whh1"],
          params["b1"], params["wfc"], params["bfc"])

    try:
        # Constant-index weights never change block index -> single-buffer them
        # (saves VMEM; matters on v7x's 64 MiB per-TC VMEM).
        out = _call(pl.Buffered(1))
    except Exception:
        out = _call(None)   # portability fallback: default (double) buffering
    return out[:B]


# --------------------------- parameter preparation ---------------------------

def init_raw_params(key, n_features, n_hidden):
    """PyTorch-native shapes & init: U(-1/sqrt(H), 1/sqrt(H)), gate order [i, f, g, o]."""
    k = 1.0 / jnp.sqrt(jnp.float32(n_hidden))
    keys = jax.random.split(key, 10)

    def u(kk, shape):
        return jax.random.uniform(kk, shape, jnp.float32, -k, k)

    return {
        "w_ih_l0": u(keys[0], (4 * n_hidden, n_features)),
        "w_hh_l0": u(keys[1], (4 * n_hidden, n_hidden)),
        "b_ih_l0": u(keys[2], (4 * n_hidden,)),
        "b_hh_l0": u(keys[3], (4 * n_hidden,)),
        "w_ih_l1": u(keys[4], (4 * n_hidden, n_hidden)),
        "w_hh_l1": u(keys[5], (4 * n_hidden, n_hidden)),
        "b_ih_l1": u(keys[6], (4 * n_hidden,)),
        "b_hh_l1": u(keys[7], (4 * n_hidden,)),
        "w_fc":    u(keys[8], (1, n_hidden)),
        "b_fc":    u(keys[9], (1,)),
    }


def prepare_params(raw, n_hidden, *, compute_dtype=jnp.bfloat16, lane=128):
    """Transpose to (in, 4H), fuse biases, reorder gates [i,f,g,o]->[i,f,o,g],
    zero-pad hidden dim to a lane multiple, cast recurrent weights to bf16."""
    H = n_hidden
    Hp = _round_up(H, lane)

    def reorder_pad_gates(w):
        # (..., 4H) PyTorch order [i, f, g, o] -> (..., 4Hp) kernel order [i, f, o, g];
        # padded hidden columns provably stay zero through the recurrence
        # (gates=0 -> i=f=o=0.5, g=0 -> c,h stay 0).
        i, f, g, o = (w[..., k * H:(k + 1) * H] for k in range(4))
        pad = [(0, 0)] * (w.ndim - 1) + [(0, Hp - H)]
        return jnp.concatenate([jnp.pad(b, pad) for b in (i, f, o, g)], axis=-1)

    def pad_rows(w):          # (H, 4Hp) -> (Hp, 4Hp)
        return jnp.pad(w, ((0, Hp - H), (0, 0)))

    wih0 = reorder_pad_gates(raw["w_ih_l0"].T)                            # (F, 4Hp) f32
    b0 = reorder_pad_gates((raw["b_ih_l0"] + raw["b_hh_l0"])[None, :])    # (1, 4Hp) f32
    whh0 = pad_rows(reorder_pad_gates(raw["w_hh_l0"].T)).astype(compute_dtype)
    wih1 = pad_rows(reorder_pad_gates(raw["w_ih_l1"].T)).astype(compute_dtype)
    whh1 = pad_rows(reorder_pad_gates(raw["w_hh_l1"].T)).astype(compute_dtype)
    b1 = reorder_pad_gates((raw["b_ih_l1"] + raw["b_hh_l1"])[None, :])    # (1, 4Hp) f32
    wfc = jnp.pad(raw["w_fc"], ((0, 0), (0, Hp - H)))                     # (1, Hp) f32
    return {"wih0": wih0, "b0": b0, "whh0": whh0, "wih1": wih1, "whh1": whh1,
            "b1": b1, "wfc": wfc, "bfc": raw["b_fc"].reshape(1, 1)}


# ------------------------------- pure-JAX reference -------------------------------

def reference_forward(x, raw):
    """Same math as torch.nn.LSTM (eval) + Linear, on raw PyTorch-layout f32 params."""
    B, T, F = x.shape
    H = raw["w_hh_l0"].shape[1]

    def cell(xt, h, c, w_ih, w_hh, b_ih, b_hh):
        gates = xt @ w_ih.T + h @ w_hh.T + b_ih + b_hh
        i = jax.nn.sigmoid(gates[:, 0 * H:1 * H])
        f = jax.nn.sigmoid(gates[:, 1 * H:2 * H])
        g = jnp.tanh(gates[:, 2 * H:3 * H])
        o = jax.nn.sigmoid(gates[:, 3 * H:4 * H])
        c = f * c + i * g
        h = o * jnp.tanh(c)
        return h, c

    def step(carry, xt):
        h1, c1, h2, c2 = carry
        h1, c1 = cell(xt, h1, c1, raw["w_ih_l0"], raw["w_hh_l0"],
                      raw["b_ih_l0"], raw["b_hh_l0"])
        h2, c2 = cell(h1, h2, c2, raw["w_ih_l1"], raw["w_hh_l1"],
                      raw["b_ih_l1"], raw["b_hh_l1"])
        return (h1, c1, h2, c2), None

    z = jnp.zeros((B, H), jnp.float32)
    (h1, c1, h2, c2), _ = lax.scan(step, (z, z, z, z), jnp.transpose(x, (1, 0, 2)))
    return h2 @ raw["w_fc"].T + raw["b_fc"]


if __name__ == "__main__":
    B, T, F, H = 10, 7, 16, 32   # batch, seq, n_features, n_hidden (small test shapes)

    key = jax.random.PRNGKey(0)
    kx, kp = jax.random.split(key)
    x = jax.random.normal(kx, (B, T, F), jnp.float32)
    raw = init_raw_params(kp, F, H)
    params = prepare_params(raw, H)          # bf16 recurrent weights, H padded to 128

    # t_chunk=4 with T=7, B=10 -> grid (2 batch blocks, 2 time chunks) with a masked
    # ragged tail step: exercises state carry, batch parallelism, and the ragged guard.
    out = jax.block_until_ready(lstm_anomaly_detect(x, params, t_chunk=4))
    ref = jax.block_until_ready(reference_forward(x, raw))

    assert out.shape == (B, 1)
    # bf16 matmul operands (f32 accumulation / f32 state): relaxed tolerance vs f32 ref.
    assert jnp.allclose(out, ref, atol=2e-2, rtol=2e-2), (out, ref)
    print("KERNEL_OK")
</pallas_src>

<mosaic_0001>
module attributes {stable_mosaic.version = 11 : i64} {
  func.func @lstm_kernel(%arg0: i32, %arg1: i32, %arg2: memref<4x8x512xf32, #tpu.memory_space<vmem>>, %arg3: memref<128x512xbf16, #tpu.memory_space<vmem>>, %arg4: memref<128x512xbf16, #tpu.memory_space<vmem>>, %arg5: memref<128x512xbf16, #tpu.memory_space<vmem>>, %arg6: memref<1x512xf32, #tpu.memory_space<vmem>>, %arg7: memref<1x128xf32, #tpu.memory_space<vmem>>, %arg8: memref<1x1xf32, #tpu.memory_space<vmem>>, %arg9: memref<8x1xf32, #tpu.memory_space<vmem>>, %arg10: memref<8x128xf32, #tpu.memory_space<vmem>>, %arg11: memref<8x128xf32, #tpu.memory_space<vmem>>, %arg12: memref<8x128xf32, #tpu.memory_space<vmem>>, %arg13: memref<8x128xf32, #tpu.memory_space<vmem>>) attributes {dimension_semantics = [#tpu.dimension_semantics<parallel>, #tpu.dimension_semantics<arbitrary>], iteration_bounds = array<i64: 2, 2>, scalar_prefetch = 0 : i64, scratch_operands = 4 : i64, tpu.core_type = #tpu.core_type<tc>, window_params = [{transform_indices = @transform_0, window_bounds = array<i64: 4, 8, 512>}, {pipeline_mode = #tpu.pipeline_mode<synchronous>, transform_indices = @transform_1, window_bounds = array<i64: 128, 512>}, {pipeline_mode = #tpu.pipeline_mode<synchronous>, transform_indices = @transform_2, window_bounds = array<i64: 128, 512>}, {pipeline_mode = #tpu.pipeline_mode<synchronous>, transform_indices = @transform_3, window_bounds = array<i64: 128, 512>}, {pipeline_mode = #tpu.pipeline_mode<synchronous>, transform_indices = @transform_4, window_bounds = array<i64: 1, 512>}, {pipeline_mode = #tpu.pipeline_mode<synchronous>, transform_indices = @transform_5, window_bounds = array<i64: 1, 128>}, {pipeline_mode = #tpu.pipeline_mode<synchronous>, transform_indices = @transform_6, window_bounds = array<i64: 1, 1>}, {transform_indices = @transform_7, window_bounds = array<i64: 8, 1>}]} {
    %c0_i32 = arith.constant 0 : i32
    %0 = arith.cmpi eq, %arg1, %c0_i32 : i32
    %1 = arith.extui %0 : i1 to i32
    %c0_i32_0 = arith.constant 0 : i32
    %2 = arith.cmpi ne, %1, %c0_i32_0 : i32
    scf.if %2 {
      %cst_63 = arith.constant 0.000000e+00 : f32
      %223 = vector.broadcast %cst_63 : f32 to vector<8x128xf32>
      %c0_64 = arith.constant 0 : index
      %c0_65 = arith.constant 0 : index
      %224 = vector.load %arg10[%c0_64, %c0_65] : memref<8x128xf32, #tpu.memory_space<vmem>>, vector<8x128xf32>
      tpu.vector_store %arg10[%c0_64, %c0_65], %223 {strides = array<i32>} : memref<8x128xf32, #tpu.memory_space<vmem>>, vector<8x128xf32>,
      %cst_66 = arith.constant 0.000000e+00 : f32
      %225 = vector.broadcast %cst_66 : f32 to vector<8x128xf32>
      %c0_67 = arith.constant 0 : index
      %c0_68 = arith.constant 0 : index
      %226 = vector.load %arg11[%c0_67, %c0_68] : memref<8x128xf32, #tpu.memory_space<vmem>>, vector<8x128xf32>
      tpu.vector_store %arg11[%c0_67, %c0_68], %225 {strides = array<i32>} : memref<8x128xf32, #tpu.memory_space<vmem>>, vector<8x128xf32>,
      %cst_69 = arith.constant 0.000000e+00 : f32
      %227 = vector.broadcast %cst_69 : f32 to vector<8x128xf32>
      %c0_70 = arith.constant 0 : index
      %c0_71 = arith.constant 0 : index
      %228 = vector.load %arg12[%c0_70, %c0_71] : memref<8x128xf32, #tpu.memory_space<vmem>>, vector<8x128xf32>
      tpu.vector_store %arg12[%c0_70, %c0_71], %227 {strides = array<i32>} : memref<8x128xf32, #tpu.memory_space<vmem>>, vector<8x128xf32>,
      %cst_72 = arith.constant 0.000000e+00 : f32
      %229 = vector.broadcast %cst_72 : f32 to vector<8x128xf32>
      %c0_73 = arith.constant 0 : index
      %c0_74 = arith.constant 0 : index
      %230 = vector.load %arg13[%c0_73, %c0_74] : memref<8x128xf32, #tpu.memory_space<vmem>>, vector<8x128xf32>
      tpu.vector_store %arg13[%c0_73, %c0_74], %229 {strides = array<i32>} : memref<8x128xf32, #tpu.memory_space<vmem>>, vector<8x128xf32>,
    } else {
    }
    %c0 = arith.constant 0 : index
    %c0_1 = arith.constant 0 : index
    %3 = vector.load %arg3[%c0, %c0_1] : memref<128x512xbf16, #tpu.memory_space<vmem>>, vector<128x512xbf16>
    %c0_2 = arith.constant 0 : index
    %c0_3 = arith.constant 0 : index
    %4 = vector.load %arg4[%c0_2, %c0_3] : memref<128x512xbf16, #tpu.memory_space<vmem>>, vector<128x512xbf16>
    %c0_4 = arith.constant 0 : index
    %c0_5 = arith.constant 0 : index
    %5 = vector.load %arg5[%c0_4, %c0_5] : memref<128x512xbf16, #tpu.memory_space<vmem>>, vector<128x512xbf16>
    %c0_6 = arith.constant 0 : index
    %c0_7 = arith.constant 0 : index
    %6 = vector.load %arg6[%c0_6, %c0_7] : memref<1x512xf32, #tpu.memory_space<vmem>>, vector<1x512xf32>
    %7 = vector.shape_cast %6 : vector<1x512xf32> to vector<1x512xf32>
    %8 = vector.broadcast %7 : vector<1x512xf32> to vector<8x512xf32>
    %c4_i32 = arith.constant 4 : i32
    %9 = arith.muli %arg1, %c4_i32 : i32
    %c0_8 = arith.constant 0 : index
    %c0_9 = arith.constant 0 : index
    %10 = vector.load %arg10[%c0_8, %c0_9] : memref<8x128xf32, #tpu.memory_space<vmem>>, vector<8x128xf32>
    %c0_10 = arith.constant 0 : index
    %c0_11 = arith.constant 0 : index
    %11 = vector.load %arg11[%c0_10, %c0_11] : memref<8x128xf32, #tpu.memory_space<vmem>>, vector<8x128xf32>
    %c0_12 = arith.constant 0 : index
    %c0_13 = arith.constant 0 : index
    %12 = vector.load %arg12[%c0_12, %c0_13] : memref<8x128xf32, #tpu.memory_space<vmem>>, vector<8x128xf32>
    %c0_14 = arith.constant 0 : index
    %c0_15 = arith.constant 0 : index
    %13 = vector.load %arg13[%c0_14, %c0_15] : memref<8x128xf32, #tpu.memory_space<vmem>>, vector<8x128xf32>
    %c0_16 = arith.constant 0 : index
    %c0_17 = arith.constant 0 : index
    %c0_18 = arith.constant 0 : index
    %14 = vector.load %arg2[%c0_16, %c0_17, %c0_18] : memref<4x8x512xf32, #tpu.memory_space<vmem>>, vector<1x8x512xf32>
    %15 = vector.shape_cast %14 : vector<1x8x512xf32> to vector<8x512xf32>
    %16 = arith.truncf %10 : vector<8x128xf32> to vector<8x128xbf16>
    %cst = arith.constant dense<0.000000e+00> : vector<8x512xf32>
    %17 = tpu.matmul %16, %3, %cst {dimension_numbers = #tpu.dot_dimension_numbers<[1], [0], [0], [1], [0, 0, 1, 1], [], []>} : vector<8x128xbf16>, vector<128x512xbf16>, vector<8x512xf32> -> vector<8x512xf32>
    %18 = arith.addf %15, %17 : vector<8x512xf32>
    %19 = vector.extract_strided_slice %18 {offsets = [0, 0], sizes = [8, 384], strides = [1, 1]} : vector<8x512xf32> to vector<8x384xf32>
    %20 = arith.negf %19 : vector<8x384xf32>
    %21 = math.exp %20 : vector<8x384xf32>
    %cst_19 = arith.constant 1.000000e+00 : f32
    %22 = vector.broadcast %cst_19 : f32 to vector<8x384xf32>
    %23 = arith.addf %22, %21 : vector<8x384xf32>
    %24 = arith.divf %22, %23 : vector<8x384xf32>
    %25 = vector.extract_strided_slice %18 {offsets = [0, 384], sizes = [8, 128], strides = [1, 1]} : vector<8x512xf32> to vector<8x128xf32>
    %26 = math.tanh %25 : vector<8x128xf32>
    %27 = vector.extract_strided_slice %24 {offsets = [0, 0], sizes = [8, 128], strides = [1, 1]} : vector<8x384xf32> to vector<8x128xf32>
    %28 = vector.extract_strided_slice %24 {offsets = [0, 128], sizes = [8, 128], strides = [1, 1]} : vector<8x384xf32> to vector<8x128xf32>
    %29 = vector.extract_strided_slice %24 {offsets = [0, 256], sizes = [8, 128], strides = [1, 1]} : vector<8x384xf32> to vector<8x128xf32>
    %30 = arith.mulf %28, %11 : vector<8x128xf32>
    %31 = arith.mulf %27, %26 : vector<8x128xf32>
    %32 = arith.addf %30, %31 : vector<8x128xf32>
    %33 = math.tanh %32 : vector<8x128xf32>
    %34 = arith.mulf %29, %33 : vector<8x128xf32>
    %35 = arith.truncf %34 : vector<8x128xf32> to vector<8x128xbf16>
    %cst_20 = arith.constant dense<0.000000e+00> : vector<8x512xf32>
    %36 = tpu.matmul %35, %4, %cst_20 {dimension_numbers = #tpu.dot_dimension_numbers<[1], [0], [0], [1], [0, 0, 1, 1], [], []>} : vector<8x128xbf16>, vector<128x512xbf16>, vector<8x512xf32> -> vector<8x512xf32>
    %37 = arith.truncf %12 : vector<8x128xf32> to vector<8x128xbf16>
    %cst_21 = arith.constant dense<0.000000e+00> : vector<8x512xf32>
    %38 = tpu.matmul %37, %5, %cst_21 {dimension_numbers = #tpu.dot_dimension_numbers<[1], [0], [0], [1], [0, 0, 1, 1], [], []>} : vector<8x128xbf16>, vector<128x512xbf16>, vector<8x512xf32> -> vector<8x512xf32>
    %39 = arith.addf %36, %38 : vector<8x512xf32>
    %40 = arith.addf %39, %8 : vector<8x512xf32>
    %41 = vector.extract_strided_slice %40 {offsets = [0, 0], sizes = [8, 384], strides = [1, 1]} : vector<8x512xf32> to vector<8x384xf32>
    %42 = arith.negf %41 : vector<8x384xf32>
    %43 = math.exp %42 : vector<8x384xf32>
    %cst_22 = arith.constant 1.000000e+00 : f32
    %44 = vector.broadcast %cst_22 : f32 to vector<8x384xf32>
    %45 = arith.addf %44, %43 : vector<8x384xf32>
    %46 = arith.divf %44, %45 : vector<8x384xf32>
    %47 = vector.extract_strided_slice %40 {offsets = [0, 384], sizes = [8, 128], strides = [1, 1]} : vector<8x512xf32> to vector<8x128xf32>
    %48 = math.tanh %47 : vector<8x128xf32>
    %49 = vector.extract_strided_slice %46 {offsets = [0, 0], sizes = [8, 128], strides = [1, 1]} : vector<8x384xf32> to vector<8x128xf32>
    %50 = vector.extract_strided_slice %46 {offsets = [0, 128], sizes = [8, 128], strides = [1, 1]} : vector<8x384xf32> to vector<8x128xf32>
    %51 = vector.extract_strided_slice %46 {offsets = [0, 256], sizes = [8, 128], strides = [1, 1]} : vector<8x384xf32> to vector<8x128xf32>
    %52 = arith.mulf %50, %13 : vector<8x128xf32>
    %53 = arith.mulf %49, %48 : vector<8x128xf32>
    %54 = arith.addf %52, %53 : vector<8x128xf32>
    %55 = math.tanh %54 : vector<8x128xf32>
    %56 = arith.mulf %51, %55 : vector<8x128xf32>
    %c0_i32_23 = arith.constant 0 : i32
    %57 = arith.addi %9, %c0_i32_23 : i32
    %c7_i32 = arith.constant 7 : i32
    %58 = arith.cmpi slt, %57, %c7_i32 : i32
    %59 = arith.select %58, %34, %10 : vector<8x128xf32>
    %60 = arith.select %58, %32, %11 : vector<8x128xf32>
    %61 = arith.select %58, %56, %12 : vector<8x128xf32>
    %62 = arith.select %58, %54, %13 : vector<8x128xf32>
    %c1 = arith.constant 1 : index
    %c0_24 = arith.constant 0 : index
    %c0_25 = arith.constant 0 : index
    %63 = vector.load %arg2[%c1, %c0_24, %c0_25] : memref<4x8x512xf32, #tpu.memory_space<vmem>>, vector<1x8x512xf32>
    %64 = vector.shape_cast %63 : vector<1x8x512xf32> to vector<8x512xf32>
    %65 = arith.truncf %59 : vector<8x128xf32> to vector<8x128xbf16>
    %cst_26 = arith.constant dense<0.000000e+00> : vector<8x512xf32>
    %66 = tpu.matmul %65, %3, %cst_26 {dimension_numbers = #tpu.dot_dimension_numbers<[1], [0], [0], [1], [0, 0, 1, 1], [], []>} : vector<8x128xbf16>, vector<128x512xbf16>, vector<8x512xf32> -> vector<8x512xf32>
    %67 = arith.addf %64, %66 : vector<8x512xf32>
    %68 = vector.extract_strided_slice %67 {offsets = [0, 0], sizes = [8, 384], strides = [1, 1]} : vector<8x512xf32> to vector<8x384xf32>
    %69 = arith.negf %68 : vector<8x384xf32>
    %70 = math.exp %69 : vector<8x384xf32>
    %cst_27 = arith.constant 1.000000e+00 : f32
    %71 = vector.broadcast %cst_27 : f32 to vector<8x384xf32>
    %72 = arith.addf %71, %70 : vector<8x384xf32>
    %73 = arith.divf %71, %72 : vector<8x384xf32>
    %74 = vector.extract_strided_slice %67 {offsets = [0, 384], sizes = [8, 128], strides = [1, 1]} : vector<8x512xf32> to vector<8x128xf32>
    %75 = math.tanh %74 : vector<8x128xf32>
    %76 = vector.extract_strided_slice %73 {offsets = [0, 0], sizes = [8, 128], strides = [1, 1]} : vector<8x384xf32> to vector<8x128xf32>
    %77 = vector.extract_strided_slice %73 {offsets = [0, 128], sizes = [8, 128], strides = [1, 1]} : vector<8x384xf32> to vector<8x128xf32>
    %78 = vector.extract_strided_slice %73 {offsets = [0, 256], sizes = [8, 128], strides = [1, 1]} : vector<8x384xf32> to vector<8x128xf32>
    %79 = arith.mulf %77, %60 : vector<8x128xf32>
    %80 = arith.mulf %76, %75 : vector<8x128xf32>
    %81 = arith.addf %79, %80 : vector<8x128xf32>
    %82 = math.tanh %81 : vector<8x128xf32>
    %83 = arith.mulf %78, %82 : vector<8x128xf32>
    %84 = arith.truncf %83 : vector<8x128xf32> to vector<8x128xbf16>
    %cst_28 = arith.constant dense<0.000000e+00> : vector<8x512xf32>
    %85 = tpu.matmul %84, %4, %cst_28 {dimension_numbers = #tpu.dot_dimension_numbers<[1], [0], [0], [1], [0, 0, 1, 1], [], []>} : vector<8x128xbf16>, vector<128x512xbf16>, vector<8x512xf32> -> vector<8x512xf32>
    %86 = arith.truncf %61 : vector<8x128xf32> to vector<8x128xbf16>
    %cst_29 = arith.constant dense<0.000000e+00> : vector<8x512xf32>
    %87 = tpu.matmul %86, %5, %cst_29 {dimension_numbers = #tpu.dot_dimension_numbers<[1], [0], [0], [1], [0, 0, 1, 1], [], []>} : vector<8x128xbf16>, vector<128x512xbf16>, vector<8x512xf32> -> vector<8x512xf32>
    %88 = arith.addf %85, %87 : vector<8x512xf32>
    %89 = arith.addf %88, %8 : vector<8x512xf32>
    %90 = vector.extract_strided_slice %89 {offsets = [0, 0], sizes = [8, 384], strides = [1, 1]} : vector<8x512xf32> to vector<8x384xf32>
    %91 = arith.negf %90 : vector<8x384xf32>
    %92 = math.exp %91 : vector<8x384xf32>
    %cst_30 = arith.constant 1.000000e+00 : f32
    %93 = vector.broadcast %cst_30 : f32 to vector<8x384xf32>
    %94 = arith.addf %93, %92 : vector<8x384xf32>
    %95 = arith.divf %93, %94 : vector<8x384xf32>
    %96 = vector.extract_strided_slice %89 {offsets = [0, 384], sizes = [8, 128], strides = [1, 1]} : vector<8x512xf32> to vector<8x128xf32>
    %97 = math.tanh %96 : vector<8x128xf32>
    %98 = vector.extract_strided_slice %95 {offsets = [0, 0], sizes = [8, 128], strides = [1, 1]} : vector<8x384xf32> to vector<8x128xf32>
    %99 = vector.extract_strided_slice %95 {offsets = [0, 128], sizes = [8, 128], strides = [1, 1]} : vector<8x384xf32> to vector<8x128xf32>
    %100 = vector.extract_strided_slice %95 {offsets = [0, 256], sizes = [8, 128], strides = [1, 1]} : vector<8x384xf32> to vector<8x128xf32>
    %101 = arith.mulf %99, %62 : vector<8x128xf32>
    %102 = arith.mulf %98, %97 : vector<8x128xf32>
    %103 = arith.addf %101, %102 : vector<8x128xf32>
    %104 = math.tanh %103 : vector<8x128xf32>
    %105 = arith.mulf %100, %104 : vector<8x128xf32>
    %c1_i32 = arith.constant 1 : i32
    %106 = arith.addi %9, %c1_i32 : i32
    %c7_i32_31 = arith.constant 7 : i32
    %107 = arith.cmpi slt, %106, %c7_i32_31 : i32
    %108 = arith.select %107, %83, %59 : vector<8x128xf32>
    %109 = arith.select %107, %81, %60 : vector<8x128xf32>
    %110 = arith.select %107, %105, %61 : vector<8x128xf32>
    %111 = arith.select %107, %103, %62 : vector<8x128xf32>
    %c2 = arith.constant 2 : index
    %c0_32 = arith.constant 0 : index
    %c0_33 = arith.constant 0 : index
    %112 = vector.load %arg2[%c2, %c0_32, %c0_33] : memref<4x8x512xf32, #tpu.memory_space<vmem>>, vector<1x8x512xf32>
    %113 = vector.shape_cast %112 : vector<1x8x512xf32> to vector<8x512xf32>
    %114 = arith.truncf %108 : vector<8x128xf32> to vector<8x128xbf16>
    %cst_34 = arith.constant dense<0.000000e+00> : vector<8x512xf32>
    %115 = tpu.matmul %114, %3, %cst_34 {dimension_numbers = #tpu.dot_dimension_numbers<[1], [0], [0], [1], [0, 0, 1, 1], [], []>} : vector<8x128xbf16>, vector<128x512xbf16>, vector<8x512xf32> -> vector<8x512xf32>
    %116 = arith.addf %113, %115 : vector<8x512xf32>
    %117 = vector.extract_strided_slice %116 {offsets = [0, 0], sizes = [8, 384], strides = [1, 1]} : vector<8x512xf32> to vector<8x384xf32>
    %118 = arith.negf %117 : vector<8x384xf32>
    %119 = math.exp %118 : vector<8x384xf32>
    %cst_35 = arith.constant 1.000000e+00 : f32
    %120 = vector.broadcast %cst_35 : f32 to vector<8x384xf32>
    %121 = arith.addf %120, %119 : vector<8x384xf32>
    %122 = arith.divf %120, %121 : vector<8x384xf32>
    %123 = vector.extract_strided_slice %116 {offsets = [0, 384], sizes = [8, 128], strides = [1, 1]} : vector<8x512xf32> to vector<8x128xf32>
    %124 = math.tanh %123 : vector<8x128xf32>
    %125 = vector.extract_strided_slice %122 {offsets = [0, 0], sizes = [8, 128], strides = [1, 1]} : vector<8x384xf32> to vector<8x128xf32>
    %126 = vector.extract_strided_slice %122 {offsets = [0, 128], sizes = [8, 128], strides = [1, 1]} : vector<8x384xf32> to vector<8x128xf32>
    %127 = vector.extract_strided_slice %122 {offsets = [0, 256], sizes = [8, 128], strides = [1, 1]} : vector<8x384xf32> to vector<8x128xf32>
    %128 = arith.mulf %126, %109 : vector<8x128xf32>
    %129 = arith.mulf %125, %124 : vector<8x128xf32>
    %130 = arith.addf %128, %129 : vector<8x128xf32>
    %131 = math.tanh %130 : vector<8x128xf32>
    %132 = arith.mulf %127, %131 : vector<8x128xf32>
    %133 = arith.truncf %132 : vector<8x128xf32> to vector<8x128xbf16>
    %cst_36 = arith.constant dense<0.000000e+00> : vector<8x512xf32>
    %134 = tpu.matmul %133, %4, %cst_36 {dimension_numbers = #tpu.dot_dimension_numbers<[1], [0], [0], [1], [0, 0, 1, 1], [], []>} : vector<8x128xbf16>, vector<128x512xbf16>, vector<8x512xf32> -> vector<8x512xf32>
    %135 = arith.truncf %110 : vector<8x128xf32> to vector<8x128xbf16>
    %cst_37 = arith.constant dense<0.000000e+00> : vector<8x512xf32>
    %136 = tpu.matmul %135, %5, %cst_37 {dimension_numbers = #tpu.dot_dimension_numbers<[1], [0], [0], [1], [0, 0, 1, 1], [], []>} : vector<8x128xbf16>, vector<128x512xbf16>, vector<8x512xf32> -> vector<8x512xf32>
    %137 = arith.addf %134, %136 : vector<8x512xf32>
    %138 = arith.addf %137, %8 : vector<8x512xf32>
    %139 = vector.extract_strided_slice %138 {offsets = [0, 0], sizes = [8, 384], strides = [1, 1]} : vector<8x512xf32> to vector<8x384xf32>
    %140 = arith.negf %139 : vector<8x384xf32>
    %141 = math.exp %140 : vector<8x384xf32>
    %cst_38 = arith.constant 1.000000e+00 : f32
    %142 = vector.broadcast %cst_38 : f32 to vector<8x384xf32>
    %143 = arith.addf %142, %141 : vector<8x384xf32>
    %144 = arith.divf %142, %143 : vector<8x384xf32>
    %145 = vector.extract_strided_slice %138 {offsets = [0, 384], sizes = [8, 128], strides = [1, 1]} : vector<8x512xf32> to vector<8x128xf32>
    %146 = math.tanh %145 : vector<8x128xf32>
    %147 = vector.extract_strided_slice %144 {offsets = [0, 0], sizes = [8, 128], strides = [1, 1]} : vector<8x384xf32> to vector<8x128xf32>
    %148 = vector.extract_strided_slice %144 {offsets = [0, 128], sizes = [8, 128], strides = [1, 1]} : vector<8x384xf32> to vector<8x128xf32>
    %149 = vector.extract_strided_slice %144 {offsets = [0, 256], sizes = [8, 128], strides = [1, 1]} : vector<8x384xf32> to vector<8x128xf32>
    %150 = arith.mulf %148, %111 : vector<8x128xf32>
    %151 = arith.mulf %147, %146 : vector<8x128xf32>
    %152 = arith.addf %150, %151 : vector<8x128xf32>
    %153 = math.tanh %152 : vector<8x128xf32>
    %154 = arith.mulf %149, %153 : vector<8x128xf32>
    %c2_i32 = arith.constant 2 : i32
    %155 = arith.addi %9, %c2_i32 : i32
    %c7_i32_39 = arith.constant 7 : i32
    %156 = arith.cmpi slt, %155, %c7_i32_39 : i32
    %157 = arith.select %156, %132, %108 : vector<8x128xf32>
    %158 = arith.select %156, %130, %109 : vector<8x128xf32>
    %159 = arith.select %156, %154, %110 : vector<8x128xf32>
    %160 = arith.select %156, %152, %111 : vector<8x128xf32>
    %c3 = arith.constant 3 : index
    %c0_40 = arith.constant 0 : index
    %c0_41 = arith.constant 0 : index
    %161 = vector.load %arg2[%c3, %c0_40, %c0_41] : memref<4x8x512xf32, #tpu.memory_space<vmem>>, vector<1x8x512xf32>
    %162 = vector.shape_cast %161 : vector<1x8x512xf32> to vector<8x512xf32>
    %163 = arith.truncf %157 : vector<8x128xf32> to vector<8x128xbf16>
    %cst_42 = arith.constant dense<0.000000e+00> : vector<8x512xf32>
    %164 = tpu.matmul %163, %3, %cst_42 {dimension_numbers = #tpu.dot_dimension_numbers<[1], [0], [0], [1], [0, 0, 1, 1], [], []>} : vector<8x128xbf16>, vector<128x512xbf16>, vector<8x512xf32> -> vector<8x512xf32>
    %165 = arith.addf %162, %164 : vector<8x512xf32>
    %166 = vector.extract_strided_slice %165 {offsets = [0, 0], sizes = [8, 384], strides = [1, 1]} : vector<8x512xf32> to vector<8x384xf32>
    %167 = arith.negf %166 : vector<8x384xf32>
    %168 = math.exp %167 : vector<8x384xf32>
    %cst_43 = arith.constant 1.000000e+00 : f32
    %169 = vector.broadcast %cst_43 : f32 to vector<8x384xf32>
    %170 = arith.addf %169, %168 : vector<8x384xf32>
    %171 = arith.divf %169, %170 : vector<8x384xf32>
    %172 = vector.extract_strided_slice %165 {offsets = [0, 384], sizes = [8, 128], strides = [1, 1]} : vector<8x512xf32> to vector<8x128xf32>
    %173 = math.tanh %172 : vector<8x128xf32>
    %174 = vector.extract_strided_slice %171 {offsets = [0, 0], sizes = [8, 128], strides = [1, 1]} : vector<8x384xf32> to vector<8x128xf32>
    %175 = vector.extract_strided_slice %171 {offsets = [0, 128], sizes = [8, 128], strides = [1, 1]} : vector<8x384xf32> to vector<8x128xf32>
    %176 = vector.extract_strided_slice %171 {offsets = [0, 256], sizes = [8, 128], strides = [1, 1]} : vector<8x384xf32> to vector<8x128xf32>
    %177 = arith.mulf %175, %158 : vector<8x128xf32>
    %178 = arith.mulf %174, %173 : vector<8x128xf32>
    %179 = arith.addf %177, %178 : vector<8x128xf32>
    %180 = math.tanh %179 : vector<8x128xf32>
    %181 = arith.mulf %176, %180 : vector<8x128xf32>
    %182 = arith.truncf %181 : vector<8x128xf32> to vector<8x128xbf16>
    %cst_44 = arith.constant dense<0.000000e+00> : vector<8x512xf32>
    %183 = tpu.matmul %182, %4, %cst_44 {dimension_numbers = #tpu.dot_dimension_numbers<[1], [0], [0], [1], [0, 0, 1, 1], [], []>} : vector<8x128xbf16>, vector<128x512xbf16>, vector<8x512xf32> -> vector<8x512xf32>
    %184 = arith.truncf %159 : vector<8x128xf32> to vector<8x128xbf16>
    %cst_45 = arith.constant dense<0.000000e+00> : vector<8x512xf32>
    %185 = tpu.matmul %184, %5, %cst_45 {dimension_numbers = #tpu.dot_dimension_numbers<[1], [0], [0], [1], [0, 0, 1, 1], [], []>} : vector<8x128xbf16>, vector<128x512xbf16>, vector<8x512xf32> -> vector<8x512xf32>
    %186 = arith.addf %183, %185 : vector<8x512xf32>
    %187 = arith.addf %186, %8 : vector<8x512xf32>
    %188 = vector.extract_strided_slice %187 {offsets = [0, 0], sizes = [8, 384], strides = [1, 1]} : vector<8x512xf32> to vector<8x384xf32>
    %189 = arith.negf %188 : vector<8x384xf32>
    %190 = math.exp %189 : vector<8x384xf32>
    %cst_46 = arith.constant 1.000000e+00 : f32
    %191 = vector.broadcast %cst_46 : f32 to vector<8x384xf32>
    %192 = arith.addf %191, %190 : vector<8x384xf32>
    %193 = arith.divf %191, %192 : vector<8x384xf32>
    %194 = vector.extract_strided_slice %187 {offsets = [0, 384], sizes = [8, 128], strides = [1, 1]} : vector<8x512xf32> to vector<8x128xf32>
    %195 = math.tanh %194 : vector<8x128xf32>
    %196 = vector.extract_strided_slice %193 {offsets = [0, 0], sizes = [8, 128], strides = [1, 1]} : vector<8x384xf32> to vector<8x128xf32>
    %197 = vector.extract_strided_slice %193 {offsets = [0, 128], sizes = [8, 128], strides = [1, 1]} : vector<8x384xf32> to vector<8x128xf32>
    %198 = vector.extract_strided_slice %193 {offsets = [0, 256], sizes = [8, 128], strides = [1, 1]} : vector<8x384xf32> to vector<8x128xf32>
    %199 = arith.mulf %197, %160 : vector<8x128xf32>
    %200 = arith.mulf %196, %195 : vector<8x128xf32>
    %201 = arith.addf %199, %200 : vector<8x128xf32>
    %202 = math.tanh %201 : vector<8x128xf32>
    %203 = arith.mulf %198, %202 : vector<8x128xf32>
    %c3_i32 = arith.constant 3 : i32
    %204 = arith.addi %9, %c3_i32 : i32
    %c7_i32_47 = arith.constant 7 : i32
    %205 = arith.cmpi slt, %204, %c7_i32_47 : i32
    %206 = arith.select %205, %181, %157 : vector<8x128xf32>
    %207 = arith.select %205, %179, %158 : vector<8x128xf32>
    %208 = arith.select %205, %203, %159 : vector<8x128xf32>
    %209 = arith.select %205, %201, %160 : vector<8x128xf32>
    %c0_48 = arith.constant 0 : index
    %c0_49 = arith.constant 0 : index
    %210 = vector.load %arg10[%c0_48, %c0_49] : memref<8x128xf32, #tpu.memory_space<vmem>>, vector<8x128xf32>
    tpu.vector_store %arg10[%c0_48, %c0_49], %206 {strides = array<i32>} : memref<8x128xf32, #tpu.memory_space<vmem>>, vector<8x128xf32>,
    %c0_50 = arith.constant 0 : index
    %c0_51 = arith.constant 0 : index
    %211 = vector.load %arg11[%c0_50, %c0_51] : memref<8x128xf32, #tpu.memory_space<vmem>>, vector<8x128xf32>
    tpu.vector_store %arg11[%c0_50, %c0_51], %207 {strides = array<i32>} : memref<8x128xf32, #tpu.memory_space<vmem>>, vector<8x128xf32>,
    %c0_52 = arith.constant 0 : index
    %c0_53 = arith.constant 0 : index
    %212 = vector.load %arg12[%c0_52, %c0_53] : memref<8x128xf32, #tpu.memory_space<vmem>>, vector<8x128xf32>
    tpu.vector_store %arg12[%c0_52, %c0_53], %208 {strides = array<i32>} : memref<8x128xf32, #tpu.memory_space<vmem>>, vector<8x128xf32>,
    %c0_54 = arith.constant 0 : index
    %c0_55 = arith.constant 0 : index
    %213 = vector.load %arg13[%c0_54, %c0_55] : memref<8x128xf32, #tpu.memory_space<vmem>>, vector<8x128xf32>
    tpu.vector_store %arg13[%c0_54, %c0_55], %209 {strides = array<i32>} : memref<8x128xf32, #tpu.memory_space<vmem>>, vector<8x128xf32>,
    %c0_56 = arith.constant 0 : index
    %c0_57 = arith.constant 0 : index
    %214 = vector.load %arg7[%c0_56, %c0_57] : memref<1x128xf32, #tpu.memory_space<vmem>>, vector<1x128xf32>
    %215 = vector.broadcast %214 : vector<1x128xf32> to vector<8x128xf32>
    %216 = arith.mulf %208, %215 : vector<8x128xf32>
    %cst_58 = arith.constant dense<0.000000e+00> : vector<8xf32>
    %217 = vector.multi_reduction <add>, %216, %cst_58 [1] : vector<8x128xf32> to vector<8xf32>
    %218 = vector.shape_cast %217 : vector<8xf32> to vector<8x1xf32>
    %c0_59 = arith.constant 0 : index
    %c0_60 = arith.constant 0 : index
    %219 = vector.load %arg8[%c0_59, %c0_60] : memref<1x1xf32, #tpu.memory_space<vmem>>, vector<1x1xf32>
    %220 = vector.broadcast %219 : vector<1x1xf32> to vector<8x1xf32>
    %221 = arith.addf %218, %220 : vector<8x1xf32>
    %c0_61 = arith.constant 0 : index
    %c0_62 = arith.constant 0 : index
    %222 = vector.load %arg9[%c0_61, %c0_62] : memref<8x1xf32, #tpu.memory_space<vmem>>, vector<8x1xf32>
    tpu.vector_store %arg9[%c0_61, %c0_62], %221 {strides = array<i32>} : memref<8x1xf32, #tpu.memory_space<vmem>>, vector<8x1xf32>,
    return
  }
  func.func @transform_0(%arg0: i32, %arg1: i32) -> (i32, i32, i32) {
    %c0_i32 = arith.constant 0 : i32
    %c0_i32_0 = arith.constant 0 : i32
    return %arg1, %arg0, %c0_i32 : i32, i32, i32
  }
  func.func @transform_1(%arg0: i32, %arg1: i32) -> (i32, i32) {
    %c0_i32 = arith.constant 0 : i32
    %c0_i32_0 = arith.constant 0 : i32
    %c0_i32_1 = arith.constant 0 : i32
    return %c0_i32, %c0_i32_0 : i32, i32
  }
  func.func @transform_2(%arg0: i32, %arg1: i32) -> (i32, i32) {
    %c0_i32 = arith.constant 0 : i32
    %c0_i32_0 = arith.constant 0 : i32
    %c0_i32_1 = arith.constant 0 : i32
    return %c0_i32, %c0_i32_0 : i32, i32
  }
  func.func @transform_3(%arg0: i32, %arg1: i32) -> (i32, i32) {
    %c0_i32 = arith.constant 0 : i32
    %c0_i32_0 = arith.constant 0 : i32
    %c0_i32_1 = arith.constant 0 : i32
    return %c0_i32, %c0_i32_0 : i32, i32
  }
  func.func @transform_4(%arg0: i32, %arg1: i32) -> (i32, i32) {
    %c0_i32 = arith.constant 0 : i32
    %c0_i32_0 = arith.constant 0 : i32
    %c0_i32_1 = arith.constant 0 : i32
    return %c0_i32, %c0_i32_0 : i32, i32
  }
  func.func @transform_5(%arg0: i32, %arg1: i32) -> (i32, i32) {
    %c0_i32 = arith.constant 0 : i32
    %c0_i32_0 = arith.constant 0 : i32
    %c0_i32_1 = arith.constant 0 : i32
    return %c0_i32, %c0_i32_0 : i32, i32
  }
  func.func @transform_6(%arg0: i32, %arg1: i32) -> (i32, i32) {
    %c0_i32 = arith.constant 0 : i32
    %c0_i32_0 = arith.constant 0 : i32
    %c0_i32_1 = arith.constant 0 : i32
    return %c0_i32, %c0_i32_0 : i32, i32
  }
  func.func @transform_7(%arg0: i32, %arg1: i32) -> (i32, i32) {
    %c0_i32 = arith.constant 0 : i32
    %c0_i32_0 = arith.constant 0 : i32
    return %arg0, %c0_i32 : i32, i32
  }
}

module attributes {stable_mosaic.version = 11 : i64} {
  func.func @lstm_kernel(%arg0: i32, %arg1: i32, %arg2: memref<4x8x512xf32, #tpu.memory_space<vmem>>, %arg3: memref<128x512xbf16, #tpu.memory_space<vmem>>, %arg4: memref<128x512xbf16, #tpu.memory_space<vmem>>, %arg5: memref<128x512xbf16, #tpu.memory_space<vmem>>, %arg6: memref<1x512xf32, #tpu.memory_space<vmem>>, %arg7: memref<1x128xf32, #tpu.memory_space<vmem>>, %arg8: memref<1x1xf32, #tpu.memory_space<vmem>>, %arg9: memref<8x1xf32, #tpu.memory_space<vmem>>, %arg10: memref<8x128xf32, #tpu.memory_space<vmem>>, %arg11: memref<8x128xf32, #tpu.memory_space<vmem>>, %arg12: memref<8x128xf32, #tpu.memory_space<vmem>>, %arg13: memref<8x128xf32, #tpu.memory_space<vmem>>) attributes {dimension_semantics = [#tpu.dimension_semantics<parallel>, #tpu.dimension_semantics<arbitrary>], iteration_bounds = array<i64: 2, 2>, scalar_prefetch = 0 : i64, scratch_operands = 4 : i64, tpu.core_type = #tpu.core_type<tc>, window_params = [{transform_indices = @transform_0, window_bounds = array<i64: 4, 8, 512>}, {pipeline_mode = #tpu.pipeline_mode<synchronous>, transform_indices = @transform_1, window_bounds = array<i64: 128, 512>}, {pipeline_mode = #tpu.pipeline_mode<synchronous>, transform_indices = @transform_2, window_bounds = array<i64: 128, 512>}, {pipeline_mode = #tpu.pipeline_mode<synchronous>, transform_indices = @transform_3, window_bounds = array<i64: 128, 512>}, {pipeline_mode = #tpu.pipeline_mode<synchronous>, transform_indices = @transform_4, window_bounds = array<i64: 1, 512>}, {pipeline_mode = #tpu.pipeline_mode<synchronous>, transform_indices = @transform_5, window_bounds = array<i64: 1, 128>}, {pipeline_mode = #tpu.pipeline_mode<synchronous>, transform_indices = @transform_6, window_bounds = array<i64: 1, 1>}, {transform_indices = @transform_7, window_bounds = array<i64: 8, 1>}]} {
    %c0_i32 = arith.constant 0 : i32
    %0 = arith.cmpi eq, %arg1, %c0_i32 : i32
    %1 = arith.extui %0 : i1 to i32
    %c0_i32_0 = arith.constant 0 : i32
    %2 = arith.cmpi ne, %1, %c0_i32_0 : i32
    scf.if %2 {
      %cst_63 = arith.constant 0.000000e+00 : f32
      %223 = vector.broadcast %cst_63 : f32 to vector<8x128xf32>
      %c0_64 = arith.constant 0 : index
      %c0_65 = arith.constant 0 : index
      %224 = vector.load %arg10[%c0_64, %c0_65] : memref<8x128xf32, #tpu.memory_space<vmem>>, vector<8x128xf32>
      tpu.vector_store %arg10[%c0_64, %c0_65], %223 {strides = array<i32>} : memref<8x128xf32, #tpu.memory_space<vmem>>, vector<8x128xf32>,
      %cst_66 = arith.constant 0.000000e+00 : f32
      %225 = vector.broadcast %cst_66 : f32 to vector<8x128xf32>
      %c0_67 = arith.constant 0 : index
      %c0_68 = arith.constant 0 : index
      %226 = vector.load %arg11[%c0_67, %c0_68] : memref<8x128xf32, #tpu.memory_space<vmem>>, vector<8x128xf32>
      tpu.vector_store %arg11[%c0_67, %c0_68], %225 {strides = array<i32>} : memref<8x128xf32, #tpu.memory_space<vmem>>, vector<8x128xf32>,
      %cst_69 = arith.constant 0.000000e+00 : f32
      %227 = vector.broadcast %cst_69 : f32 to vector<8x128xf32>
      %c0_70 = arith.constant 0 : index
      %c0_71 = arith.constant 0 : index
      %228 = vector.load %arg12[%c0_70, %c0_71] : memref<8x128xf32, #tpu.memory_space<vmem>>, vector<8x128xf32>
      tpu.vector_store %arg12[%c0_70, %c0_71], %227 {strides = array<i32>} : memref<8x128xf32, #tpu.memory_space<vmem>>, vector<8x128xf32>,
      %cst_72 = arith.constant 0.000000e+00 : f32
      %229 = vector.broadcast %cst_72 : f32 to vector<8x128xf32>
      %c0_73 = arith.constant 0 : index
      %c0_74 = arith.constant 0 : index
      %230 = vector.load %arg13[%c0_73, %c0_74] : memref<8x128xf32, #tpu.memory_space<vmem>>, vector<8x128xf32>
      tpu.vector_store %arg13[%c0_73, %c0_74], %229 {strides = array<i32>} : memref<8x128xf32, #tpu.memory_space<vmem>>, vector<8x128xf32>,
    } else {
    }
    %c0 = arith.constant 0 : index
    %c0_1 = arith.constant 0 : index
    %3 = vector.load %arg3[%c0, %c0_1] : memref<128x512xbf16, #tpu.memory_space<vmem>>, vector<128x512xbf16>
    %c0_2 = arith.constant 0 : index
    %c0_3 = arith.constant 0 : index
    %4 = vector.load %arg4[%c0_2, %c0_3] : memref<128x512xbf16, #tpu.memory_space<vmem>>, vector<128x512xbf16>
    %c0_4 = arith.constant 0 : index
    %c0_5 = arith.constant 0 : index
    %5 = vector.load %arg5[%c0_4, %c0_5] : memref<128x512xbf16, #tpu.memory_space<vmem>>, vector<128x512xbf16>
    %c0_6 = arith.constant 0 : index
    %c0_7 = arith.constant 0 : index
    %6 = vector.load %arg6[%c0_6, %c0_7] : memref<1x512xf32, #tpu.memory_space<vmem>>, vector<1x512xf32>
    %7 = vector.shape_cast %6 : vector<1x512xf32> to vector<1x512xf32>
    %8 = vector.broadcast %7 : vector<1x512xf32> to vector<8x512xf32>
    %c4_i32 = arith.constant 4 : i32
    %9 = arith.muli %arg1, %c4_i32 : i32
    %c0_8 = arith.constant 0 : index
    %c0_9 = arith.constant 0 : index
    %10 = vector.load %arg10[%c0_8, %c0_9] : memref<8x128xf32, #tpu.memory_space<vmem>>, vector<8x128xf32>
    %c0_10 = arith.constant 0 : index
    %c0_11 = arith.constant 0 : index
    %11 = vector.load %arg11[%c0_10, %c0_11] : memref<8x128xf32, #tpu.memory_space<vmem>>, vector<8x128xf32>
    %c0_12 = arith.constant 0 : index
    %c0_13 = arith.constant 0 : index
    %12 = vector.load %arg12[%c0_12, %c0_13] : memref<8x128xf32, #tpu.memory_space<vmem>>, vector<8x128xf32>
    %c0_14 = arith.constant 0 : index
    %c0_15 = arith.constant 0 : index
    %13 = vector.load %arg13[%c0_14, %c0_15] : memref<8x128xf32, #tpu.memory_space<vmem>>, vector<8x128xf32>
    %c0_16 = arith.constant 0 : index
    %c0_17 = arith.constant 0 : index
    %c0_18 = arith.constant 0 : index
    %14 = vector.load %arg2[%c0_16, %c0_17, %c0_18] : memref<4x8x512xf32, #tpu.memory_space<vmem>>, vector<1x8x512xf32>
    %15 = vector.shape_cast %14 : vector<1x8x512xf32> to vector<8x512xf32>
    %16 = arith.truncf %10 : vector<8x128xf32> to vector<8x128xbf16>
    %cst = arith.constant dense<0.000000e+00> : vector<8x512xf32>
    %17 = tpu.matmul %16, %3, %cst {dimension_numbers = #tpu.dot_dimension_numbers<[1], [0], [0], [1], [0, 0, 1, 1], [], []>} : vector<8x128xbf16>, vector<128x512xbf16>, vector<8x512xf32> -> vector<8x512xf32>
    %18 = arith.addf %15, %17 : vector<8x512xf32>
    %19 = vector.extract_strided_slice %18 {offsets = [0, 0], sizes = [8, 384], strides = [1, 1]} : vector<8x512xf32> to vector<8x384xf32>
    %20 = arith.negf %19 : vector<8x384xf32>
    %21 = math.exp %20 : vector<8x384xf32>
    %cst_19 = arith.constant 1.000000e+00 : f32
    %22 = vector.broadcast %cst_19 : f32 to vector<8x384xf32>
    %23 = arith.addf %22, %21 : vector<8x384xf32>
    %24 = arith.divf %22, %23 : vector<8x384xf32>
    %25 = vector.extract_strided_slice %18 {offsets = [0, 384], sizes = [8, 128], strides = [1, 1]} : vector<8x512xf32> to vector<8x128xf32>
    %26 = math.tanh %25 : vector<8x128xf32>
    %27 = vector.extract_strided_slice %24 {offsets = [0, 0], sizes = [8, 128], strides = [1, 1]} : vector<8x384xf32> to vector<8x128xf32>
    %28 = vector.extract_strided_slice %24 {offsets = [0, 128], sizes = [8, 128], strides = [1, 1]} : vector<8x384xf32> to vector<8x128xf32>
    %29 = vector.extract_strided_slice %24 {offsets = [0, 256], sizes = [8, 128], strides = [1, 1]} : vector<8x384xf32> to vector<8x128xf32>
    %30 = arith.mulf %28, %11 : vector<8x128xf32>
    %31 = arith.mulf %27, %26 : vector<8x128xf32>
    %32 = arith.addf %30, %31 : vector<8x128xf32>
    %33 = math.tanh %32 : vector<8x128xf32>
    %34 = arith.mulf %29, %33 : vector<8x128xf32>
    %35 = arith.truncf %34 : vector<8x128xf32> to vector<8x128xbf16>
    %cst_20 = arith.constant dense<0.000000e+00> : vector<8x512xf32>
    %36 = tpu.matmul %35, %4, %cst_20 {dimension_numbers = #tpu.dot_dimension_numbers<[1], [0], [0], [1], [0, 0, 1, 1], [], []>} : vector<8x128xbf16>, vector<128x512xbf16>, vector<8x512xf32> -> vector<8x512xf32>
    %37 = arith.truncf %12 : vector<8x128xf32> to vector<8x128xbf16>
    %cst_21 = arith.constant dense<0.000000e+00> : vector<8x512xf32>
    %38 = tpu.matmul %37, %5, %cst_21 {dimension_numbers = #tpu.dot_dimension_numbers<[1], [0], [0], [1], [0, 0, 1, 1], [], []>} : vector<8x128xbf16>, vector<128x512xbf16>, vector<8x512xf32> -> vector<8x512xf32>
    %39 = arith.addf %36, %38 : vector<8x512xf32>
    %40 = arith.addf %39, %8 : vector<8x512xf32>
    %41 = vector.extract_strided_slice %40 {offsets = [0, 0], sizes = [8, 384], strides = [1, 1]} : vector<8x512xf32> to vector<8x384xf32>
    %42 = arith.negf %41 : vector<8x384xf32>
    %43 = math.exp %42 : vector<8x384xf32>
    %cst_22 = arith.constant 1.000000e+00 : f32
    %44 = vector.broadcast %cst_22 : f32 to vector<8x384xf32>
    %45 = arith.addf %44, %43 : vector<8x384xf32>
    %46 = arith.divf %44, %45 : vector<8x384xf32>
    %47 = vector.extract_strided_slice %40 {offsets = [0, 384], sizes = [8, 128], strides = [1, 1]} : vector<8x512xf32> to vector<8x128xf32>
    %48 = math.tanh %47 : vector<8x128xf32>
    %49 = vector.extract_strided_slice %46 {offsets = [0, 0], sizes = [8, 128], strides = [1, 1]} : vector<8x384xf32> to vector<8x128xf32>
    %50 = vector.extract_strided_slice %46 {offsets = [0, 128], sizes = [8, 128], strides = [1, 1]} : vector<8x384xf32> to vector<8x128xf32>
    %51 = vector.extract_strided_slice %46 {offsets = [0, 256], sizes = [8, 128], strides = [1, 1]} : vector<8x384xf32> to vector<8x128xf32>
    %52 = arith.mulf %50, %13 : vector<8x128xf32>
    %53 = arith.mulf %49, %48 : vector<8x128xf32>
    %54 = arith.addf %52, %53 : vector<8x128xf32>
    %55 = math.tanh %54 : vector<8x128xf32>
    %56 = arith.mulf %51, %55 : vector<8x128xf32>
    %c0_i32_23 = arith.constant 0 : i32
    %57 = arith.addi %9, %c0_i32_23 : i32
    %c7_i32 = arith.constant 7 : i32
    %58 = arith.cmpi slt, %57, %c7_i32 : i32
    %59 = arith.select %58, %34, %10 : vector<8x128xf32>
    %60 = arith.select %58, %32, %11 : vector<8x128xf32>
    %61 = arith.select %58, %56, %12 : vector<8x128xf32>
    %62 = arith.select %58, %54, %13 : vector<8x128xf32>
    %c1 = arith.constant 1 : index
    %c0_24 = arith.constant 0 : index
    %c0_25 = arith.constant 0 : index
    %63 = vector.load %arg2[%c1, %c0_24, %c0_25] : memref<4x8x512xf32, #tpu.memory_space<vmem>>, vector<1x8x512xf32>
    %64 = vector.shape_cast %63 : vector<1x8x512xf32> to vector<8x512xf32>
    %65 = arith.truncf %59 : vector<8x128xf32> to vector<8x128xbf16>
    %cst_26 = arith.constant dense<0.000000e+00> : vector<8x512xf32>
    %66 = tpu.matmul %65, %3, %cst_26 {dimension_numbers = #tpu.dot_dimension_numbers<[1], [0], [0], [1], [0, 0, 1, 1], [], []>} : vector<8x128xbf16>, vector<128x512xbf16>, vector<8x512xf32> -> vector<8x512xf32>
    %67 = arith.addf %64, %66 : vector<8x512xf32>
    %68 = vector.extract_strided_slice %67 {offsets = [0, 0], sizes = [8, 384], strides = [1, 1]} : vector<8x512xf32> to vector<8x384xf32>
    %69 = arith.negf %68 : vector<8x384xf32>
    %70 = math.exp %69 : vector<8x384xf32>
    %cst_27 = arith.constant 1.000000e+00 : f32
    %71 = vector.broadcast %cst_27 : f32 to vector<8x384xf32>
    %72 = arith.addf %71, %70 : vector<8x384xf32>
    %73 = arith.divf %71, %72 : vector<8x384xf32>
    %74 = vector.extract_strided_slice %67 {offsets = [0, 384], sizes = [8, 128], strides = [1, 1]} : vector<8x512xf32> to vector<8x128xf32>
    %75 = math.tanh %74 : vector<8x128xf32>
    %76 = vector.extract_strided_slice %73 {offsets = [0, 0], sizes = [8, 128], strides = [1, 1]} : vector<8x384xf32> to vector<8x128xf32>
    %77 = vector.extract_strided_slice %73 {offsets = [0, 128], sizes = [8, 128], strides = [1, 1]} : vector<8x384xf32> to vector<8x128xf32>
    %78 = vector.extract_strided_slice %73 {offsets = [0, 256], sizes = [8, 128], strides = [1, 1]} : vector<8x384xf32> to vector<8x128xf32>
    %79 = arith.mulf %77, %60 : vector<8x128xf32>
    %80 = arith.mulf %76, %75 : vector<8x128xf32>
    %81 = arith.addf %79, %80 : vector<8x128xf32>
    %82 = math.tanh %81 : vector<8x128xf32>
    %83 = arith.mulf %78, %82 : vector<8x128xf32>
    %84 = arith.truncf %83 : vector<8x128xf32> to vector<8x128xbf16>
    %cst_28 = arith.constant dense<0.000000e+00> : vector<8x512xf32>
    %85 = tpu.matmul %84, %4, %cst_28 {dimension_numbers = #tpu.dot_dimension_numbers<[1], [0], [0], [1], [0, 0, 1, 1], [], []>} : vector<8x128xbf16>, vector<128x512xbf16>, vector<8x512xf32> -> vector<8x512xf32>
    %86 = arith.truncf %61 : vector<8x128xf32> to vector<8x128xbf16>
    %cst_29 = arith.constant dense<0.000000e+00> : vector<8x512xf32>
    %87 = tpu.matmul %86, %5, %cst_29 {dimension_numbers = #tpu.dot_dimension_numbers<[1], [0], [0], [1], [0, 0, 1, 1], [], []>} : vector<8x128xbf16>, vector<128x512xbf16>, vector<8x512xf32> -> vector<8x512xf32>
    %88 = arith.addf %85, %87 : vector<8x512xf32>
    %89 = arith.addf %88, %8 : vector<8x512xf32>
    %90 = vector.extract_strided_slice %89 {offsets = [0, 0], sizes = [8, 384], strides = [1, 1]} : vector<8x512xf32> to vector<8x384xf32>
    %91 = arith.negf %90 : vector<8x384xf32>
    %92 = math.exp %91 : vector<8x384xf32>
    %cst_30 = arith.constant 1.000000e+00 : f32
    %93 = vector.broadcast %cst_30 : f32 to vector<8x384xf32>
    %94 = arith.addf %93, %92 : vector<8x384xf32>
    %95 = arith.divf %93, %94 : vector<8x384xf32>
    %96 = vector.extract_strided_slice %89 {offsets = [0, 384], sizes = [8, 128], strides = [1, 1]} : vector<8x512xf32> to vector<8x128xf32>
    %97 = math.tanh %96 : vector<8x128xf32>
    %98 = vector.extract_strided_slice %95 {offsets = [0, 0], sizes = [8, 128], strides = [1, 1]} : vector<8x384xf32> to vector<8x128xf32>
    %99 = vector.extract_strided_slice %95 {offsets = [0, 128], sizes = [8, 128], strides = [1, 1]} : vector<8x384xf32> to vector<8x128xf32>
    %100 = vector.extract_strided_slice %95 {offsets = [0, 256], sizes = [8, 128], strides = [1, 1]} : vector<8x384xf32> to vector<8x128xf32>
    %101 = arith.mulf %99, %62 : vector<8x128xf32>
    %102 = arith.mulf %98, %97 : vector<8x128xf32>
    %103 = arith.addf %101, %102 : vector<8x128xf32>
    %104 = math.tanh %103 : vector<8x128xf32>
    %105 = arith.mulf %100, %104 : vector<8x128xf32>
    %c1_i32 = arith.constant 1 : i32
    %106 = arith.addi %9, %c1_i32 : i32
    %c7_i32_31 = arith.constant 7 : i32
    %107 = arith.cmpi slt, %106, %c7_i32_31 : i32
    %108 = arith.select %107, %83, %59 : vector<8x128xf32>
    %109 = arith.select %107, %81, %60 : vector<8x128xf32>
    %110 = arith.select %107, %105, %61 : vector<8x128xf32>
    %111 = arith.select %107, %103, %62 : vector<8x128xf32>
    %c2 = arith.constant 2 : index
    %c0_32 = arith.constant 0 : index
    %c0_33 = arith.constant 0 : index
    %112 = vector.load %arg2[%c2, %c0_32, %c0_33] : memref<4x8x512xf32, #tpu.memory_space<vmem>>, vector<1x8x512xf32>
    %113 = vector.shape_cast %112 : vector<1x8x512xf32> to vector<8x512xf32>
    %114 = arith.truncf %108 : vector<8x128xf32> to vector<8x128xbf16>
    %cst_34 = arith.constant dense<0.000000e+00> : vector<8x512xf32>
    %115 = tpu.matmul %114, %3, %cst_34 {dimension_numbers = #tpu.dot_dimension_numbers<[1], [0], [0], [1], [0, 0, 1, 1], [], []>} : vector<8x128xbf16>, vector<128x512xbf16>, vector<8x512xf32> -> vector<8x512xf32>
    %116 = arith.addf %113, %115 : vector<8x512xf32>
    %117 = vector.extract_strided_slice %116 {offsets = [0, 0], sizes = [8, 384], strides = [1, 1]} : vector<8x512xf32> to vector<8x384xf32>
    %118 = arith.negf %117 : vector<8x384xf32>
    %119 = math.exp %118 : vector<8x384xf32>
    %cst_35 = arith.constant 1.000000e+00 : f32
    %120 = vector.broadcast %cst_35 : f32 to vector<8x384xf32>
    %121 = arith.addf %120, %119 : vector<8x384xf32>
    %122 = arith.divf %120, %121 : vector<8x384xf32>
    %123 = vector.extract_strided_slice %116 {offsets = [0, 384], sizes = [8, 128], strides = [1, 1]} : vector<8x512xf32> to vector<8x128xf32>
    %124 = math.tanh %123 : vector<8x128xf32>
    %125 = vector.extract_strided_slice %122 {offsets = [0, 0], sizes = [8, 128], strides = [1, 1]} : vector<8x384xf32> to vector<8x128xf32>
    %126 = vector.extract_strided_slice %122 {offsets = [0, 128], sizes = [8, 128], strides = [1, 1]} : vector<8x384xf32> to vector<8x128xf32>
    %127 = vector.extract_strided_slice %122 {offsets = [0, 256], sizes = [8, 128], strides = [1, 1]} : vector<8x384xf32> to vector<8x128xf32>
    %128 = arith.mulf %126, %109 : vector<8x128xf32>
    %129 = arith.mulf %125, %124 : vector<8x128xf32>
    %130 = arith.addf %128, %129 : vector<8x128xf32>
    %131 = math.tanh %130 : vector<8x128xf32>
    %132 = arith.mulf %127, %131 : vector<8x128xf32>
    %133 = arith.truncf %132 : vector<8x128xf32> to vector<8x128xbf16>
    %cst_36 = arith.constant dense<0.000000e+00> : vector<8x512xf32>
    %134 = tpu.matmul %133, %4, %cst_36 {dimension_numbers = #tpu.dot_dimension_numbers<[1], [0], [0], [1], [0, 0, 1, 1], [], []>} : vector<8x128xbf16>, vector<128x512xbf16>, vector<8x512xf32> -> vector<8x512xf32>
    %135 = arith.truncf %110 : vector<8x128xf32> to vector<8x128xbf16>
    %cst_37 = arith.constant dense<0.000000e+00> : vector<8x512xf32>
    %136 = tpu.matmul %135, %5, %cst_37 {dimension_numbers = #tpu.dot_dimension_numbers<[1], [0], [0], [1], [0, 0, 1, 1], [], []>} : vector<8x128xbf16>, vector<128x512xbf16>, vector<8x512xf32> -> vector<8x512xf32>
    %137 = arith.addf %134, %136 : vector<8x512xf32>
    %138 = arith.addf %137, %8 : vector<8x512xf32>
    %139 = vector.extract_strided_slice %138 {offsets = [0, 0], sizes = [8, 384], strides = [1, 1]} : vector<8x512xf32> to vector<8x384xf32>
    %140 = arith.negf %139 : vector<8x384xf32>
    %141 = math.exp %140 : vector<8x384xf32>
    %cst_38 = arith.constant 1.000000e+00 : f32
    %142 = vector.broadcast %cst_38 : f32 to vector<8x384xf32>
    %143 = arith.addf %142, %141 : vector<8x384xf32>
    %144 = arith.divf %142, %143 : vector<8x384xf32>
    %145 = vector.extract_strided_slice %138 {offsets = [0, 384], sizes = [8, 128], strides = [1, 1]} : vector<8x512xf32> to vector<8x128xf32>
    %146 = math.tanh %145 : vector<8x128xf32>
    %147 = vector.extract_strided_slice %144 {offsets = [0, 0], sizes = [8, 128], strides = [1, 1]} : vector<8x384xf32> to vector<8x128xf32>
    %148 = vector.extract_strided_slice %144 {offsets = [0, 128], sizes = [8, 128], strides = [1, 1]} : vector<8x384xf32> to vector<8x128xf32>
    %149 = vector.extract_strided_slice %144 {offsets = [0, 256], sizes = [8, 128], strides = [1, 1]} : vector<8x384xf32> to vector<8x128xf32>
    %150 = arith.mulf %148, %111 : vector<8x128xf32>
    %151 = arith.mulf %147, %146 : vector<8x128xf32>
    %152 = arith.addf %150, %151 : vector<8x128xf32>
    %153 = math.tanh %152 : vector<8x128xf32>
    %154 = arith.mulf %149, %153 : vector<8x128xf32>
    %c2_i32 = arith.constant 2 : i32
    %155 = arith.addi %9, %c2_i32 : i32
    %c7_i32_39 = arith.constant 7 : i32
    %156 = arith.cmpi slt, %155, %c7_i32_39 : i32
    %157 = arith.select %156, %132, %108 : vector<8x128xf32>
    %158 = arith.select %156, %130, %109 : vector<8x128xf32>
    %159 = arith.select %156, %154, %110 : vector<8x128xf32>
    %160 = arith.select %156, %152, %111 : vector<8x128xf32>
    %c3 = arith.constant 3 : index
    %c0_40 = arith.constant 0 : index
    %c0_41 = arith.constant 0 : index
    %161 = vector.load %arg2[%c3, %c0_40, %c0_41] : memref<4x8x512xf32, #tpu.memory_space<vmem>>, vector<1x8x512xf32>
    %162 = vector.shape_cast %161 : vector<1x8x512xf32> to vector<8x512xf32>
    %163 = arith.truncf %157 : vector<8x128xf32> to vector<8x128xbf16>
    %cst_42 = arith.constant dense<0.000000e+00> : vector<8x512xf32>
    %164 = tpu.matmul %163, %3, %cst_42 {dimension_numbers = #tpu.dot_dimension_numbers<[1], [0], [0], [1], [0, 0, 1, 1], [], []>} : vector<8x128xbf16>, vector<128x512xbf16>, vector<8x512xf32> -> vector<8x512xf32>
    %165 = arith.addf %162, %164 : vector<8x512xf32>
    %166 = vector.extract_strided_slice %165 {offsets = [0, 0], sizes = [8, 384], strides = [1, 1]} : vector<8x512xf32> to vector<8x384xf32>
    %167 = arith.negf %166 : vector<8x384xf32>
    %168 = math.exp %167 : vector<8x384xf32>
    %cst_43 = arith.constant 1.000000e+00 : f32
    %169 = vector.broadcast %cst_43 : f32 to vector<8x384xf32>
    %170 = arith.addf %169, %168 : vector<8x384xf32>
    %171 = arith.divf %169, %170 : vector<8x384xf32>
    %172 = vector.extract_strided_slice %165 {offsets = [0, 384], sizes = [8, 128], strides = [1, 1]} : vector<8x512xf32> to vector<8x128xf32>
    %173 = math.tanh %172 : vector<8x128xf32>
    %174 = vector.extract_strided_slice %171 {offsets = [0, 0], sizes = [8, 128], strides = [1, 1]} : vector<8x384xf32> to vector<8x128xf32>
    %175 = vector.extract_strided_slice %171 {offsets = [0, 128], sizes = [8, 128], strides = [1, 1]} : vector<8x384xf32> to vector<8x128xf32>
    %176 = vector.extract_strided_slice %171 {offsets = [0, 256], sizes = [8, 128], strides = [1, 1]} : vector<8x384xf32> to vector<8x128xf32>
    %177 = arith.mulf %175, %158 : vector<8x128xf32>
    %178 = arith.mulf %174, %173 : vector<8x128xf32>
    %179 = arith.addf %177, %178 : vector<8x128xf32>
    %180 = math.tanh %179 : vector<8x128xf32>
    %181 = arith.mulf %176, %180 : vector<8x128xf32>
    %182 = arith.truncf %181 : vector<8x128xf32> to vector<8x128xbf16>
    %cst_44 = arith.constant dense<0.000000e+00> : vector<8x512xf32>
    %183 = tpu.matmul %182, %4, %cst_44 {dimension_numbers = #tpu.dot_dimension_numbers<[1], [0], [0], [1], [0, 0, 1, 1], [], []>} : vector<8x128xbf16>, vector<128x512xbf16>, vector<8x512xf32> -> vector<8x512xf32>
    %184 = arith.truncf %159 : vector<8x128xf32> to vector<8x128xbf16>
    %cst_45 = arith.constant dense<0.000000e+00> : vector<8x512xf32>
    %185 = tpu.matmul %184, %5, %cst_45 {dimension_numbers = #tpu.dot_dimension_numbers<[1], [0], [0], [1], [0, 0, 1, 1], [], []>} : vector<8x128xbf16>, vector<128x512xbf16>, vector<8x512xf32> -> vector<8x512xf32>
    %186 = arith.addf %183, %185 : vector<8x512xf32>
    %187 = arith.addf %186, %8 : vector<8x512xf32>
    %188 = vector.extract_strided_slice %187 {offsets = [0, 0], sizes = [8, 384], strides = [1, 1]} : vector<8x512xf32> to vector<8x384xf32>
    %189 = arith.negf %188 : vector<8x384xf32>
    %190 = math.exp %189 : vector<8x384xf32>
    %cst_46 = arith.constant 1.000000e+00 : f32
    %191 = vector.broadcast %cst_46 : f32 to vector<8x384xf32>
    %192 = arith.addf %191, %190 : vector<8x384xf32>
    %193 = arith.divf %191, %192 : vector<8x384xf32>
    %194 = vector.extract_strided_slice %187 {offsets = [0, 384], sizes = [8, 128], strides = [1, 1]} : vector<8x512xf32> to vector<8x128xf32>
    %195 = math.tanh %194 : vector<8x128xf32>
    %196 = vector.extract_strided_slice %193 {offsets = [0, 0], sizes = [8, 128], strides = [1, 1]} : vector<8x384xf32> to vector<8x128xf32>
    %197 = vector.extract_strided_slice %193 {offsets = [0, 128], sizes = [8, 128], strides = [1, 1]} : vector<8x384xf32> to vector<8x128xf32>
    %198 = vector.extract_strided_slice %193 {offsets = [0, 256], sizes = [8, 128], strides = [1, 1]} : vector<8x384xf32> to vector<8x128xf32>
    %199 = arith.mulf %197, %160 : vector<8x128xf32>
    %200 = arith.mulf %196, %195 : vector<8x128xf32>
    %201 = arith.addf %199, %200 : vector<8x128xf32>
    %202 = math.tanh %201 : vector<8x128xf32>
    %203 = arith.mulf %198, %202 : vector<8x128xf32>
    %c3_i32 = arith.constant 3 : i32
    %204 = arith.addi %9, %c3_i32 : i32
    %c7_i32_47 = arith.constant 7 : i32
    %205 = arith.cmpi slt, %204, %c7_i32_47 : i32
    %206 = arith.select %205, %181, %157 : vector<8x128xf32>
    %207 = arith.select %205, %179, %158 : vector<8x128xf32>
    %208 = arith.select %205, %203, %159 : vector<8x128xf32>
    %209 = arith.select %205, %201, %160 : vector<8x128xf32>
    %c0_48 = arith.constant 0 : index
    %c0_49 = arith.constant 0 : index
    %210 = vector.load %arg10[%c0_48, %c0_49] : memref<8x128xf32, #tpu.memory_space<vmem>>, vector<8x128xf32>
    tpu.vector_store %arg10[%c0_48, %c0_49], %206 {strides = array<i32>} : memref<8x128xf32, #tpu.memory_space<vmem>>, vector<8x128xf32>,
    %c0_50 = arith.constant 0 : index
    %c0_51 = arith.constant 0 : index
    %211 = vector.load %arg11[%c0_50, %c0_51] : memref<8x128xf32, #tpu.memory_space<vmem>>, vector<8x128xf32>
    tpu.vector_store %arg11[%c0_50, %c0_51], %207 {strides = array<i32>} : memref<8x128xf32, #tpu.memory_space<vmem>>, vector<8x128xf32>,
    %c0_52 = arith.constant 0 : index
    %c0_53 = arith.constant 0 : index
    %212 = vector.load %arg12[%c0_52, %c0_53] : memref<8x128xf32, #tpu.memory_space<vmem>>, vector<8x128xf32>
    tpu.vector_store %arg12[%c0_52, %c0_53], %208 {strides = array<i32>} : memref<8x128xf32, #tpu.memory_space<vmem>>, vector<8x128xf32>,
    %c0_54 = arith.constant 0 : index
    %c0_55 = arith.constant 0 : index
    %213 = vector.load %arg13[%c0_54, %c0_55] : memref<8x128xf32, #tpu.memory_space<vmem>>, vector<8x128xf32>
    tpu.vector_store %arg13[%c0_54, %c0_55], %209 {strides = array<i32>} : memref<8x128xf32, #tpu.memory_space<vmem>>, vector<8x128xf32>,
    %c0_56 = arith.constant 0 : index
    %c0_57 = arith.constant 0 : index
    %214 = vector.load %arg7[%c0_56, %c0_57] : memref<1x128xf32, #tpu.memory_space<vmem>>, vector<1x128xf32>
    %215 = vector.broadcast %214 : vector<1x128xf32> to vector<8x128xf32>
    %216 = arith.mulf %208, %215 : vector<8x128xf32>
    %cst_58 = arith.constant dense<0.000000e+00> : vector<8xf32>
    %217 = vector.multi_reduction <add>, %216, %cst_58 [1] : vector<8x128xf32> to vector<8xf32>
    %218 = vector.shape_cast %217 : vector<8xf32> to vector<8x1xf32>
    %c0_59 = arith.constant 0 : index
    %c0_60 = arith.constant 0 : index
    %219 = vector.load %arg8[%c0_59, %c0_60] : memref<1x1xf32, #tpu.memory_space<vmem>>, vector<1x1xf32>
    %220 = vector.broadcast %219 : vector<1x1xf32> to vector<8x1xf32>
    %221 = arith.addf %218, %220 : vector<8x1xf32>
    %c0_61 = arith.constant 0 : index
    %c0_62 = arith.constant 0 : index
    %222 = vector.load %arg9[%c0_61, %c0_62] : memref<8x1xf32, #tpu.memory_space<vmem>>, vector<8x1xf32>
    tpu.vector_store %arg9[%c0_61, %c0_62], %221 {strides = array<i32>} : memref<8x1xf32, #tpu.memory_space<vmem>>, vector<8x1xf32>,
    return
  }
  func.func @transform_0(%arg0: i32, %arg1: i32) -> (i32, i32, i32) {
    %c0_i32 = arith.constant 0 : i32
    %c0_i32_0 = arith.constant 0 : i32
    return %arg1, %arg0, %c0_i32 : i32, i32, i32
  }
  func.func @transform_1(%arg0: i32, %arg1: i32) -> (i32, i32) {
    %c0_i32 = arith.constant 0 : i32
    %c0_i32_0 = arith.constant 0 : i32
    %c0_i32_1 = arith.constant 0 : i32
    return %c0_i32, %c0_i32_0 : i32, i32
  }
  func.func @transform_2(%arg0: i32, %arg1: i32) -> (i32, i32) {
    %c0_i32 = arith.constant 0 : i32
    %c0_i32_0 = arith.constant 0 : i32
    %c0_i32_1 = arith.constant 0 : i32
    return %c0_i32, %c0_i32_0 : i32, i32
  }
  func.func @transform_3(%arg0: i32, %arg1: i32) -> (i32, i32) {
    %c0_i32 = arith.constant 0 : i32
    %c0_i32_0 = arith.constant 0 : i32
    %c0_i32_1 = arith.constant 0 : i32
    return %c0_i32, %c0_i32_0 : i32, i32
  }
  func.func @transform_4(%arg0: i32, %arg1: i32) -> (i32, i32) {
    %c0_i32 = arith.constant 0 : i32
    %c0_i32_0 = arith.constant 0 : i32
    %c0_i32_1 = arith.constant 0 : i32
    return %c0_i32, %c0_i32_0 : i32, i32
  }
  func.func @transform_5(%arg0: i32, %arg1: i32) -> (i32, i32) {
    %c0_i32 = arith.constant 0 : i32
    %c0_i32_0 = arith.constant 0 : i32
    %c0_i32_1 = arith.constant 0 : i32
    return %c0_i32, %c0_i32_0 : i32, i32
  }
  func.func @transform_6(%arg0: i32, %arg1: i32) -> (i32, i32) {
    %c0_i32 = arith.constant 0 : i32
    %c0_i32_0 = arith.constant 0 : i32
    %c0_i32_1 = arith.constant 0 : i32
    return %c0_i32, %c0_i32_0 : i32, i32
  }
  func.func @transform_7(%arg0: i32, %arg1: i32) -> (i32, i32) {
    %c0_i32 = arith.constant 0 : i32
    %c0_i32_0 = arith.constant 0 : i32
    return %arg0, %c0_i32 : i32, i32
  }
}

</mosaic_0001>

<bundles_post_ra>
// kernel: tpu_custom_call.1
= control target key start
LH: loop header
LB: loop body
LE: loop exit
PB: predicated region body
PF: predicated region fallthrough
CT: control target
= control target key end

     0   :  { %s4301_s0 = inlined_call_operand.hbm [shape: f32[8,16,512], index: 0, kind: input, shape index: {}]   ;;  %s4302_s1 = inlined_call_operand.hbm [shape: bf16[128,512], index: 1, kind: input, shape index: {}]   ;;  %s4303_s2 = inlined_call_operand.hbm [shape: bf16[128,512], index: 2, kind: input, shape index: {}]   ;;  %s4304_s3 = inlined_call_operand.hbm [shape: bf16[128,512], index: 3, kind: input, shape index: {}]   ;;  %s4305_s4 = inlined_call_operand.vmem [shape: f32[1,512], index: 4, kind: input, shape index: {}]   ;;  %s4306_s5 = inlined_call_operand.vmem [shape: f32[1,128], index: 5, kind: input, shape index: {}]   ;;  %s4307_s6 = inlined_call_operand.<no memory space> [shape: f32[1,1], index: 6, kind: input, shape index: {}]   ;;  %s4308_s7 = inlined_call_operand.vmem [shape: f32[16,1], index: 7, kind: output, shape index: {}]  }
   0x1   :  { %4445 = sst [smem:[#allocation71_spill]] %s4302_s1  ;;  %v12_v0 = vstv %s4307_s6 }
   0x2   :  { %4446 = sst [smem:[#allocation72_spill]] %s4303_s2  ;;  %13 = vst [vmem:[#allocation6] sm:$0x1] %v12_v0 }
   0x3   :  { %4447 = sst [smem:[#allocation73_spill]] %s4306_s5 }
   0x4   :  { %14 = vsyncpa [#allocation8], 0 }
   0x5   :  { %16 = vsyncpa [#allocation8 + $0x1], 0 }
   0x6   :  { %17 = vsyncpa [#allocation10], 0 }
   0x7   :  { %18 = vsyncpa [#allocation13], 0  ;;  %s3257_s26 = smov 0   ;;  %s3259_s27 = smov 0  }
   0x8   :  { %s3261_s28 = smov 0   ;;  %s3263_s29 = smov 0  }
   0x9   :  { %s3265_s30 = smov 0   ;;  %s3267_s8 = smov 0  }
   0xa   :  { %s3269_s9 = smov 0   ;;  %s3271_s6 = smov 0  }
   0xb LB: > { %4448 = sst [smem:[#allocation17_spill]] %s3201_s6  ;;  %s2379_s10 = sadd.s32 4294967295, %s3201_s6   ;;  %s3201_s6 = sphi %s3271_s6, %s4653_s6   ;;  %s3197_s9 = sphi %s3269_s9, %s4652_s9   ;;  %s3193_s8 = sphi %s3267_s8, %s4651_s8   ;;  %s3189_s30 = sphi %s3265_s30, %s4650_s30   ;;  %s3185_s29 = sphi %s3263_s29, %s4649_s29   ;;  %s3181_s28 = sphi %s3261_s28, %s4648_s28   ;;  %s3177_s27 = sphi %s3259_s27, %s4647_s27   ;;  %s3173_s26 = sphi %s3257_s26, %s4646_s26  }
   0xc   : > { %p52_p0 = scmp.ne.s32.totalorder %s3181_s28, %s3177_s27  ;;  %p53_p1 = scmp.eq.s32.totalorder %s3201_s6, 0 }
   0xd   : > { %p58_p2 = scmp.ne.s32.totalorder %s3177_s27, %s3173_s26  ;;  %p3301_p3 = scmp.eq.s32.totalorder %s2379_s10, 0 }
   0xe   : > { %p54_p4 = por %p53_p1, %p52_p0  ;;  %p2381_p5 = scmp.ge.s32.totalorder %s3201_s6, 1 }
   0xf   : > { %s4449_s12 = scalar_select %p3301_p3, 1, 0 }
  0x10   : > { %p3308_p6 = por %p3301_p3, %p58_p2  ;;  %p221_p7 = scmp.lt.s32.totalorder %s3201_s6, 5 }
  0x11   : > { %s3203_s15 = smov [#allocation9]   ;;  %p2567_p10 = scmp.lt.s32.totalorder %s3201_s6, 4 }
  0x12   : > { %s4450_s13 = scalar_select %p3308_p6, 1, 0 }
  0x13   : > { %p3313_p8 = pnand %p2381_p5, %p221_p7  ;;  %s233_s16 = sshll.u32 %s3203_s15, 4  ;;  %s3317_s16 = int_to_ptr.vmem [resolvable:$true] %s233_s16 }
  0x14   : > { %p3328_p12 = pnand %p2567_p10, %p54_p4  ;;  %s3204_s19 = smov [#allocation11]  }
  0x15   : > { %s4451_s14 = scalar_select %p3313_p8, 1, 0 }
  0x16   : > { %p2550_p9 = pneg %p3313_p8  ;;  %s246_s20 = sshll.u32 %s3204_s19, 4  ;;  %s3332_s20 = int_to_ptr.vmem [resolvable:$true] %s246_s20 }
  0x17   : > { %s4453_s18 = scalar_select %p3328_p12, 1, 0 }
  0x18   : > { %p3324_p11 = pnand %p2550_p9, %p3301_p3  ;;  %s4454_s1 = sld [smem:[#allocation71_spill]] }
  0x1a   : > { %p3342_p0 = pneg %p3324_p11 }
  0x1e   : > { %s3013_s23 = scalar_lea.hbm %s4454_s1, 4096 }
  0x1f   : > { %p3014_p13 = scmp.ne.s32.totalorder %s4454_s1, %s3013_s23  ;;  %p3020_p4 = scmp.lt.u32.totalorder %s3013_s23, %s4454_s1 }
  0x21   : > { %p3016_p1 = pnand %p3342_p0, %p3014_p13 }
  0x23   : > { %p3017_p2 = pneg %p3016_p1 }
  0x25   : > { %p3022_p5 = pnand %p3020_p4, %p3017_p2 }
  0x27   : > { %3025 = shalt.err (!%p3022_p5)
}
  0x28   : > { %s3026_s19 = scalar_lea.vmem %s3317_s16, 4096  ;;  %p3034_p3 = scmp.lt.s32.totalorder %s3317_s16, %s3317_s16 }
  0x29   : > { %p3027_p7 = scmp.ne.s32.totalorder %s3317_s16, %s3026_s19  ;;  %p3035_p6 = scmp.lt.s32.totalorder %s3026_s19, %s3026_s19 }
  0x2b   : > { %p3029_p9 = pnand %p3027_p7, %p3342_p0  ;;  %p3036_p13 = por %p3035_p6, %p3034_p3 }
  0x2d   : > { %p3030_p10 = pneg %p3029_p9 }
  0x2f   : > { %p3037_p1 = pnand %p3036_p13, %p3030_p10 }
  0x31   : > { %3040 = shalt.err (!%p3037_p1)
}
  0x32   : > { %s3205_s21 = smov 256   ;;  %s3206_s22 = smov 16  }
  0x33   : > { %2553 = dma.hbm_to_vmem [thread:$0]  (!%p3324_p11), %s4454_s1, 4096, %s3317_s16, [#allocation10], %s3205_s21, %s3205_s21, %s3206_s22  }
  0x34   : > { %s4456_s2 = sld [smem:[#allocation72_spill]] }
  0x3a   : > { %s3041_s15 = scalar_lea.hbm %s4456_s2, 4096 }
  0x3b   : > { %p3042_p3 = scmp.ne.s32.totalorder %s4456_s2, %s3041_s15  ;;  %p3048_p4 = scmp.lt.u32.totalorder %s3041_s15, %s4456_s2 }
  0x3d   : > { %p3044_p6 = pnand %p3042_p3, %p3342_p0 }
  0x3f   : > { %p3045_p2 = pneg %p3044_p6 }
  0x41   : > { %p3050_p5 = pnand %p3048_p4, %p3045_p2 }
  0x43   : > { %3053 = shalt.err (!%p3050_p5)
}
  0x44   : > { %s3054_s16 = scalar_lea.vmem %s3332_s20, 4096  ;;  %p3062_p13 = scmp.lt.s32.totalorder %s3332_s20, %s3332_s20 }
  0x45   : > { %p3055_p7 = scmp.ne.s32.totalorder %s3332_s20, %s3054_s16  ;;  %p3063_p1 = scmp.lt.s32.totalorder %s3054_s16, %s3054_s16 }
  0x47   : > { %p3057_p9 = pnand %p3055_p7, %p3342_p0  ;;  %p3064_p3 = por %p3063_p1, %p3062_p13 }
  0x49   : > { %p3058_p10 = pneg %p3057_p9 }
  0x4b   : > { %p3065_p6 = pnand %p3064_p3, %p3058_p10 }
  0x4d   : > { %3068 = shalt.err (!%p3065_p6)
}
  0x4e   : > { %2556 = dma.hbm_to_vmem [thread:$0]  (!%p3324_p11), %s4456_s2, 4096, %s3332_s20, [#allocation10], %s3205_s21, %s3205_s21, %s3206_s22  }
  0x4f   : > { %s3207_s11 = smov [#allocation12]   ;;  %s3069_s10 = scalar_lea.hbm %s4304_s3, 4096 }
  0x50   : > { %s259_s23 = sshll.u32 %s3207_s11, 4  ;;  %p3070_p2 = scmp.ne.s32.totalorder %s4304_s3, %s3069_s10  ;;  %s260_s23 = int_to_ptr.vmem [resolvable:$true] %s259_s23 }
  0x51   : > { %p3076_p7 = scmp.lt.u32.totalorder %s3069_s10, %s4304_s3 }
  0x52   : > { %p3072_p4 = pnand %p3070_p2, %p3342_p0 }
  0x54   : > { %p3073_p5 = pneg %p3072_p4 }
  0x56   : > { %p3078_p9 = pnand %p3076_p7, %p3073_p5 }
  0x58   : > { %3081 = shalt.err (!%p3078_p9)
}
  0x59   : > { %s3082_s20 = scalar_lea.vmem %s260_s23, 4096  ;;  %p3090_p3 = scmp.lt.s32.totalorder %s260_s23, %s260_s23 }
  0x5a   : > { %p3083_p10 = scmp.ne.s32.totalorder %s260_s23, %s3082_s20  ;;  %p3091_p6 = scmp.lt.s32.totalorder %s3082_s20, %s3082_s20 }
  0x5c   : > { %p3085_p13 = pnand %p3083_p10, %p3342_p0  ;;  %p3092_p8 = por %p3091_p6, %p3090_p3 }
  0x5e   : > { %p3086_p1 = pneg %p3085_p13 }
  0x60   : > { %p3093_p12 = pnand %p3092_p8, %p3086_p1 }
  0x62   : > { %3096 = shalt.err (!%p3093_p12)
}
  0x63   : > { %2559 = dma.hbm_to_vmem [thread:$0]  (!%p3324_p11), %s4304_s3, 4096, %s260_s23, [#allocation13], %s3205_s21, %s3205_s21, %s3206_s22  }
  0x64   : > { %s33_s26 = sadd.s32 1, %s3193_s8  ;;  %s36_s6 = sadd.s32 1, %s3197_s9 }
  0x65   : > { %p34_p8 = scmp.ge.s32.totalorder %s33_s26, 2  ;;  %s282_s11 = sand.u32 1, %s3181_s28  }
  0x66   : > { %s2386_s17 = sshll.u32 %s282_s11, 7  ;;  %s2388_s25 = sshll.u32 %s3197_s9, 2 }
  0x67   : > { %s4655_s26 = smov (%p34_p8, %s33_s26), 0  ;;  %s4657_s6 = smov (!%p34_p8, %s36_s6), %s3197_s9 }
  0x68   : > { %s40_s24 = ssub.s32 %s3193_s8, %s4655_s26  ;;  %p38_p12 = scmp.ge.s32.totalorder %s4657_s6, 2 }
  0x69   : > { %s2535_s10 = sshll.u32 %s3193_s8, 5  ;;  %s286_s15 = scalar_lea.vmem [#allocation7], %s2386_s17 }
  0x6a   : > { %s296_s21 = sshll.u32 %s286_s15, 4  ;;  %s4659_s6 = smov (%p38_p12, %s4657_s6), 0  ;;  %s3425_s21 = int_to_ptr.vmem [resolvable:$true] %s296_s21 }
  0x6b   : > { %s293_s22 = sadd.s32 %s2535_s10, %s2388_s25  ;;  %s41_s23 = ssub.s32 %s3197_s9, %s4659_s6 }
  0x6c   : > { %s2390_s19 = sshll.u32 %s293_s22, 7  ;;  %s42_s16 = sor.u32 %s41_s23, %s40_s24 }
  0x6d   : > { %s3432_s5 = scalar_lea.hbm %s4301_s0, %s2390_s19  ;;  %p43_p11 = scmp.eq.s32.totalorder %s42_s16, 0 }
  0x6e   : > { %s4457_s17 = sadd.s32 1, %s3181_s28  ;;  %s3439_s2 = scalar_lea.sflag [#allocation8], %s282_s11 }
  0x6f   : > { %s3437_s15 = scalar_select %p43_p11, %s3181_s28, %s4457_s17  }
  0x70   : > { %s3097_s25 = scalar_lea.hbm %s3432_s5, 2048  ;;  %p4458_p2 = scmp.ne.s32.totalorder %s4453_s18, 0 }
  0x71   : > { %p3098_p0 = scmp.ne.s32.totalorder %s3432_s5, %s3097_s25  ;;  %s3102_s22 = scalar_lea.hbm %s4301_s0, 8192 }
  0x72   : > { %p3099_p4 = pneg %p4458_p2  ;;  %p3103_p9 = scmp.lt.u32.totalorder %s3432_s5, %s4301_s0 }
  0x73   : > { %p3104_p10 = scmp.lt.u32.totalorder %s3102_s22, %s3097_s25  ;;  %p3106_p1 = scmp.lt.u32.totalorder %s3097_s25, %s3432_s5 }
  0x74   : > { %p3100_p5 = pnand %p3099_p4, %p3098_p0 }
  0x75   : > { %p3105_p13 = por %p3104_p10, %p3103_p9 }
  0x76   : > { %p3101_p7 = pneg %p3100_p5 }
  0x77   : > { %p3107_p3 = por %p3106_p1, %p3105_p13 }
  0x79   : > { %p3108_p6 = pnand %p3107_p3, %p3101_p7 }
  0x7b   : > { %3111 = shalt.err (!%p3108_p6)
}
  0x7c   : > { %s3112_s11 = scalar_lea.vmem %s3425_s21, 2048  ;;  %s3208_s16 = smov [#allocation7]  }
  0x7d   : > { %p3113_p8 = scmp.ne.s32.totalorder %s3425_s21, %s3112_s11  ;;  %s3117_s20 = sshll.u32 %s3208_s16, 4  ;;  %s3118_s20 = int_to_ptr.vmem [resolvable:$false] %s3117_s20 }
  0x7e   : > { %s3119_s1 = scalar_lea.vmem %s3118_s20, 4096  ;;  %p3120_p0 = scmp.lt.s32.totalorder %s3425_s21, %s3118_s20 }
  0x7f   : > { %p3115_p12 = pnand %p3113_p8, %p3099_p4  ;;  %p3121_p5 = scmp.lt.s32.totalorder %s3119_s1, %s3112_s11 }
  0x81   : > { %p3116_p11 = pneg %p3115_p12  ;;  %p3122_p9 = por %p3121_p5, %p3120_p0 }
  0x83   : > { %p3123_p10 = pnand %p3122_p9, %p3116_p11 }
  0x85   : > { %3126 = shalt.err (!%p3123_p10)
}
  0x86   : > { %s3209_s17 = smov 1024   ;;  %s3210_s25 = smov 512  }
  0x87   : > { %s3211_s24 = smov 32   ;;  %p4459_p4 = scmp.ne.s32.totalorder %s4451_s14, 0 }
  0x88   : > { %2563 = dma.hbm_to_vmem [thread:$0]  (!%p4458_p2), %s3432_s5, 2048, %s3425_s21, %s3439_s2, %s3209_s17, %s3210_s25, %s3211_s24  }
  0x89   : > { %308 = sbr.rel (%p4459_p4) target bundleno = 1749 (0x6d5), region = 48 }
  0x90   : > { %s310_s10 = sand.u32 1, %s3177_s27   ;;  %p4460_p7 = scmp.ne.s32.totalorder %s4450_s13, 0 }
  0x91   : > { %s2392_s22 = sshll.u32 %s310_s10, 7  ;;  %s311_s23 = scalar_lea.sflag [#allocation8], %s310_s10 }
  0x92   : > { %s3470_s19 = scalar_lea.vmem [#allocation7], %s2392_s22 }
  0x93   : > { %3160 = dma.done.wait (%p4460_p7), %s311_s23, 2048  }
  0x94   : > { %3162 = vsyncadd (%p4460_p7), %s311_s23, 4294965248  ;;  %p4461_p13 = scmp.ne.s32.totalorder %s4449_s12, 0 }
  0x96   : > { %3164 = dma.done.wait (%p4461_p13), [#allocation10], 8192  }
  0x97   : > { %3166 = vsyncadd (%p4461_p13), [#allocation10], 4294959104 }
  0x98   : > { %3168 = dma.done.wait (%p4461_p13), [#allocation13], 4096  }
  0x99   : > { %3170 = vsyncadd (%p4461_p13), [#allocation13], 4294963200  ;;  %p357_p2 = scmp.lt.s32.totalorder %s3189_s30, 1  ;;  %p2397_p1 = scmp.ne.s32.totalorder %s3185_s29, 0 }
  0x9a   : > { %v3212_v1 = vmov (!%p2397_p1), 0.0  }
  0x9b   : > { %s4661_s30 = smov (!%p357_p2, %s3189_s30), 1  ;;  %365 = sbr.rel (%p2397_p1) target bundleno = 162 (0xa2), region = 68 }
  0x9c   : > { %s2396_s2 = sshll.u32 %s4661_s30, 3  ;;  %366 = vst [vmem:[#allocation2] sm:$0xff] (!%p2397_p1), %v3212_v1  ;;  %367 = vst [vmem:[#allocation3] sm:$0xff] (!%p2397_p1), %v3212_v1 }
  0x9d   : > { %s3489_s18 = scalar_lea.vmem %s4308_s7, %s2396_s2  ;;  %368 = vst [vmem:[#allocation4] sm:$0xff] (!%p2397_p1), %v3212_v1  ;;  %369 = vst [vmem:[#allocation5] sm:$0xff] (!%p2397_p1), %v3212_v1 }
  0xa2 PF: > { %v3492_v2 = vld [vmem:[#allocation9 + $0x4] ss:$16 sps:$4 sm:$0xff]   ;;  %v3494_v3 = vld [vmem:[#allocation9] ss:$16 sps:$4 sm:$0xff]   ;;  %v4315_v4 = vmov 0   ;;  %s3821_s30 = sshll.u32 %s3185_s29, 2 }
  0xa3   : > { %690 = vmatprep.mubr.bf16.mxu0 %v4315_v4  ;;  %731 = vmatprep.mubr.bf16.mxu1 %v4315_v4  ;;  %v3499_v5 = vld [vmem:[#allocation9 + $0x24] ss:$16 sps:$4 sm:$0xff]   ;;  %v3502_v6 = vld [vmem:[#allocation9 + $0x20] ss:$16 sps:$4 sm:$0xff]   ;;  %v3507_v8 = vld [vmem:[#allocation9 + $0xc] ss:$16 sps:$4 sm:$0xff]  }
  0xa4   : > { %658 = vmatprep.subr.bf16.mxu0 %v3492_v2  ;;  %v3505_v7 = vld [vmem:[#allocation9 + $0x44] ss:$16 sps:$4 sm:$0xff]   ;;  %v3509_v9 = vld [vmem:[#allocation9 + $0x8] ss:$16 sps:$4 sm:$0xff]   ;;  %v3512_v10 = vld [vmem:[#allocation9 + $0x40] ss:$16 sps:$4 sm:$0xff]   ;;  %699 = vmatprep.subr.bf16.mxu1 %v3507_v8 }
  0xa5   : > { %659 = vmatpush1.bf16.msra.mxu0 %v3494_v3  ;;  %v3516_v11 = vld [vmem:[#allocation9 + $0x64] ss:$16 sps:$4 sm:$0xff]   ;;  %700 = vmatpush1.bf16.msra.mxu1 %v3509_v9  ;;  %v3519_v12 = vld [vmem:[#allocation9 + $0x2c] ss:$16 sps:$4 sm:$0xff]   ;;  %v3521_v13 = vld [vmem:[#allocation9 + $0x28] ss:$16 sps:$4 sm:$0xff]  }
  0xa6   : > { %660 = vmatprep.subr.bf16.mxu0 %v3499_v5  ;;  %701 = vmatprep.subr.bf16.mxu1 %v3519_v12  ;;  %v3525_v14 = vld [vmem:[#allocation9 + $0x60] ss:$16 sps:$4 sm:$0xff]   ;;  %v3527_v15 = vld [vmem:[#allocation9 + $0x84] ss:$16 sps:$4 sm:$0xff]   ;;  %v3529_v16 = vld [vmem:[#allocation9 + $0x4c] ss:$16 sps:$4 sm:$0xff]  }
  0xa7   : > { %v3533_v17 = vld [vmem:[#allocation9 + $0x48] ss:$16 sps:$4 sm:$0xff]   ;;  %v3536_v18 = vld [vmem:[#allocation9 + $0x6c] ss:$16 sps:$4 sm:$0xff]   ;;  %v3539_v19 = vld [vmem:[#allocation9 + $0x80] ss:$16 sps:$4 sm:$0xff]  }
  0xa8   : > { %v3542_v20 = vld [vmem:[#allocation9 + $0xa4] ss:$16 sps:$4 sm:$0xff]   ;;  %v3545_v21 = vld [vmem:[#allocation9 + $0x68] ss:$16 sps:$4 sm:$0xff]   ;;  %v3548_v22 = vld [vmem:[#allocation9 + $0x8c] ss:$16 sps:$4 sm:$0xff]  }
  0xa9   : > { %661 = vmatpush1.bf16.msra.mxu0 %v3502_v6  ;;  %702 = vmatpush1.bf16.msra.mxu1 %v3521_v13  ;;  %v3550_v23 = vld [vmem:[#allocation9 + $0xa0] ss:$16 sps:$4 sm:$0xff]   ;;  %v3553_v24 = vld [vmem:[#allocation9 + $0xc4] ss:$16 sps:$4 sm:$0xff]   ;;  %v3557_v25 = vld [vmem:[#allocation9 + $0x88] ss:$16 sps:$4 sm:$0xff]  }
  0xaa   : > { %662 = vmatprep.subr.bf16.mxu0 %v3505_v7  ;;  %703 = vmatprep.subr.bf16.mxu1 %v3529_v16  ;;  %v3560_v26 = vld [vmem:[#allocation9 + $0xac] ss:$16 sps:$4 sm:$0xff]   ;;  %v3562_v27 = vld [vmem:[#allocation9 + $0xc0] ss:$16 sps:$4 sm:$0xff]   ;;  %v3565_v28 = vld [vmem:[#allocation9 + $0xe4] ss:$16 sps:$4 sm:$0xff]  }
  0xab   : > { %v3569_v29 = vld [vmem:[#allocation9 + $0xa8] ss:$16 sps:$4 sm:$0xff]   ;;  %v3572_v30 = vld [vmem:[#allocation9 + $0xcc] ss:$16 sps:$4 sm:$0xff]   ;;  %v3574_v31 = vld [vmem:[#allocation9 + $0xe0] ss:$16 sps:$4 sm:$0xff]  }
  0xac   : > { %v3576_v32 = vld [vmem:[#allocation2] sm:$0xff]  ;;  %v3579_v33 = vld [vmem:[#allocation9 + $0xc8] ss:$16 sps:$4 sm:$0xff]   ;;  %p1282_p3 = scmp.lt.s32.totalorder %s3821_s30, 7  ;;  %s1600_s5 = sadd.s32 1, %s3821_s30  ;;  %vm2269_vm4 = vcmask 7168  }
  0xad   : > { %663 = vmatpush1.bf16.msra.mxu0 %v3512_v10  ;;  %704 = vmatpush1.bf16.msra.mxu1 %v3533_v17  ;;  %v3583_v34 = vld [vmem:[#allocation12 + $0x4] ss:$16 sps:$4 sm:$0xff]   ;;  %v3586_v35 = vld [vmem:[#allocation9 + $0xec] ss:$16 sps:$4 sm:$0xff]   ;;  %v497_v36 = vpack.c.bf16 %v3576_v32, %v3576_v32  ;;  %v3590_v37 = vld [vmem:[#allocation9 + $0xe8] ss:$16 sps:$4 sm:$0xff]  }
  0xae   : > { %664 = vmatprep.subr.bf16.mxu0 %v3516_v11  ;;  %705 = vmatprep.subr.bf16.mxu1 %v3536_v18  ;;  %v3593_v38 = vld [vmem:[#allocation12] ss:$16 sps:$4 sm:$0xff]   ;;  %v3597_v39 = vld [vmem:[#allocation12 + $0x24] ss:$16 sps:$4 sm:$0xff]   ;;  %v3600_v40 = vld [vmem:[#allocation12 + $0xc] ss:$16 sps:$4 sm:$0xff]  }
  0xaf   : > { %v3602_v41 = vld [vmem:[#allocation12 + $0x20] ss:$16 sps:$4 sm:$0xff]   ;;  %v3604_v42 = vld [vmem:[#allocation12 + $0x8] ss:$16 sps:$4 sm:$0xff]   ;;  %v3606_v43 = vld [vmem:[#allocation12 + $0x44] ss:$16 sps:$4 sm:$0xff]  }
  0xb0   : > { %v3609_v44 = vld [vmem:[#allocation12 + $0x2c] ss:$16 sps:$4 sm:$0xff]   ;;  %v3615_v45 = vld [vmem:[#allocation12 + $0x40] ss:$16 sps:$4 sm:$0xff]   ;;  %v3617_v46 = vld [vmem:[#allocation12 + $0x28] ss:$16 sps:$4 sm:$0xff]  }
  0xb1   : > { %665 = vmatpush1.bf16.msra.mxu0 %v3525_v14  ;;  %706 = vmatpush1.bf16.msra.mxu1 %v3545_v21  ;;  %v3619_v47 = vld [vmem:[#allocation12 + $0x64] ss:$16 sps:$4 sm:$0xff]   ;;  %v3622_v48 = vld [vmem:[#allocation12 + $0x4c] ss:$16 sps:$4 sm:$0xff]   ;;  %v3627_v49 = vld [vmem:[#allocation12 + $0x60] ss:$16 sps:$4 sm:$0xff]  }
  0xb2   : > { %666 = vmatprep.subr.bf16.mxu0 %v3527_v15  ;;  %707 = vmatprep.subr.bf16.mxu1 %v3548_v22  ;;  %4462 = vst [vmem:[#allocation18_spill] sm:$0xff] %v3619_v47  ;;  %4463 = vst [vmem:[#allocation19_spill] sm:$0xff] %v3627_v49  ;;  %v3630_v50 = vld [vmem:[#allocation12 + $0x48] ss:$16 sps:$4 sm:$0xff]   ;;  %v3632_v51 = vld [vmem:[#allocation12 + $0x84] ss:$16 sps:$4 sm:$0xff]  }
  0xb3   : > { %4464 = vst [vmem:[#allocation20_spill] sm:$0xff] %v3632_v51  ;;  %v3635_v52 = vld [vmem:[#allocation12 + $0x6c] ss:$16 sps:$4 sm:$0xff]   ;;  %v3640_v53 = vld [vmem:[#allocation12 + $0x68] ss:$16 sps:$4 sm:$0xff]   ;;  %p3924_p6 = scmp.lt.s32.totalorder %s1600_s5, 7 }
  0xb4   : > { %4465 = vst [vmem:[#allocation21_spill] sm:$0xff] %v3635_v52  ;;  %4466 = vst [vmem:[#allocation22_spill] sm:$0xff] %v3640_v53  ;;  %v3647_v54 = vld [vmem:[#allocation12 + $0x80] ss:$16 sps:$4 sm:$0xff]   ;;  %v3649_v55 = vld [vmem:[#allocation12 + $0x8c] ss:$16 sps:$4 sm:$0xff]  }
  0xb5   : > { %667 = vmatpush1.bf16.msra.mxu0 %v3539_v19  ;;  %708 = vmatpush1.bf16.msra.mxu1 %v3557_v25  ;;  %4467 = vst [vmem:[#allocation23_spill] sm:$0xff] %v3647_v54  ;;  %4468 = vst [vmem:[#allocation24_spill] sm:$0xff] %v3649_v55  ;;  %v3651_v56 = vld [vmem:[#allocation12 + $0x88] ss:$16 sps:$4 sm:$0xff]   ;;  %v3656_v57 = vld [vmem:[#allocation12 + $0xa4] ss:$16 sps:$4 sm:$0xff]  }
  0xb6   : > { %668 = vmatprep.subr.bf16.mxu0 %v3542_v20  ;;  %709 = vmatprep.subr.bf16.mxu1 %v3560_v26  ;;  %4469 = vst [vmem:[#allocation25_spill] sm:$0xff] %v3651_v56  ;;  %4470 = vst [vmem:[#allocation26_spill] sm:$0xff] %v3656_v57  ;;  %v3658_v58 = vld [vmem:[#allocation12 + $0xa0] ss:$16 sps:$4 sm:$0xff]   ;;  %v3660_v59 = vld [vmem:[#allocation12 + $0xac] ss:$16 sps:$4 sm:$0xff]  }
  0xb7   : > { %4471 = vst [vmem:[#allocation27_spill] sm:$0xff] %v3658_v58  ;;  %4472 = vst [vmem:[#allocation28_spill] sm:$0xff] %v3660_v59  ;;  %v3663_v60 = vld [vmem:[#allocation12 + $0xa8] ss:$16 sps:$4 sm:$0xff]   ;;  %v3668_v61 = vld [vmem:[#allocation12 + $0xc4] ss:$16 sps:$4 sm:$0xff]  }
  0xb8   : > { %4473 = vst [vmem:[#allocation29_spill] sm:$0xff] %v3663_v60  ;;  %4474 = vst [vmem:[#allocation30_spill] sm:$0xff] %v3668_v61  ;;  %v3670_v62 = vld [vmem:[#allocation12 + $0xc0] ss:$16 sps:$4 sm:$0xff]   ;;  %v3672_v63 = vld [vmem:[#allocation12 + $0xcc] ss:$16 sps:$4 sm:$0xff]  }
  0xb9   : > { %669 = vmatpush1.bf16.msra.mxu0 %v3550_v23  ;;  %710 = vmatpush1.bf16.msra.mxu1 %v3569_v29  ;;  %4475 = vst [vmem:[#allocation31_spill] sm:$0xff] %v3670_v62  ;;  %4476 = vst [vmem:[#allocation32_spill] sm:$0xff] %v3672_v63  ;;  %v3675_v0 = vld [vmem:[#allocation12 + $0xc8] ss:$16 sps:$4 sm:$0xff]   ;;  %v3680_v1 = vld [vmem:[#allocation12 + $0xe4] ss:$16 sps:$4 sm:$0xff]  }
  0xba   : > { %670 = vmatprep.subr.bf16.mxu0 %v3553_v24  ;;  %711 = vmatprep.subr.bf16.mxu1 %v3572_v30  ;;  %4477 = vst [vmem:[#allocation33_spill] sm:$0xff] %v3675_v0  ;;  %4478 = vst [vmem:[#allocation34_spill] sm:$0xff] %v3680_v1  ;;  %s1283_s29 = scalar_select %p1282_p3, 1, 0 }
  0xbb   : > { %s1602_s16 = scalar_select %p3924_p6, 1, 0 }
  0xbc   : > { %s1919_s20 = sadd.s32 2, %s3821_s30  ;;  %s2238_s25 = sadd.s32 3, %s3821_s30 }
  0xbd   : > { %671 = vmatpush1.bf16.msra.mxu0 %v3562_v27  ;;  %712 = vmatpush1.bf16.msra.mxu1 %v3579_v33  ;;  %p4137_p8 = scmp.lt.s32.totalorder %s1919_s20, 7  ;;  %p4244_p12 = scmp.lt.s32.totalorder %s2238_s25, 7 }
  0xbe   : > { %672 = vmatprep.subr.bf16.mxu0 %v3565_v28  ;;  %713 = vmatprep.subr.bf16.mxu1 %v3586_v35 }
  0xbf   : > { %s1921_s17 = scalar_select %p4137_p8, 1, 0 }
  0xc0   : > { %s2240_s10 = scalar_select %p4244_p12, 1, 0 }
  0xc1   : > { %673 = vmatpush1.bf16.msra.mxu0 %v3574_v31  ;;  %714 = vmatpush1.bf16.msra.mxu1 %v3590_v37 }
  0xc2   : > { %930 = vmatprep.subr.bf16.mxu0 %v3583_v34  ;;  %971 = vmatprep.subr.bf16.mxu1 %v3600_v40 }
  0xc4   : > { %691 = vmatmul.mubr.bf16.vlgmr.msra.gmra.mrb[0].mxu0 %v497_v36  ;;  %732 = vmatmul.mubr.bf16.vlgmr.msra.gmra.mrb[0].mxu1 %v497_v36  ;;  %v3682_v36 = vld [vmem:[#allocation12 + $0xe0] ss:$16 sps:$4 sm:$0xff]  }
  0xc5   : > { %931 = vmatpush1.bf16.msra.mxu0 %v3593_v38  ;;  %962 = vmatprep.mubr.bf16.mxu0 %v4315_v4  ;;  %4479 = vst [vmem:[#allocation35_spill] sm:$0xff] %v3682_v36 }
  0xc6   : > { %932 = vmatprep.subr.bf16.mxu0 %v3597_v39  ;;  %972 = vmatpush1.bf16.msra.mxu1 %v3604_v42 }
  0xc7   : > { %973 = vmatprep.subr.bf16.mxu1 %v3609_v44  ;;  %1003 = vmatprep.mubr.bf16.mxu1 %v4315_v4  ;;  %v3684_v4 = vld [vmem:[#allocation12 + $0xec] ss:$16 sps:$4 sm:$0xff]  }
  0xc8   : > { %4480 = vst [vmem:[#allocation36_spill] sm:$0xff] %v3684_v4 }
  0xc9   : > { %933 = vmatpush1.bf16.msra.mxu0 %v3602_v41 }
  0xca   : > { %934 = vmatprep.subr.bf16.mxu0 %v3606_v43  ;;  %974 = vmatpush1.bf16.msra.mxu1 %v3617_v46 }
  0xcb   : > { %975 = vmatprep.subr.bf16.mxu1 %v3622_v48 }
  0xcd   : > { %935 = vmatpush1.bf16.msra.mxu0 %v3615_v45 }
  0xce   : > { %936 = vmatprep.subr.bf16.mxu0 %v3619_v47  ;;  %976 = vmatpush1.bf16.msra.mxu1 %v3630_v50 }
  0xcf   : > { %977 = vmatprep.subr.bf16.mxu1 %v3635_v52 }
  0xd1   : > { %937 = vmatpush1.bf16.msra.mxu0 %v3627_v49 }
  0xd2   : > { %938 = vmatprep.subr.bf16.mxu0 %v3632_v51  ;;  %978 = vmatpush1.bf16.msra.mxu1 %v3640_v53 }
  0xd3   : > { %979 = vmatprep.subr.bf16.mxu1 %v3649_v55 }
  0xd5   : > { %939 = vmatpush1.bf16.msra.mxu0 %v3647_v54 }
  0xd6   : > { %980 = vmatpush1.bf16.msra.mxu1 %v3651_v56  ;;  %940 = vmatprep.subr.bf16.mxu0 %v3656_v57  ;;  %v3768_v57 = vld [vmem:[#allocation11 + $0xcc] ss:$16 sps:$4 sm:$0xff]  }
  0xd7   : > { %981 = vmatprep.subr.bf16.mxu1 %v3660_v59  ;;  %v3715_v59 = vld [vmem:[#allocation11 + $0x28] ss:$16 sps:$4 sm:$0xff]   ;;  %4509 = vst [vmem:[#allocation64_spill] sm:$0xff] %v3768_v57 }
  0xd8   : > { %4491 = vst [vmem:[#allocation46_spill] sm:$0xff] %v3715_v59 }
  0xd9   : > { %941 = vmatpush1.bf16.msra.mxu0 %v3658_v58  ;;  %v3700_v58 = vld [vmem:[#allocation11] ss:$16 sps:$4 sm:$0xff]  }
  0xda   : > { %982 = vmatpush1.bf16.msra.mxu1 %v3663_v60  ;;  %942 = vmatprep.subr.bf16.mxu0 %v3668_v61  ;;  %v3687_v60 = vld [vmem:[#allocation12 + $0xe8] ss:$16 sps:$4 sm:$0xff]   ;;  %v3691_v61 = vld [vmem:[#allocation4] sm:$0xff]  ;;  %4485 = vst [vmem:[#allocation41_spill] sm:$0xff] %v3700_v58 }
  0xdb   : > { %983 = vmatprep.subr.bf16.mxu1 %v3672_v63  ;;  %4481 = vst [vmem:[#allocation37_spill] sm:$0xff] %v3687_v60  ;;  %4482 = vst [vmem:[#allocation38_spill] sm:$0xff] %v3691_v61  ;;  %v3698_v63 = vld [vmem:[#allocation11 + $0xc] ss:$16 sps:$4 sm:$0xff]  }
  0xdc   : > { %4484 = vst [vmem:[#allocation40_spill] sm:$0xff] %v3698_v63 }
  0xdd   : > { %943 = vmatpush1.bf16.msra.mxu0 %v3670_v62  ;;  %v3696_v62 = vld [vmem:[#allocation11 + $0x4] ss:$16 sps:$4 sm:$0xff]  }
  0xde   : > { %984 = vmatpush1.bf16.msra.mxu1 %v3675_v0  ;;  %944 = vmatprep.subr.bf16.mxu0 %v3680_v1  ;;  %v769_v0 = vpack.c.bf16 %v3691_v61, %v3691_v61  ;;  %4483 = vst [vmem:[#allocation39_spill] sm:$0xff] %v3696_v62  ;;  %v3710_v61 = vld [vmem:[#allocation11 + $0x2c] ss:$16 sps:$4 sm:$0xff]   ;;  %v3713_v1 = vld [vmem:[#allocation11 + $0x20] ss:$16 sps:$4 sm:$0xff]  }
  0xdf   : > { %985 = vmatprep.subr.bf16.mxu1 %v3684_v4  ;;  %4488 = vst [vmem:[#allocation44_spill] sm:$0xff] %v3710_v61  ;;  %v4489_v4 = vmov 0   ;;  %4490 = vst [vmem:[#allocation45_spill] sm:$0xff] %v3713_v1 }
  0xe1   : > { %945 = vmatpush1.bf16.msra.mxu0 %v3682_v36  ;;  %v3704_v36 = vld [vmem:[#allocation11 + $0x8] ss:$16 sps:$4 sm:$0xff]  }
  0xe2   : > { %986 = vmatpush1.bf16.msra.mxu1 %v3687_v60  ;;  %1172 = vmatprep.subr.bf16.mxu0 %v3696_v62  ;;  %4486 = vst [vmem:[#allocation42_spill] sm:$0xff] %v3704_v36  ;;  %v3708_v60 = vld [vmem:[#allocation11 + $0x24] ss:$16 sps:$4 sm:$0xff]  }
  0xe3   : > { %1213 = vmatprep.subr.bf16.mxu1 %v3698_v63  ;;  %4487 = vst [vmem:[#allocation43_spill] sm:$0xff] %v3708_v60  ;;  %v3728_v63 = vld [vmem:[#allocation11 + $0x48] ss:$16 sps:$4 sm:$0xff]   ;;  %v3766_v62 = vld [vmem:[#allocation11 + $0xc4] ss:$16 sps:$4 sm:$0xff]  }
  0xe4   : > { %963 = vmatmul.mubr.bf16.vlgmr.msra.gmra.mrb[4].mxu0 %v769_v0  ;;  %4495 = vst [vmem:[#allocation50_spill] sm:$0xff] %v3728_v63  ;;  %4508 = vst [vmem:[#allocation63_spill] sm:$0xff] %v3766_v62 }
  0xe5   : > { %1004 = vmatmul.mubr.bf16.vlgmr.msra.gmra.mrb[4].mxu1 %v769_v0  ;;  %1173 = vmatpush1.bf16.msra.mxu0 %v3700_v58  ;;  %v3722_v0 = vld [vmem:[#allocation11 + $0x44] ss:$16 sps:$4 sm:$0xff]   ;;  %v3726_v58 = vld [vmem:[#allocation11 + $0x40] ss:$16 sps:$4 sm:$0xff]  }
  0xe6   : > { %1214 = vmatpush1.bf16.msra.mxu1 %v3704_v36  ;;  %1204 = vmatprep.mubr.bf16.mxu0 %v4489_v4  ;;  %4492 = vst [vmem:[#allocation47_spill] sm:$0xff] %v3722_v0  ;;  %v3724_v36 = vld [vmem:[#allocation11 + $0x4c] ss:$16 sps:$4 sm:$0xff]   ;;  %4494 = vst [vmem:[#allocation49_spill] sm:$0xff] %v3726_v58 }
  0xe7   : > { %1245 = vmatprep.mubr.bf16.mxu1 %v4489_v4  ;;  %1174 = vmatprep.subr.bf16.mxu0 %v3708_v60  ;;  %4493 = vst [vmem:[#allocation48_spill] sm:$0xff] %v3724_v36  ;;  %v3740_v60 = vld [vmem:[#allocation11 + $0x68] ss:$16 sps:$4 sm:$0xff]  }
  0xe8   : > { %1215 = vmatprep.subr.bf16.mxu1 %v3710_v61  ;;  %v3734_v61 = vld [vmem:[#allocation11 + $0x64] ss:$16 sps:$4 sm:$0xff]   ;;  %4499 = vst [vmem:[#allocation54_spill] sm:$0xff] %v3740_v60 }
  0xe9   : > { %1175 = vmatpush1.bf16.msra.mxu0 %v3713_v1  ;;  %4496 = vst [vmem:[#allocation51_spill] sm:$0xff] %v3734_v61  ;;  %v3736_v1 = vld [vmem:[#allocation11 + $0x6c] ss:$16 sps:$4 sm:$0xff]  }
  0xea   : > { %1216 = vmatpush1.bf16.msra.mxu1 %v3715_v59  ;;  %1176 = vmatprep.subr.bf16.mxu0 %v3722_v0  ;;  %4497 = vst [vmem:[#allocation52_spill] sm:$0xff] %v3736_v1  ;;  %v3738_v59 = vld [vmem:[#allocation11 + $0x60] ss:$16 sps:$4 sm:$0xff]   ;;  %v3752_v0 = vld [vmem:[#allocation11 + $0x88] ss:$16 sps:$4 sm:$0xff]  }
  0xeb   : > { %1217 = vmatprep.subr.bf16.mxu1 %v3724_v36  ;;  %4498 = vst [vmem:[#allocation53_spill] sm:$0xff] %v3738_v59  ;;  %v3746_v36 = vld [vmem:[#allocation11 + $0x84] ss:$16 sps:$4 sm:$0xff]   ;;  %4503 = vst [vmem:[#allocation58_spill] sm:$0xff] %v3752_v0 }
  0xec   : > { %4500 = vst [vmem:[#allocation55_spill] sm:$0xff] %v3746_v36 }
  0xed   : > { %1177 = vmatpush1.bf16.msra.mxu0 %v3726_v58  ;;  %v3748_v58 = vld [vmem:[#allocation11 + $0x8c] ss:$16 sps:$4 sm:$0xff]  }
  0xee   : > { %1218 = vmatpush1.bf16.msra.mxu1 %v3728_v63  ;;  %1178 = vmatprep.subr.bf16.mxu0 %v3734_v61  ;;  %4501 = vst [vmem:[#allocation56_spill] sm:$0xff] %v3748_v58  ;;  %v3750_v63 = vld [vmem:[#allocation11 + $0x80] ss:$16 sps:$4 sm:$0xff]   ;;  %v3764_v61 = vld [vmem:[#allocation11 + $0xa8] ss:$16 sps:$4 sm:$0xff]  }
  0xef   : > { %1219 = vmatprep.subr.bf16.mxu1 %v3736_v1  ;;  %4502 = vst [vmem:[#allocation57_spill] sm:$0xff] %v3750_v63  ;;  %v3758_v1 = vld [vmem:[#allocation11 + $0xa4] ss:$16 sps:$4 sm:$0xff]   ;;  %4507 = vst [vmem:[#allocation62_spill] sm:$0xff] %v3764_v61 }
  0xf0   : > { %4504 = vst [vmem:[#allocation59_spill] sm:$0xff] %v3758_v1 }
  0xf1   : > { %1179 = vmatpush1.bf16.msra.mxu0 %v3738_v59  ;;  %v3760_v59 = vld [vmem:[#allocation11 + $0xac] ss:$16 sps:$4 sm:$0xff]  }
  0xf2   : > { %1220 = vmatpush1.bf16.msra.mxu1 %v3740_v60  ;;  %1180 = vmatprep.subr.bf16.mxu0 %v3746_v36  ;;  %4505 = vst [vmem:[#allocation60_spill] sm:$0xff] %v3760_v59  ;;  %v3762_v60 = vld [vmem:[#allocation11 + $0xa0] ss:$16 sps:$4 sm:$0xff]   ;;  %v3782_v36 = vld [vmem:[#allocation11 + $0xec] ss:$16 sps:$4 sm:$0xff]  }
  0xf3   : > { %1221 = vmatprep.subr.bf16.mxu1 %v3748_v58  ;;  %4506 = vst [vmem:[#allocation61_spill] sm:$0xff] %v3762_v60  ;;  %v3779_v58 = vld [vmem:[#allocation11 + $0xe4] ss:$16 sps:$4 sm:$0xff]   ;;  %4513 = vst [vmem:[#allocation68_spill] sm:$0xff] %v3782_v36 }
  0xf4   : > { %4512 = vst [vmem:[#allocation67_spill] sm:$0xff] %v3779_v58 }
  0xf5   : > { %1181 = vmatpush1.bf16.msra.mxu0 %v3750_v63  ;;  %v3773_v63 = vld [vmem:[#allocation11 + $0xc0] ss:$16 sps:$4 sm:$0xff]  }
  0xf6   : > { %1222 = vmatpush1.bf16.msra.mxu1 %v3752_v0  ;;  %1182 = vmatprep.subr.bf16.mxu0 %v3758_v1  ;;  %4510 = vst [vmem:[#allocation65_spill] sm:$0xff] %v3773_v63  ;;  %v3777_v0 = vld [vmem:[#allocation11 + $0xc8] ss:$16 sps:$4 sm:$0xff]  }
  0xf7   : > { %1223 = vmatprep.subr.bf16.mxu1 %v3760_v59  ;;  %4511 = vst [vmem:[#allocation66_spill] sm:$0xff] %v3777_v0  ;;  %v3785_v59 = vld [vmem:[#allocation11 + $0xe0] ss:$16 sps:$4 sm:$0xff]  }
  0xf8   : > { %4514 = vst [vmem:[#allocation69_spill] sm:$0xff] %v3785_v59 }
  0xf9   : > { %1183 = vmatpush1.bf16.msra.mxu0 %v3762_v60 }
  0xfa   : > { %1224 = vmatpush1.bf16.msra.mxu1 %v3764_v61  ;;  %1184 = vmatprep.subr.bf16.mxu0 %v3766_v62  ;;  %v3789_v61 = vld [vmem:[#allocation11 + $0xe8] ss:$16 sps:$4 sm:$0xff]  }
  0xfb   : > { %1225 = vmatprep.subr.bf16.mxu1 %v3768_v57  ;;  %4515 = vst [vmem:[#allocation70_spill] sm:$0xff] %v3789_v61  ;;  %v494_v57 = vld [vmem:[%s3470_s19 + $0x8] sm:$0xff] }
  0xfd   : > { %1185 = vmatpush1.bf16.msra.mxu0 %v3773_v63  ;;  %v493_v63 = vld [vmem:[%s3470_s19] sm:$0xff] }
  0xfe   : > { %1226 = vmatpush1.bf16.msra.mxu1 %v3777_v0  ;;  %1186 = vmatprep.subr.bf16.mxu0 %v3779_v58 }
  0xff   : > { %1227 = vmatprep.subr.bf16.mxu1 %v3782_v36  ;;  %v495_v36 = vld [vmem:[%s3470_s19 + $0x10] sm:$0xff] }
 0x101   : > { %1187 = vmatpush1.bf16.msra.mxu0 %v3785_v59 }
 0x102   : > { %1228 = vmatpush1.bf16.msra.mxu1 %v3789_v61  ;;  %1296 = vmatprep.subr.bf16.mxu0 %v3492_v2 }
 0x103   : > { %1337 = vmatprep.subr.bf16.mxu1 %v3507_v8  ;;  %v496_v8 = vld [vmem:[%s3470_s19 + $0x18] sm:$0xff] }
 0x197   : > { %v692_v62 = vpop.f32.mrb[0].mxu0  ;;  %v733_v59 = vpop.f32.mrb[0].mxu1 }
 0x198   : > { %v740_v0 = vadd.f32 %v692_v62, %v493_v63  ;;  %v694_v60 = vpop.f32.mrb[1].mxu0  ;;  %v735_v61 = vpop.f32.mrb[1].mxu1  ;;  %v742_v51 = vadd.f32 %v733_v59, %v495_v36  ;;  %v4534_v36 = vld [vmem:[#allocation34_spill] sm:$0xff] }
 0x199   : > { %v741_v58 = vadd.f32 %v694_v60, %v494_v57  ;;  %v696_v1 = vpop.f32.mrb[2].mxu0  ;;  %v737_v2 = vpop.f32.mrb[2].mxu1  ;;  %v743_v52 = vadd.f32 %v735_v61, %v496_v8  ;;  %v4537_v8 = vld [vmem:[#allocation37_spill] sm:$0xff] }
 0x19a   : > { %v2431_v56 = vmul.f32 -1.442695, %v740_v0  ;;  %v697_v54 = vpop.f32.mrb[3].mxu0  ;;  %v738_v53 = vpop.f32.mrb[3].mxu1  ;;  %v2433_v49 = vmul.f32 -1.442695, %v742_v51 }
 0x19b   : > { %v2432_v55 = vmul.f32 -1.442695, %v741_v58  ;;  %v4535_v0 = vld [vmem:[#allocation36_spill] sm:$0xff]  ;;  %v4536_v2 = vld [vmem:[#allocation35_spill] sm:$0xff] }
 0x19c   : > { %2789 = vpow2.f32 %v2431_v56  ;;  %v3800_v56 = vld [vmem:[#allocation3] sm:$0xff] }
 0x19d   : > { %2791 = vpow2.f32 %v2432_v55 }
 0x19e   : > { %2793 = vpow2.f32 %v2433_v49 }
 0x19f   : > { %2795 = vtanh.f32 %v743_v52 }
 0x1a6   : > { %v2790_v47 = vpop.eup %2789 }
 0x1a7   : > { %v2792_v62 = vpop.eup %2791  ;;  %v753_v63 = vadd.f32 1.0, %v2790_v47 }
 0x1a8   : > { %v754_v57 = vadd.f32 1.0, %v2792_v62  ;;  %v2794_v54 = vpop.eup %2793  ;;  %v4538_v62 = vld [vmem:[#allocation39_spill] sm:$0xff] }
 0x1a9   : > { %2797 = vrcp.f32 %v753_v63  ;;  %v2796_v58 = vpop.eup %2795  ;;  %v755_v60 = vadd.f32 1.0, %v2794_v54  ;;  %v4539_v63 = vld [vmem:[#allocation40_spill] sm:$0xff] }
 0x1aa   : > { %2799 = vrcp.f32 %v754_v57  ;;  %v468_v57 = vlaneseq }
 0x1ab   : > { %2801 = vrcp.f32 %v755_v60 }
 0x1ac   : > { %v469_v54 = vshrl.u32 %v468_v57, 7 }
 0x1ae   : > { %v474_v60 = vsub.s32 1, %v469_v54  ;;  %v478_v57 = vsub.s32 2, %v469_v54 }
 0x1b3   : > { %v2798_v55 = vpop.eup %2797 }
 0x1b4   : > { %v2800_v59 = vpop.eup %2799  ;;  %v764_v1 = vmul.f32 %v2798_v55, %v2796_v58  ;;  %v470_v58 = vsub.s32 0, %v469_v54  ;;  %v466_v55 = vld [vmem:[%s4305_s4] sm:$0xf] }
 0x1b5   : > { %v763_v53 = vmul.f32 %v2800_v59, %v3800_v56  ;;  %v2802_v47 = vpop.eup %2801 }
 0x1b6   : > { %v3892_v59 = vrot.slane %v466_v55, %v470_v58 }
 0x1b7   : > { %v3803_v51 = vadd.f32 %v764_v1, %v763_v53 }
 0x1b9   : > { %2803 = vtanh.f32 %v3803_v51 }
 0x1c3   : > { %v2804_v49 = vpop.eup %2803 }
 0x1c4   : > { %v767_v52 = vmul.f32 %v2804_v49, %v2802_v47  ;;  %v3894_v47 = vrot.slane %v466_v55, %v474_v60  ;;  %v3898_v60 = vrot.slane %v466_v55, %v478_v57 }
 0x1c6   : > { %v768_v61 = vpack.c.bf16 %v767_v52, %v767_v52 }
 0x1c8   : > { %1205 = vmatmul.mubr.bf16.vlgmr.msra.gmra.mrb[8].mxu0 %v768_v61  ;;  %1246 = vmatmul.mubr.bf16.vlgmr.msra.gmra.mrb[8].mxu1 %v768_v61 }
 0x1c9   : > { %1297 = vmatpush1.bf16.msra.mxu0 %v3494_v3  ;;  %1338 = vmatpush1.bf16.msra.mxu1 %v3509_v9  ;;  %v1284_v3 = vstv %s1283_s29  ;;  %v4518_v9 = vld [vmem:[#allocation18_spill] sm:$0xff] }
 0x1ca   : > { %1298 = vmatprep.subr.bf16.mxu0 %v3499_v5  ;;  %1339 = vmatprep.subr.bf16.mxu1 %v3519_v12  ;;  %vm3840_vm0 = vcmp.eq.s32.totalorder %v1284_v3, 1  ;;  %v4521_v12 = vld [vmem:[#allocation22_spill] sm:$0xff] }
 0x1cb   : > { %1328 = vmatprep.mubr.bf16.mxu0 %v4489_v4  ;;  %1369 = vmatprep.mubr.bf16.mxu1 %v4489_v4 }
 0x1cd   : > { %1299 = vmatpush1.bf16.msra.mxu0 %v3502_v6  ;;  %1340 = vmatpush1.bf16.msra.mxu1 %v3521_v13  ;;  %v3847_v6 = vsel %vm3840_vm0, %v767_v52, %v3576_v32  ;;  %v4522_v13 = vld [vmem:[#allocation20_spill] sm:$0xff]  ;;  %v4533_v32 = vld [vmem:[#allocation33_spill] sm:$0xff] }
 0x1ce   : > { %1300 = vmatprep.subr.bf16.mxu0 %v3505_v7  ;;  %1341 = vmatprep.subr.bf16.mxu1 %v3529_v16  ;;  %v1295_v7 = vpack.c.bf16 %v3847_v6, %v3847_v6  ;;  %v4524_v16 = vld [vmem:[#allocation23_spill] sm:$0xff] }
 0x1d1   : > { %1301 = vmatpush1.bf16.msra.mxu0 %v3512_v10  ;;  %1342 = vmatpush1.bf16.msra.mxu1 %v3533_v17  ;;  %v4519_v10 = vld [vmem:[#allocation21_spill] sm:$0xff] }
 0x1d2   : > { %1302 = vmatprep.subr.bf16.mxu0 %v3516_v11  ;;  %1343 = vmatprep.subr.bf16.mxu1 %v3536_v18  ;;  %v4520_v11 = vld [vmem:[#allocation19_spill] sm:$0xff]  ;;  %v4525_v17 = vld [vmem:[#allocation25_spill] sm:$0xff] }
 0x1d5   : > { %1303 = vmatpush1.bf16.msra.mxu0 %v3525_v14  ;;  %1344 = vmatpush1.bf16.msra.mxu1 %v3545_v21  ;;  %v4523_v14 = vld [vmem:[#allocation24_spill] sm:$0xff] }
 0x1d6   : > { %1304 = vmatprep.subr.bf16.mxu0 %v3527_v15  ;;  %1345 = vmatprep.subr.bf16.mxu1 %v3548_v22  ;;  %v964_v15 = vpop.f32.mrb[4].mxu0  ;;  %v1005_v22 = vpop.f32.mrb[4].mxu1 }
 0x1d7   : > { %v966_v18 = vpop.f32.mrb[5].mxu0 }
 0x1d8   : > { %v968_v21 = vpop.f32.mrb[6].mxu0 }
 0x1d9   : > { %1305 = vmatpush1.bf16.msra.mxu0 %v3539_v19  ;;  %1346 = vmatpush1.bf16.msra.mxu1 %v3557_v25  ;;  %v4526_v19 = vld [vmem:[#allocation26_spill] sm:$0xff] }
 0x1da   : > { %1306 = vmatprep.subr.bf16.mxu0 %v3542_v20  ;;  %1347 = vmatprep.subr.bf16.mxu1 %v3560_v26  ;;  %v4527_v20 = vld [vmem:[#allocation28_spill] sm:$0xff]  ;;  %v4528_v26 = vld [vmem:[#allocation27_spill] sm:$0xff] }
 0x1dd   : > { %1307 = vmatpush1.bf16.msra.mxu0 %v3550_v23  ;;  %1348 = vmatpush1.bf16.msra.mxu1 %v3569_v29  ;;  %v969_v23 = vpop.f32.mrb[7].mxu0  ;;  %v4530_v29 = vld [vmem:[#allocation30_spill] sm:$0xff] }
 0x1de   : > { %1308 = vmatprep.subr.bf16.mxu0 %v3553_v24  ;;  %1349 = vmatprep.subr.bf16.mxu1 %v3572_v30  ;;  %v1007_v24 = vpop.f32.mrb[5].mxu1  ;;  %v4531_v30 = vld [vmem:[#allocation32_spill] sm:$0xff] }
 0x1df   : > { %v1009_v25 = vpop.f32.mrb[6].mxu1 }
 0x1e1   : > { %1309 = vmatpush1.bf16.msra.mxu0 %v3562_v27  ;;  %1350 = vmatpush1.bf16.msra.mxu1 %v3579_v33  ;;  %v4529_v27 = vld [vmem:[#allocation29_spill] sm:$0xff] }
 0x1e2   : > { %1310 = vmatprep.subr.bf16.mxu0 %v3565_v28  ;;  %1351 = vmatprep.subr.bf16.mxu1 %v3586_v35  ;;  %v1010_v28 = vpop.f32.mrb[7].mxu1 }
 0x1e5   : > { %1311 = vmatpush1.bf16.msra.mxu0 %v3574_v31  ;;  %1352 = vmatpush1.bf16.msra.mxu1 %v3590_v37  ;;  %v4532_v31 = vld [vmem:[#allocation31_spill] sm:$0xff] }
 0x1e6   : > { %1408 = vmatprep.subr.bf16.mxu0 %v3583_v34  ;;  %1449 = vmatprep.subr.bf16.mxu1 %v3600_v40 }
 0x1e8   : > { %1329 = vmatmul.mubr.bf16.vlgmr.msra.gmra.mrb[12].mxu0 %v1295_v7  ;;  %1370 = vmatmul.mubr.bf16.vlgmr.msra.gmra.mrb[12].mxu1 %v1295_v7 }
 0x1e9   : > { %1409 = vmatpush1.bf16.msra.mxu0 %v3593_v38  ;;  %1450 = vmatpush1.bf16.msra.mxu1 %v3604_v42 }
 0x1ea   : > { %1410 = vmatprep.subr.bf16.mxu0 %v3597_v39  ;;  %1451 = vmatprep.subr.bf16.mxu1 %v3609_v44 }
 0x1eb   : > { %1440 = vmatprep.mubr.bf16.mxu0 %v4489_v4  ;;  %1481 = vmatprep.mubr.bf16.mxu1 %v4489_v4 }
 0x1ed   : > { %1411 = vmatpush1.bf16.msra.mxu0 %v3602_v41  ;;  %1452 = vmatpush1.bf16.msra.mxu1 %v3617_v46 }
 0x1ee   : > { %1412 = vmatprep.subr.bf16.mxu0 %v3606_v43  ;;  %1453 = vmatprep.subr.bf16.mxu1 %v3622_v48 }
 0x1f1   : > { %1413 = vmatpush1.bf16.msra.mxu0 %v3615_v45  ;;  %1454 = vmatpush1.bf16.msra.mxu1 %v3630_v50 }
 0x1f2   : > { %1414 = vmatprep.subr.bf16.mxu0 %v4518_v9  ;;  %1455 = vmatprep.subr.bf16.mxu1 %v4519_v10 }
 0x1f5   : > { %1415 = vmatpush1.bf16.msra.mxu0 %v4520_v11  ;;  %1456 = vmatpush1.bf16.msra.mxu1 %v4521_v12 }
 0x1f6   : > { %1416 = vmatprep.subr.bf16.mxu0 %v4522_v13  ;;  %1457 = vmatprep.subr.bf16.mxu1 %v4523_v14 }
 0x1f9   : > { %1417 = vmatpush1.bf16.msra.mxu0 %v4524_v16  ;;  %1458 = vmatpush1.bf16.msra.mxu1 %v4525_v17 }
 0x1fa   : > { %1418 = vmatprep.subr.bf16.mxu0 %v4526_v19  ;;  %1459 = vmatprep.subr.bf16.mxu1 %v4527_v20 }
 0x1fd   : > { %1419 = vmatpush1.bf16.msra.mxu0 %v4528_v26  ;;  %1460 = vmatpush1.bf16.msra.mxu1 %v4529_v27 }
 0x1fe   : > { %1420 = vmatprep.subr.bf16.mxu0 %v4530_v29  ;;  %1461 = vmatprep.subr.bf16.mxu1 %v4531_v30 }
 0x201   : > { %1421 = vmatpush1.bf16.msra.mxu0 %v4532_v31  ;;  %1462 = vmatpush1.bf16.msra.mxu1 %v4533_v32 }
 0x202   : > { %1422 = vmatprep.subr.bf16.mxu0 %v4534_v36  ;;  %1463 = vmatprep.subr.bf16.mxu1 %v4535_v0  ;;  %v482_v0 = vsub.s32 3, %v469_v54 }
 0x205   : > { %1423 = vmatpush1.bf16.msra.mxu0 %v4536_v2  ;;  %1464 = vmatpush1.bf16.msra.mxu1 %v4537_v8 }
 0x206   : > { %1490 = vmatprep.subr.bf16.mxu0 %v4538_v62  ;;  %1531 = vmatprep.subr.bf16.mxu1 %v4539_v63 }
 0x29b   : > { %v1206_v1 = vpop.f32.mrb[8].mxu0  ;;  %v1247_v53 = vpop.f32.mrb[8].mxu1 }
 0x29c   : > { %v1207_v49 = vadd.f32 %v1206_v1, %v964_v15  ;;  %v1248_v52 = vadd.f32 %v1247_v53, %v1005_v22  ;;  %v1208_v61 = vpop.f32.mrb[9].mxu0  ;;  %v1249_v3 = vpop.f32.mrb[9].mxu1  ;;  %v3900_v15 = vrot.slane %v466_v55, %v482_v0  ;;  %v3904_v0 = vld [vmem:[#allocation5] sm:$0xff]  ;;  %v2501_v55 = vld [vmem:[%s3470_s19 + $0x20] sm:$0xff] }
 0x29d   : > { %v1209_v7 = vadd.f32 %v1208_v61, %v966_v18  ;;  %v1250_v21 = vadd.f32 %v1249_v3, %v1007_v24  ;;  %v1210_v23 = vpop.f32.mrb[10].mxu0  ;;  %v1251_v25 = vpop.f32.mrb[10].mxu1 }
 0x29e   : > { %v1254_v28 = vadd.f32 %v1207_v49, %v3892_v59  ;;  %v1211_v63 = vpop.f32.mrb[11].mxu0  ;;  %v1252_v62 = vpop.f32.mrb[11].mxu1  ;;  %v1256_v18 = vadd.f32 %v1248_v52, %v3898_v60  ;;  %v2502_v52 = vld [vmem:[%s3470_s19 + $0x28] sm:$0xff] }
 0x29f   : > { %v1255_v58 = vadd.f32 %v1209_v7, %v3894_v47  ;;  %v1257_v22 = vadd.f32 %v1250_v21, %v3900_v15 }
 0x2a0   : > { %v2498_v8 = vmul.f32 -1.442695, %v1254_v28  ;;  %v2500_v24 = vmul.f32 -1.442695, %v1256_v18 }
 0x2a1   : > { %v2499_v2 = vmul.f32 -1.442695, %v1255_v58 }
 0x2a2   : > { %2805 = vpow2.f32 %v2498_v8 }
 0x2a3   : > { %2807 = vpow2.f32 %v2499_v2 }
 0x2a4   : > { %2809 = vtanh.f32 %v1257_v22 }
 0x2a5   : > { %2811 = vpow2.f32 %v2500_v24 }
 0x2ac   : > { %v2806_v63 = vpop.eup %2805 }
 0x2ad   : > { %v1267_v62 = vadd.f32 1.0, %v2806_v63  ;;  %v2808_v1 = vpop.eup %2807 }
 0x2ae   : > { %v1268_v54 = vadd.f32 1.0, %v2808_v1  ;;  %v2810_v8 = vpop.eup %2809 }
 0x2af   : > { %2813 = vrcp.f32 %v1267_v62  ;;  %v2812_v53 = vpop.eup %2811 }
 0x2b0   : > { %2815 = vrcp.f32 %v1268_v54  ;;  %v1269_v3 = vadd.f32 1.0, %v2812_v53 }
 0x2b2   : > { %2817 = vrcp.f32 %v1269_v3  ;;  %v4540_v3 = vld [vmem:[#allocation38_spill] sm:$0xff] }
 0x2b9   : > { %v2814_v2 = vpop.eup %2813 }
 0x2ba   : > { %v1278_v49 = vmul.f32 %v2814_v2, %v2810_v8  ;;  %v2816_v61 = vpop.eup %2815  ;;  %v2503_v8 = vld [vmem:[%s3470_s19 + $0x30] sm:$0xff]  ;;  %v2504_v2 = vld [vmem:[%s3470_s19 + $0x38] sm:$0xff] }
 0x2bb   : > { %v1330_v7 = vpop.f32.mrb[12].mxu0  ;;  %v1371_v21 = vpop.f32.mrb[12].mxu1  ;;  %v1277_v23 = vmul.f32 %v2816_v61, %v3904_v0 }
 0x2bc   : > { %v1378_v25 = vadd.f32 %v2501_v55, %v1330_v7  ;;  %v1332_v28 = vpop.f32.mrb[13].mxu0  ;;  %v1373_v57 = vpop.f32.mrb[13].mxu1  ;;  %v1380_v53 = vadd.f32 %v2503_v8, %v1371_v21 }
 0x2bd   : > { %v1379_v58 = vadd.f32 %v2502_v52, %v1332_v28  ;;  %v1334_v18 = vpop.f32.mrb[14].mxu0  ;;  %v1375_v22 = vpop.f32.mrb[14].mxu1  ;;  %v3909_v24 = vadd.f32 %v1278_v49, %v1277_v23  ;;  %v1381_v55 = vadd.f32 %v2504_v2, %v1373_v57  ;;  %v4541_v57 = vld [vmem:[#allocation41_spill] sm:$0xff]  ;;  %v4549_v2 = vld [vmem:[#allocation48_spill] sm:$0xff] }
 0x2be   : > { %v2505_v63 = vmul.f32 -1.442695, %v1378_v25  ;;  %v1335_v62 = vpop.f32.mrb[15].mxu0  ;;  %v1376_v1 = vpop.f32.mrb[15].mxu1  ;;  %v2507_v52 = vmul.f32 -1.442695, %v1380_v53 }
 0x2bf   : > { %v2506_v54 = vmul.f32 -1.442695, %v1379_v58  ;;  %2819 = vtanh.f32 %v3909_v24  ;;  %v2818_v61 = vpop.eup %2817  ;;  %v4542_v22 = vld [vmem:[#allocation42_spill] sm:$0xff]  ;;  %v4545_v62 = vld [vmem:[#allocation44_spill] sm:$0xff]  ;;  %v4546_v1 = vld [vmem:[#allocation45_spill] sm:$0xff] }
 0x2c0   : > { %2821 = vpow2.f32 %v2505_v63  ;;  %v4544_v63 = vld [vmem:[#allocation43_spill] sm:$0xff] }
 0x2c1   : > { %2823 = vpow2.f32 %v2506_v54  ;;  %v4547_v54 = vld [vmem:[#allocation46_spill] sm:$0xff]  ;;  %v4548_v53 = vld [vmem:[#allocation47_spill] sm:$0xff] }
 0x2c2   : > { %2825 = vtanh.f32 %v1381_v55 }
 0x2c3   : > { %2827 = vpow2.f32 %v2507_v52 }
 0x2c9   : > { %v2820_v7 = vpop.eup %2819 }
 0x2ca   : > { %v2822_v28 = vpop.eup %2821  ;;  %v1281_v49 = vmul.f32 %v2820_v7, %v2818_v61  ;;  %v4550_v7 = vld [vmem:[#allocation49_spill] sm:$0xff] }
 0x2cb   : > { %v1391_v23 = vadd.f32 1.0, %v2822_v28  ;;  %v2824_v25 = vpop.eup %2823  ;;  %v4551_v28 = vld [vmem:[#allocation50_spill] sm:$0xff] }
 0x2cc   : > { %v3917_v58 = vsel %vm3840_vm0, %v1281_v49, %v4540_v3  ;;  %v1392_v18 = vadd.f32 1.0, %v2824_v25  ;;  %v2826_v8 = vpop.eup %2825  ;;  %v3940_v49 = vstv %s1602_s16  ;;  %v1287_v25 = vsel %vm3840_vm0, %v3803_v51, %v3800_v56  ;;  %v4558_v51 = vld [vmem:[#allocation57_spill] sm:$0xff] }
 0x2cd   : > { %2829 = vrcp.f32 %v1391_v23  ;;  %v1407_v21 = vpack.c.bf16 %v3917_v58, %v3917_v58  ;;  %v2828_v55 = vpop.eup %2827  ;;  %vm1604_vm1 = vcmp.eq.s32.totalorder %v3940_v49, 1 }
 0x2ce   : > { %2831 = vrcp.f32 %v1392_v18  ;;  %v1393_v3 = vadd.f32 1.0, %v2828_v55  ;;  %v4552_v18 = vld [vmem:[#allocation51_spill] sm:$0xff]  ;;  %v4559_v55 = vld [vmem:[#allocation58_spill] sm:$0xff] }
 0x2cf   : > { %1441 = vmatmul.mubr.bf16.vlgmr.msra.gmra.mrb[16].mxu0 %v1407_v21  ;;  %1482 = vmatmul.mubr.bf16.vlgmr.msra.gmra.mrb[16].mxu1 %v1407_v21  ;;  %v4553_v21 = vld [vmem:[#allocation52_spill] sm:$0xff] }
 0x2d0   : > { %1491 = vmatpush1.bf16.msra.mxu0 %v4541_v57  ;;  %1532 = vmatpush1.bf16.msra.mxu1 %v4542_v22  ;;  %2833 = vrcp.f32 %v1393_v3  ;;  %v4563_v3 = vld [vmem:[#allocation62_spill] sm:$0xff] }
 0x2d1   : > { %1492 = vmatprep.subr.bf16.mxu0 %v4544_v63  ;;  %1533 = vmatprep.subr.bf16.mxu1 %v4545_v62 }
 0x2d2   : > { %1522 = vmatprep.mubr.bf16.mxu0 %v4489_v4  ;;  %1563 = vmatprep.mubr.bf16.mxu1 %v4489_v4 }
 0x2d4   : > { %1493 = vmatpush1.bf16.msra.mxu0 %v4546_v1  ;;  %1534 = vmatpush1.bf16.msra.mxu1 %v4547_v54 }
 0x2d5   : > { %1494 = vmatprep.subr.bf16.mxu0 %v4548_v53  ;;  %1535 = vmatprep.subr.bf16.mxu1 %v4549_v2  ;;  %v4557_v53 = vld [vmem:[#allocation56_spill] sm:$0xff] }
 0x2d7   : > { %v2830_v61 = vpop.eup %2829 }
 0x2d8   : > { %v1402_v52 = vmul.f32 %v2830_v61, %v2826_v8  ;;  %1495 = vmatpush1.bf16.msra.mxu0 %v4550_v7  ;;  %1536 = vmatpush1.bf16.msra.mxu1 %v4551_v28  ;;  %v2832_v23 = vpop.eup %2831  ;;  %v4554_v61 = vld [vmem:[#allocation53_spill] sm:$0xff]  ;;  %v4555_v28 = vld [vmem:[#allocation54_spill] sm:$0xff]  ;;  %v4556_v7 = vld [vmem:[#allocation55_spill] sm:$0xff] }
 0x2d9   : > { %1496 = vmatprep.subr.bf16.mxu0 %v4552_v18  ;;  %1537 = vmatprep.subr.bf16.mxu1 %v4553_v21  ;;  %v1401_v2 = vmul.f32 %v2832_v23, %v1287_v25  ;;  %v4560_v23 = vld [vmem:[#allocation59_spill] sm:$0xff] }
 0x2db   : > { %v1403_v8 = vadd.f32 %v1402_v52, %v1401_v2  ;;  %v4561_v2 = vld [vmem:[#allocation60_spill] sm:$0xff]  ;;  %v4562_v52 = vld [vmem:[#allocation61_spill] sm:$0xff] }
 0x2dc   : > { %1497 = vmatpush1.bf16.msra.mxu0 %v4554_v61  ;;  %1538 = vmatpush1.bf16.msra.mxu1 %v4555_v28  ;;  %v2834_v28 = vpop.eup %2833 }
 0x2dd   : > { %1498 = vmatprep.subr.bf16.mxu0 %v4556_v7  ;;  %1539 = vmatprep.subr.bf16.mxu1 %v4557_v53  ;;  %2835 = vtanh.f32 %v1403_v8  ;;  %v3955_v56 = vsel %vm1604_vm1, %v1403_v8, %v1287_v25  ;;  %v4564_v7 = vld [vmem:[#allocation63_spill] sm:$0xff]  ;;  %v4565_v53 = vld [vmem:[#allocation64_spill] sm:$0xff]  ;;  %v4566_v25 = vld [vmem:[#allocation65_spill] sm:$0xff] }
 0x2de   : > { %v4567_v8 = vld [vmem:[#allocation66_spill] sm:$0xff] }
 0x2e0   : > { %1499 = vmatpush1.bf16.msra.mxu0 %v4558_v51  ;;  %1540 = vmatpush1.bf16.msra.mxu1 %v4559_v55  ;;  %v4568_v51 = vld [vmem:[#allocation67_spill] sm:$0xff]  ;;  %v4569_v55 = vld [vmem:[#allocation68_spill] sm:$0xff] }
 0x2e1   : > { %1500 = vmatprep.subr.bf16.mxu0 %v4560_v23  ;;  %1541 = vmatprep.subr.bf16.mxu1 %v4561_v2  ;;  %v4570_v2 = vld [vmem:[#allocation69_spill] sm:$0xff] }
 0x2e4   : > { %1501 = vmatpush1.bf16.msra.mxu0 %v4562_v52  ;;  %1542 = vmatpush1.bf16.msra.mxu1 %v4563_v3  ;;  %v4571_v52 = vld [vmem:[#allocation70_spill] sm:$0xff] }
 0x2e5   : > { %1502 = vmatprep.subr.bf16.mxu0 %v4564_v7  ;;  %1543 = vmatprep.subr.bf16.mxu1 %v4565_v53  ;;  %v3975_v53 = vld [vmem:[#allocation9 + $0x4] ss:$16 sps:$4 sm:$0xff]  }
 0x2e7   : > { %v2836_v61 = vpop.eup %2835 }
 0x2e8   : > { %1503 = vmatpush1.bf16.msra.mxu0 %v4566_v25  ;;  %1544 = vmatpush1.bf16.msra.mxu1 %v4567_v8  ;;  %v3969_v23 = vmul.f32 %v2836_v61, %v2834_v28  ;;  %v3978_v25 = vld [vmem:[#allocation9 + $0xc] ss:$16 sps:$4 sm:$0xff]   ;;  %v3984_v28 = vld [vmem:[#allocation9 + $0x8] ss:$16 sps:$4 sm:$0xff]   ;;  %v3987_v61 = vld [vmem:[#allocation9 + $0x24] ss:$16 sps:$4 sm:$0xff]  }
 0x2e9   : > { %1504 = vmatprep.subr.bf16.mxu0 %v4568_v51  ;;  %1545 = vmatprep.subr.bf16.mxu1 %v4569_v55  ;;  %4572 = vst [vmem:[#allocation18_spill] sm:$0xff] %v3978_v25  ;;  %v3981_v55 = vld [vmem:[#allocation9] ss:$16 sps:$4 sm:$0xff]   ;;  %4574 = vst [vmem:[#allocation19_spill] sm:$0xff] %v3984_v28 }
 0x2ea   : > { %v1406_v7 = vpack.c.bf16 %v3969_v23, %v3969_v23  ;;  %4573 = vst [vmem:[#allocation21_spill] sm:$0xff] %v3981_v55  ;;  %4575 = vst [vmem:[#allocation22_spill] sm:$0xff] %v3987_v61 }
 0x2ec   : > { %1505 = vmatpush1.bf16.msra.mxu0 %v4570_v2  ;;  %1546 = vmatpush1.bf16.msra.mxu1 %v4571_v52  ;;  %v3990_v52 = vld [vmem:[#allocation9 + $0x2c] ss:$16 sps:$4 sm:$0xff]  }
 0x2ed   : > { %1615 = vmatprep.subr.bf16.mxu0 %v3975_v53  ;;  %1656 = vmatprep.subr.bf16.mxu1 %v3978_v25  ;;  %4576 = vst [vmem:[#allocation20_spill] sm:$0xff] %v3990_v52  ;;  %v4010_v25 = vld [vmem:[#allocation9 + $0x48] ss:$16 sps:$4 sm:$0xff]  }
 0x2ee   : > { %4582 = vst [vmem:[#allocation27_spill] sm:$0xff] %v4010_v25 }
 0x2ef   : > { %1523 = vmatmul.mubr.bf16.vlgmr.msra.gmra.mrb[20].mxu0 %v1406_v7  ;;  %1564 = vmatmul.mubr.bf16.vlgmr.msra.gmra.mrb[20].mxu1 %v1406_v7  ;;  %v3995_v7 = vld [vmem:[#allocation9 + $0x20] ss:$16 sps:$4 sm:$0xff]  }
 0x2f0   : > { %1616 = vmatpush1.bf16.msra.mxu0 %v3981_v55  ;;  %1657 = vmatpush1.bf16.msra.mxu1 %v3984_v28  ;;  %4577 = vst [vmem:[#allocation24_spill] sm:$0xff] %v3995_v7  ;;  %v3998_v55 = vld [vmem:[#allocation9 + $0x28] ss:$16 sps:$4 sm:$0xff]   ;;  %v4001_v28 = vld [vmem:[#allocation9 + $0x44] ss:$16 sps:$4 sm:$0xff]  }
 0x2f1   : > { %1617 = vmatprep.subr.bf16.mxu0 %v3987_v61  ;;  %1658 = vmatprep.subr.bf16.mxu1 %v3990_v52  ;;  %4578 = vst [vmem:[#allocation23_spill] sm:$0xff] %v3998_v55  ;;  %4579 = vst [vmem:[#allocation25_spill] sm:$0xff] %v4001_v28  ;;  %v4004_v61 = vld [vmem:[#allocation9 + $0x4c] ss:$16 sps:$4 sm:$0xff]   ;;  %v4007_v52 = vld [vmem:[#allocation9 + $0x40] ss:$16 sps:$4 sm:$0xff]  }
 0x2f2   : > { %1647 = vmatprep.mubr.bf16.mxu0 %v4489_v4  ;;  %1688 = vmatprep.mubr.bf16.mxu1 %v4489_v4  ;;  %4580 = vst [vmem:[#allocation26_spill] sm:$0xff] %v4004_v61  ;;  %4581 = vst [vmem:[#allocation28_spill] sm:$0xff] %v4007_v52 }
 0x2f4   : > { %1618 = vmatpush1.bf16.msra.mxu0 %v3995_v7  ;;  %1659 = vmatpush1.bf16.msra.mxu1 %v3998_v55  ;;  %v4013_v7 = vld [vmem:[#allocation9 + $0x64] ss:$16 sps:$4 sm:$0xff]   ;;  %v4016_v55 = vld [vmem:[#allocation9 + $0x6c] ss:$16 sps:$4 sm:$0xff]  }
 0x2f5   : > { %1619 = vmatprep.subr.bf16.mxu0 %v4001_v28  ;;  %1660 = vmatprep.subr.bf16.mxu1 %v4004_v61  ;;  %4583 = vst [vmem:[#allocation29_spill] sm:$0xff] %v4013_v7  ;;  %4584 = vst [vmem:[#allocation30_spill] sm:$0xff] %v4016_v55  ;;  %v4019_v28 = vld [vmem:[#allocation9 + $0x60] ss:$16 sps:$4 sm:$0xff]   ;;  %v4022_v61 = vld [vmem:[#allocation9 + $0x68] ss:$16 sps:$4 sm:$0xff]  }
 0x2f6   : > { %4585 = vst [vmem:[#allocation32_spill] sm:$0xff] %v4019_v28  ;;  %4586 = vst [vmem:[#allocation31_spill] sm:$0xff] %v4022_v61 }
 0x2f8   : > { %1620 = vmatpush1.bf16.msra.mxu0 %v4007_v52  ;;  %1661 = vmatpush1.bf16.msra.mxu1 %v4010_v25  ;;  %v4025_v52 = vld [vmem:[#allocation9 + $0x84] ss:$16 sps:$4 sm:$0xff]   ;;  %v4028_v25 = vld [vmem:[#allocation9 + $0x8c] ss:$16 sps:$4 sm:$0xff]  }
 0x2f9   : > { %1621 = vmatprep.subr.bf16.mxu0 %v4013_v7  ;;  %1662 = vmatprep.subr.bf16.mxu1 %v4016_v55  ;;  %4587 = vst [vmem:[#allocation33_spill] sm:$0xff] %v4025_v52  ;;  %4588 = vst [vmem:[#allocation34_spill] sm:$0xff] %v4028_v25  ;;  %v4031_v7 = vld [vmem:[#allocation9 + $0x80] ss:$16 sps:$4 sm:$0xff]   ;;  %v4034_v55 = vld [vmem:[#allocation9 + $0x88] ss:$16 sps:$4 sm:$0xff]  }
 0x2fa   : > { %4589 = vst [vmem:[#allocation38_spill] sm:$0xff] %v4031_v7  ;;  %4590 = vst [vmem:[#allocation41_spill] sm:$0xff] %v4034_v55 }
 0x2fc   : > { %1622 = vmatpush1.bf16.msra.mxu0 %v4019_v28  ;;  %1663 = vmatpush1.bf16.msra.mxu1 %v4022_v61  ;;  %v4037_v28 = vld [vmem:[#allocation9 + $0xa4] ss:$16 sps:$4 sm:$0xff]   ;;  %v4040_v61 = vld [vmem:[#allocation9 + $0xac] ss:$16 sps:$4 sm:$0xff]  }
 0x2fd   : > { %1623 = vmatprep.subr.bf16.mxu0 %v4025_v52  ;;  %1664 = vmatprep.subr.bf16.mxu1 %v4028_v25  ;;  %4591 = vst [vmem:[#allocation42_spill] sm:$0xff] %v4037_v28  ;;  %4592 = vst [vmem:[#allocation43_spill] sm:$0xff] %v4040_v61  ;;  %v4043_v52 = vld [vmem:[#allocation9 + $0xa0] ss:$16 sps:$4 sm:$0xff]   ;;  %v4046_v25 = vld [vmem:[#allocation9 + $0xa8] ss:$16 sps:$4 sm:$0xff]  }
 0x2fe   : > { %4593 = vst [vmem:[#allocation44_spill] sm:$0xff] %v4046_v25 }
 0x300   : > { %1624 = vmatpush1.bf16.msra.mxu0 %v4031_v7  ;;  %1665 = vmatpush1.bf16.msra.mxu1 %v4034_v55  ;;  %v4049_v7 = vld [vmem:[#allocation9 + $0xc4] ss:$16 sps:$4 sm:$0xff]   ;;  %v4052_v55 = vld [vmem:[#allocation9 + $0xcc] ss:$16 sps:$4 sm:$0xff]  }
 0x301   : > { %1625 = vmatprep.subr.bf16.mxu0 %v4037_v28  ;;  %1666 = vmatprep.subr.bf16.mxu1 %v4040_v61  ;;  %4594 = vst [vmem:[#allocation45_spill] sm:$0xff] %v4049_v7  ;;  %v4055_v28 = vld [vmem:[#allocation9 + $0xc0] ss:$16 sps:$4 sm:$0xff]   ;;  %v4059_v61 = vld [vmem:[#allocation9 + $0xe4] ss:$16 sps:$4 sm:$0xff]  }
 0x304   : > { %1626 = vmatpush1.bf16.msra.mxu0 %v4043_v52  ;;  %1667 = vmatpush1.bf16.msra.mxu1 %v4046_v25  ;;  %v4069_v25 = vld [vmem:[#allocation9 + $0xe0] ss:$16 sps:$4 sm:$0xff]  }
 0x305   : > { %1627 = vmatprep.subr.bf16.mxu0 %v4049_v7  ;;  %1668 = vmatprep.subr.bf16.mxu1 %v4052_v55  ;;  %v4067_v7 = vsel %vm1604_vm1, %v3969_v23, %v3847_v6 }
 0x308   : > { %1628 = vmatpush1.bf16.msra.mxu0 %v4055_v28  ;;  %1669 = vmatpush1.bf16.msra.mxu1 %v3579_v33  ;;  %v1614_v33 = vpack.c.bf16 %v4067_v7, %v4067_v7 }
 0x309   : > { %1629 = vmatprep.subr.bf16.mxu0 %v4059_v61  ;;  %1670 = vmatprep.subr.bf16.mxu1 %v3586_v35  ;;  %v4596_v35 = vld [vmem:[#allocation35_spill] sm:$0xff] }
 0x30c   : > { %1630 = vmatpush1.bf16.msra.mxu0 %v4069_v25  ;;  %1671 = vmatpush1.bf16.msra.mxu1 %v3590_v37  ;;  %v4597_v37 = vld [vmem:[#allocation37_spill] sm:$0xff] }
 0x30d   : > { %1727 = vmatprep.subr.bf16.mxu0 %v3583_v34  ;;  %1768 = vmatprep.subr.bf16.mxu1 %v3600_v40  ;;  %v4595_v34 = vld [vmem:[#allocation36_spill] sm:$0xff] }
 0x30f   : > { %1648 = vmatmul.mubr.bf16.vlgmr.msra.gmra.mrb[24].mxu0 %v1614_v33  ;;  %1689 = vmatmul.mubr.bf16.vlgmr.msra.gmra.mrb[24].mxu1 %v1614_v33 }
 0x310   : > { %1728 = vmatpush1.bf16.msra.mxu0 %v3593_v38  ;;  %1769 = vmatpush1.bf16.msra.mxu1 %v3604_v42  ;;  %v4598_v38 = vld [vmem:[#allocation39_spill] sm:$0xff] }
 0x311   : > { %1729 = vmatprep.subr.bf16.mxu0 %v3597_v39  ;;  %1770 = vmatprep.subr.bf16.mxu1 %v3609_v44  ;;  %v4599_v39 = vld [vmem:[#allocation40_spill] sm:$0xff] }
 0x312   : > { %1759 = vmatprep.mubr.bf16.mxu0 %v4489_v4  ;;  %1800 = vmatprep.mubr.bf16.mxu1 %v4489_v4 }
 0x314   : > { %1730 = vmatpush1.bf16.msra.mxu0 %v3602_v41  ;;  %1771 = vmatpush1.bf16.msra.mxu1 %v3617_v46 }
 0x315   : > { %1731 = vmatprep.subr.bf16.mxu0 %v3606_v43  ;;  %1772 = vmatprep.subr.bf16.mxu1 %v3622_v48 }
 0x318   : > { %1732 = vmatpush1.bf16.msra.mxu0 %v3615_v45  ;;  %1773 = vmatpush1.bf16.msra.mxu1 %v3630_v50 }
 0x319   : > { %1733 = vmatprep.subr.bf16.mxu0 %v4518_v9  ;;  %1774 = vmatprep.subr.bf16.mxu1 %v4519_v10 }
 0x31c   : > { %1734 = vmatpush1.bf16.msra.mxu0 %v4520_v11  ;;  %1775 = vmatpush1.bf16.msra.mxu1 %v4521_v12 }
 0x31d   : > { %1735 = vmatprep.subr.bf16.mxu0 %v4522_v13  ;;  %1776 = vmatprep.subr.bf16.mxu1 %v4523_v14 }
 0x320   : > { %1736 = vmatpush1.bf16.msra.mxu0 %v4524_v16  ;;  %1777 = vmatpush1.bf16.msra.mxu1 %v4525_v17 }
 0x321   : > { %1737 = vmatprep.subr.bf16.mxu0 %v4526_v19  ;;  %1778 = vmatprep.subr.bf16.mxu1 %v4527_v20 }
 0x324   : > { %1738 = vmatpush1.bf16.msra.mxu0 %v4528_v26  ;;  %1779 = vmatpush1.bf16.msra.mxu1 %v4529_v27 }
 0x325   : > { %1739 = vmatprep.subr.bf16.mxu0 %v4530_v29  ;;  %1780 = vmatprep.subr.bf16.mxu1 %v4531_v30 }
 0x328   : > { %1740 = vmatpush1.bf16.msra.mxu0 %v4532_v31  ;;  %1781 = vmatpush1.bf16.msra.mxu1 %v4533_v32 }
 0x329   : > { %1741 = vmatprep.subr.bf16.mxu0 %v4534_v36  ;;  %1782 = vmatprep.subr.bf16.mxu1 %v4595_v34 }
 0x32c   : > { %1742 = vmatpush1.bf16.msra.mxu0 %v4596_v35  ;;  %1783 = vmatpush1.bf16.msra.mxu1 %v4597_v37 }
 0x32d   : > { %1809 = vmatprep.subr.bf16.mxu0 %v4598_v38  ;;  %1850 = vmatprep.subr.bf16.mxu1 %v4599_v39 }
 0x3a2   : > { %v1442_v40 = vpop.f32.mrb[16].mxu0  ;;  %v1483_v41 = vpop.f32.mrb[16].mxu1 }
 0x3a3   : > { %v1444_v42 = vpop.f32.mrb[17].mxu0  ;;  %v1485_v43 = vpop.f32.mrb[17].mxu1 }
 0x3a4   : > { %v1446_v44 = vpop.f32.mrb[18].mxu0  ;;  %v1487_v45 = vpop.f32.mrb[18].mxu1 }
 0x3a5   : > { %v1447_v46 = vpop.f32.mrb[19].mxu0  ;;  %v1488_v48 = vpop.f32.mrb[19].mxu1  ;;  %v1289_v45 = vsel %vm3840_vm0, %v3909_v24, %v3904_v0  ;;  %v2513_v0 = vld [vmem:[%s3470_s19 + $0x50] sm:$0xff] }
 0x3c2   : > { %v1524_v50 = vpop.f32.mrb[20].mxu0  ;;  %v1565_v6 = vpop.f32.mrb[20].mxu1 }
 0x3c3   : > { %v1525_v9 = vadd.f32 %v1524_v50, %v1442_v40  ;;  %v1566_v10 = vadd.f32 %v1565_v6, %v1483_v41  ;;  %v1526_v11 = vpop.f32.mrb[21].mxu0  ;;  %v1567_v12 = vpop.f32.mrb[21].mxu1  ;;  %v2511_v40 = vld [vmem:[%s3470_s19 + $0x40] sm:$0xff] }
 0x3c4   : > { %v1527_v13 = vadd.f32 %v1526_v11, %v1444_v42  ;;  %v1568_v14 = vadd.f32 %v1567_v12, %v1485_v43  ;;  %v1528_v16 = vpop.f32.mrb[22].mxu0  ;;  %v1569_v17 = vpop.f32.mrb[22].mxu1  ;;  %v2512_v42 = vld [vmem:[%s3470_s19 + $0x48] sm:$0xff] }
 0x3c5   : > { %v1572_v19 = vadd.f32 %v1525_v9, %v3892_v59  ;;  %v1529_v20 = vpop.f32.mrb[23].mxu0  ;;  %v1570_v26 = vpop.f32.mrb[23].mxu1  ;;  %v1574_v31 = vadd.f32 %v1566_v10, %v3898_v60 }
 0x3c6   : > { %v1573_v27 = vadd.f32 %v1527_v13, %v3894_v47  ;;  %v1575_v32 = vadd.f32 %v1568_v14, %v3900_v15  ;;  %v2514_v26 = vld [vmem:[%s3470_s19 + $0x58] sm:$0xff] }
 0x3c7   : > { %v2508_v29 = vmul.f32 -1.442695, %v1572_v19  ;;  %v2510_v36 = vmul.f32 -1.442695, %v1574_v31 }
 0x3c8   : > { %v2509_v30 = vmul.f32 -1.442695, %v1573_v27 }
 0x3c9   : > { %2837 = vpow2.f32 %v2508_v29 }
 0x3ca   : > { %2839 = vpow2.f32 %v2509_v30 }
 0x3cb   : > { %2841 = vtanh.f32 %v1575_v32 }
 0x3cc   : > { %2843 = vpow2.f32 %v2510_v36 }
 0x3d3   : > { %v2838_v23 = vpop.eup %2837 }
 0x3d4   : > { %v1585_v33 = vadd.f32 1.0, %v2838_v23  ;;  %v2840_v34 = vpop.eup %2839 }
 0x3d5   : > { %v1586_v35 = vadd.f32 1.0, %v2840_v34  ;;  %v2842_v37 = vpop.eup %2841 }
 0x3d6   : > { %2845 = vrcp.f32 %v1585_v33  ;;  %v2844_v38 = vpop.eup %2843 }
 0x3d7   : > { %2847 = vrcp.f32 %v1586_v35  ;;  %v1587_v44 = vadd.f32 1.0, %v2844_v38 }
 0x3d9   : > { %2849 = vrcp.f32 %v1587_v44  ;;  %v4606_v44 = vld [vmem:[#allocation54_spill] sm:$0xff] }
 0x3e0   : > { %v2846_v39 = vpop.eup %2845 }
 0x3e1   : > { %v1596_v41 = vmul.f32 %v2846_v39, %v2842_v37  ;;  %v2848_v43 = vpop.eup %2847  ;;  %v4603_v39 = vld [vmem:[#allocation49_spill] sm:$0xff] }
 0x3e2   : > { %v1649_v46 = vpop.f32.mrb[24].mxu0  ;;  %v1690_v48 = vpop.f32.mrb[24].mxu1  ;;  %v1595_v50 = vmul.f32 %v2848_v43, %v1289_v45  ;;  %v4605_v43 = vld [vmem:[#allocation53_spill] sm:$0xff] }
 0x3e3   : > { %v1697_v6 = vadd.f32 %v2511_v40, %v1649_v46  ;;  %v1651_v9 = vpop.f32.mrb[25].mxu0  ;;  %v1692_v10 = vpop.f32.mrb[25].mxu1  ;;  %v1699_v24 = vadd.f32 %v2513_v0, %v1690_v48  ;;  %v4153_v40 = vstv %s1921_s17  ;;  %v4608_v46 = vld [vmem:[#allocation56_spill] sm:$0xff]  ;;  %v4610_v48 = vld [vmem:[#allocation58_spill] sm:$0xff]  ;;  %v4621_v0 = vld [vmem:[#allocation19_spill] sm:$0xff] }
 0x3e4   : > { %v1698_v11 = vadd.f32 %v2512_v42, %v1651_v9  ;;  %v1653_v12 = vpop.f32.mrb[26].mxu0  ;;  %v1694_v13 = vpop.f32.mrb[26].mxu1  ;;  %v1597_v14 = vadd.f32 %v1596_v41, %v1595_v50  ;;  %v1700_v27 = vadd.f32 %v2514_v26, %v1692_v10  ;;  %vm1923_vm2 = vcmp.eq.s32.totalorder %v4153_v40, 1  ;;  %v4611_v50 = vld [vmem:[#allocation59_spill] sm:$0xff]  ;;  %v4613_v9 = vld [vmem:[#allocation61_spill] sm:$0xff]  ;;  %v4627_v26 = vld [vmem:[#allocation26_spill] sm:$0xff] }
 0x3e5   : > { %v2515_v16 = vmul.f32 -1.442695, %v1697_v6  ;;  %v1654_v17 = vpop.f32.mrb[27].mxu0  ;;  %v1695_v19 = vpop.f32.mrb[27].mxu1  ;;  %v2517_v30 = vmul.f32 -1.442695, %v1699_v24 }
 0x3e6   : > { %v2516_v20 = vmul.f32 -1.442695, %v1698_v11  ;;  %2851 = vtanh.f32 %v1597_v14  ;;  %v4123_v5 = vsel %vm1604_vm1, %v1597_v14, %v1289_v45  ;;  %v2850_v29 = vpop.eup %2849  ;;  %v4607_v45 = vld [vmem:[#allocation55_spill] sm:$0xff]  ;;  %v4612_v6 = vld [vmem:[#allocation60_spill] sm:$0xff]  ;;  %v4618_v17 = vld [vmem:[#allocation70_spill] sm:$0xff] }
 0x3e7   : > { %2853 = vpow2.f32 %v2515_v16  ;;  %v4614_v10 = vld [vmem:[#allocation63_spill] sm:$0xff]  ;;  %v4615_v11 = vld [vmem:[#allocation64_spill] sm:$0xff]  ;;  %v4619_v19 = vld [vmem:[#allocation18_spill] sm:$0xff] }
 0x3e8   : > { %2855 = vpow2.f32 %v2516_v20  ;;  %v4617_v14 = vld [vmem:[#allocation68_spill] sm:$0xff]  ;;  %v4620_v20 = vld [vmem:[#allocation21_spill] sm:$0xff]  ;;  %v4625_v24 = vld [vmem:[#allocation23_spill] sm:$0xff] }
 0x3e9   : > { %2857 = vtanh.f32 %v1700_v27  ;;  %v4628_v27 = vld [vmem:[#allocation28_spill] sm:$0xff]  ;;  %v2986_v40 = vld [vmem:[#allocation11 + $0x2c] ss:$16 sps:$4 sm:$0xff]  }
 0x3ea   : > { %2859 = vpow2.f32 %v2517_v30  ;;  %v4630_v30 = vld [vmem:[#allocation29_spill] sm:$0xff] }
 0x3f0   : > { %v2852_v31 = vpop.eup %2851 }
 0x3f1   : > { %v2854_v32 = vpop.eup %2853  ;;  %v1599_v36 = vmul.f32 %v2852_v31, %v2850_v29  ;;  %v4629_v29 = vld [vmem:[#allocation27_spill] sm:$0xff]  ;;  %v4631_v31 = vld [vmem:[#allocation30_spill] sm:$0xff] }
 0x3f2   : > { %v1710_v23 = vadd.f32 1.0, %v2854_v32  ;;  %v2856_v33 = vpop.eup %2855  ;;  %v4632_v32 = vld [vmem:[#allocation32_spill] sm:$0xff] }
 0x3f3   : > { %v4130_v34 = vsel %vm1604_vm1, %v1599_v36, %v3917_v58  ;;  %v1711_v35 = vadd.f32 1.0, %v2856_v33  ;;  %v2858_v58 = vpop.eup %2857  ;;  %v4633_v36 = vld [vmem:[#allocation31_spill] sm:$0xff]  ;;  %v4635_v33 = vld [vmem:[#allocation34_spill] sm:$0xff] }
 0x3f4   : > { %2861 = vrcp.f32 %v1710_v23  ;;  %v1726_v37 = vpack.c.bf16 %v4130_v34, %v4130_v34  ;;  %v2860_v49 = vpop.eup %2859  ;;  %v4634_v23 = vld [vmem:[#allocation33_spill] sm:$0xff] }
 0x3f5   : > { %2863 = vrcp.f32 %v1711_v35  ;;  %v4636_v35 = vld [vmem:[#allocation38_spill] sm:$0xff] }
 0x3f6   : > { %1760 = vmatmul.mubr.bf16.vlgmr.msra.gmra.mrb[28].mxu0 %v1726_v37  ;;  %1801 = vmatmul.mubr.bf16.vlgmr.msra.gmra.mrb[28].mxu1 %v1726_v37  ;;  %v4637_v37 = vld [vmem:[#allocation41_spill] sm:$0xff] }
 0x3f7   : > { %1810 = vmatpush1.bf16.msra.mxu0 %v4541_v57  ;;  %1851 = vmatpush1.bf16.msra.mxu1 %v4542_v22  ;;  %v4601_v57 = vld [vmem:[#allocation47_spill] sm:$0xff]  ;;  %v4602_v22 = vld [vmem:[#allocation48_spill] sm:$0xff] }
 0x3f8   : > { %1811 = vmatprep.subr.bf16.mxu0 %v4544_v63  ;;  %1852 = vmatprep.subr.bf16.mxu1 %v4545_v62  ;;  %v4604_v62 = vld [vmem:[#allocation50_spill] sm:$0xff] }
 0x3f9   : > { %1841 = vmatprep.mubr.bf16.mxu0 %v4489_v4  ;;  %1882 = vmatprep.mubr.bf16.mxu1 %v4489_v4 }
 0x3fb   : > { %1812 = vmatpush1.bf16.msra.mxu0 %v4546_v1  ;;  %1853 = vmatpush1.bf16.msra.mxu1 %v4547_v54  ;;  %v1712_v1 = vadd.f32 1.0, %v2860_v49  ;;  %v4641_v49 = vld [vmem:[#allocation45_spill] sm:$0xff] }
 0x3fc   : > { %1813 = vmatprep.subr.bf16.mxu0 %v4601_v57  ;;  %1854 = vmatprep.subr.bf16.mxu1 %v4602_v22  ;;  %v4639_v57 = vld [vmem:[#allocation43_spill] sm:$0xff]  ;;  %v4640_v22 = vld [vmem:[#allocation44_spill] sm:$0xff] }
 0x3fd   : > { %2865 = vrcp.f32 %v1712_v1  ;;  %v2953_v1 = vld [vmem:[#allocation12 + $0x24] ss:$16 sps:$4 sm:$0xff]  }
 0x3fe   : > { %v2862_v38 = vpop.eup %2861 }
 0x3ff   : > { %v1721_v63 = vmul.f32 %v2862_v38, %v2858_v58  ;;  %1814 = vmatpush1.bf16.msra.mxu0 %v4603_v39  ;;  %1855 = vmatpush1.bf16.msra.mxu1 %v4604_v62  ;;  %v2864_v41 = vpop.eup %2863  ;;  %v4638_v58 = vld [vmem:[#allocation42_spill] sm:$0xff]  ;;  %v2946_v38 = vld [vmem:[#allocation9 + $0xc8] ss:$16 sps:$4 sm:$0xff]  }
 0x400   : > { %1815 = vmatprep.subr.bf16.mxu0 %v4552_v18  ;;  %1856 = vmatprep.subr.bf16.mxu1 %v4553_v21  ;;  %v1720_v54 = vmul.f32 %v2864_v41, %v3955_v56  ;;  %v4609_v21 = vld [vmem:[#allocation57_spill] sm:$0xff]  ;;  %v2949_v62 = vld [vmem:[#allocation12 + $0x4] ss:$16 sps:$4 sm:$0xff]  }
 0x401   : > { %v2952_v41 = vld [vmem:[#allocation12 + $0x8] ss:$16 sps:$4 sm:$0xff]  }
 0x402   : > { %v1722_v42 = vadd.f32 %v1721_v63, %v1720_v54  ;;  %v2947_v63 = vld [vmem:[#allocation9 + $0xec] ss:$16 sps:$4 sm:$0xff]   ;;  %v2956_v54 = vld [vmem:[#allocation12 + $0x28] ss:$16 sps:$4 sm:$0xff]  }
 0x403   : > { %1816 = vmatpush1.bf16.msra.mxu0 %v4605_v43  ;;  %1857 = vmatpush1.bf16.msra.mxu1 %v4606_v44  ;;  %v2958_v43 = vld [vmem:[#allocation12 + $0x4c] ss:$16 sps:$4 sm:$0xff]   ;;  %v2959_v44 = vld [vmem:[#allocation12 + $0x40] ss:$16 sps:$4 sm:$0xff]  }
 0x404   : > { %1817 = vmatprep.subr.bf16.mxu0 %v4607_v45  ;;  %1858 = vmatprep.subr.bf16.mxu1 %v4608_v46  ;;  %2867 = vtanh.f32 %v1722_v42  ;;  %v4166_v18 = vsel %vm1923_vm2, %v1722_v42, %v3955_v56  ;;  %v4616_v56 = vld [vmem:[#allocation65_spill] sm:$0xff]  ;;  %v2957_v42 = vld [vmem:[#allocation12 + $0x44] ss:$16 sps:$4 sm:$0xff]  }
 0x405   : > { %v2960_v45 = vld [vmem:[#allocation12 + $0x48] ss:$16 sps:$4 sm:$0xff]   ;;  %v2961_v46 = vld [vmem:[#allocation12 + $0x64] ss:$16 sps:$4 sm:$0xff]  }
 0x407   : > { %1818 = vmatpush1.bf16.msra.mxu0 %v4609_v21  ;;  %1859 = vmatpush1.bf16.msra.mxu1 %v4610_v48  ;;  %v2866_v12 = vpop.eup %2865  ;;  %v2962_v21 = vld [vmem:[#allocation12 + $0x6c] ss:$16 sps:$4 sm:$0xff]   ;;  %v2963_v48 = vld [vmem:[#allocation12 + $0x60] ss:$16 sps:$4 sm:$0xff]  }
 0x408   : > { %1819 = vmatprep.subr.bf16.mxu0 %v4611_v50  ;;  %1860 = vmatprep.subr.bf16.mxu1 %v4612_v6  ;;  %v2964_v50 = vld [vmem:[#allocation12 + $0x68] ss:$16 sps:$4 sm:$0xff]   ;;  %v2965_v6 = vld [vmem:[#allocation12 + $0x84] ss:$16 sps:$4 sm:$0xff]  }
 0x40b   : > { %1820 = vmatpush1.bf16.msra.mxu0 %v4613_v9  ;;  %1861 = vmatpush1.bf16.msra.mxu1 %v4563_v3  ;;  %v2966_v9 = vld [vmem:[#allocation12 + $0x8c] ss:$16 sps:$4 sm:$0xff]  }
 0x40c   : > { %1821 = vmatprep.subr.bf16.mxu0 %v4614_v10  ;;  %1862 = vmatprep.subr.bf16.mxu1 %v4615_v11  ;;  %v2967_v10 = vld [vmem:[#allocation12 + $0x80] ss:$16 sps:$4 sm:$0xff]   ;;  %v2968_v11 = vld [vmem:[#allocation12 + $0x88] ss:$16 sps:$4 sm:$0xff]  }
 0x40e   : > { %v2868_v13 = vpop.eup %2867 }
 0x40f   : > { %1822 = vmatpush1.bf16.msra.mxu0 %v4616_v56  ;;  %1863 = vmatpush1.bf16.msra.mxu1 %v4567_v8  ;;  %v1724_v16 = vmul.f32 %v2868_v13, %v2866_v12  ;;  %v4622_v8 = vld [vmem:[#allocation22_spill] sm:$0xff]  ;;  %v2970_v13 = vld [vmem:[#allocation12 + $0xac] ss:$16 sps:$4 sm:$0xff]  }
 0x410   : > { %1823 = vmatprep.subr.bf16.mxu0 %v4568_v51  ;;  %1864 = vmatprep.subr.bf16.mxu1 %v4617_v14  ;;  %v4623_v51 = vld [vmem:[#allocation20_spill] sm:$0xff]  ;;  %v2972_v14 = vld [vmem:[#allocation12 + $0xa8] ss:$16 sps:$4 sm:$0xff]  }
 0x411   : > { %v1725_v3 = vpack.c.bf16 %v1724_v16, %v1724_v16  ;;  %v4215_v39 = vsel %vm1923_vm2, %v1724_v16, %v4067_v7  ;;  %v2954_v7 = vld [vmem:[#allocation12 + $0x2c] ss:$16 sps:$4 sm:$0xff]   ;;  %v2969_v12 = vld [vmem:[#allocation12 + $0xa4] ss:$16 sps:$4 sm:$0xff]   ;;  %v2971_v56 = vld [vmem:[#allocation12 + $0xa0] ss:$16 sps:$4 sm:$0xff]  }
 0x412   : > { %v2973_v16 = vld [vmem:[#allocation12 + $0xc4] ss:$16 sps:$4 sm:$0xff]  }
 0x413   : > { %1824 = vmatpush1.bf16.msra.mxu0 %v4570_v2  ;;  %1865 = vmatpush1.bf16.msra.mxu1 %v4618_v17  ;;  %v4624_v2 = vld [vmem:[#allocation24_spill] sm:$0xff]  ;;  %v2974_v17 = vld [vmem:[#allocation12 + $0xcc] ss:$16 sps:$4 sm:$0xff]  }
 0x414   : > { %1934 = vmatprep.subr.bf16.mxu0 %v3975_v53  ;;  %1975 = vmatprep.subr.bf16.mxu1 %v4619_v19  ;;  %v4626_v53 = vld [vmem:[#allocation25_spill] sm:$0xff] }
 0x415   : > { %v2976_v19 = vld [vmem:[#allocation12 + $0xc8] ss:$16 sps:$4 sm:$0xff]  }
 0x416   : > { %1842 = vmatmul.mubr.bf16.vlgmr.msra.gmra.mrb[32].mxu0 %v1725_v3  ;;  %1883 = vmatmul.mubr.bf16.vlgmr.msra.gmra.mrb[32].mxu1 %v1725_v3  ;;  %v2975_v3 = vld [vmem:[#allocation12 + $0xc0] ss:$16 sps:$4 sm:$0xff]  }
 0x417   : > { %1935 = vmatpush1.bf16.msra.mxu0 %v4620_v20  ;;  %1976 = vmatpush1.bf16.msra.mxu1 %v4621_v0  ;;  %v2977_v20 = vld [vmem:[#allocation12 + $0xe4] ss:$16 sps:$4 sm:$0xff]   ;;  %v2978_v0 = vld [vmem:[#allocation12 + $0xec] ss:$16 sps:$4 sm:$0xff]  }
 0x418   : > { %1936 = vmatprep.subr.bf16.mxu0 %v4622_v8  ;;  %1977 = vmatprep.subr.bf16.mxu1 %v4623_v51  ;;  %v2979_v8 = vld [vmem:[#allocation12 + $0xe0] ss:$16 sps:$4 sm:$0xff]   ;;  %v2980_v51 = vld [vmem:[#allocation12 + $0xe8] ss:$16 sps:$4 sm:$0xff]  }
 0x419   : > { %1966 = vmatprep.mubr.bf16.mxu0 %v4489_v4  ;;  %2007 = vmatprep.mubr.bf16.mxu1 %v4489_v4 }
 0x41b   : > { %1937 = vmatpush1.bf16.msra.mxu0 %v4624_v2  ;;  %1978 = vmatpush1.bf16.msra.mxu1 %v4625_v24  ;;  %v2981_v2 = vld [vmem:[#allocation11 + $0x4] ss:$16 sps:$4 sm:$0xff]   ;;  %v2982_v24 = vld [vmem:[#allocation11 + $0xc] ss:$16 sps:$4 sm:$0xff]  }
 0x41c   : > { %1938 = vmatprep.subr.bf16.mxu0 %v4626_v53  ;;  %1979 = vmatprep.subr.bf16.mxu1 %v4627_v26 }
 0x41f   : > { %1939 = vmatpush1.bf16.msra.mxu0 %v4628_v27  ;;  %1980 = vmatpush1.bf16.msra.mxu1 %v4629_v29 }
 0x420   : > { %1940 = vmatprep.subr.bf16.mxu0 %v4630_v30  ;;  %1981 = vmatprep.subr.bf16.mxu1 %v4631_v31 }
 0x423   : > { %1941 = vmatpush1.bf16.msra.mxu0 %v4632_v32  ;;  %1982 = vmatpush1.bf16.msra.mxu1 %v4633_v36 }
 0x424   : > { %1942 = vmatprep.subr.bf16.mxu0 %v4634_v23  ;;  %1983 = vmatprep.subr.bf16.mxu1 %v4635_v33 }
 0x427   : > { %1943 = vmatpush1.bf16.msra.mxu0 %v4636_v35  ;;  %1984 = vmatpush1.bf16.msra.mxu1 %v4637_v37 }
 0x428   : > { %1944 = vmatprep.subr.bf16.mxu0 %v4638_v58  ;;  %1985 = vmatprep.subr.bf16.mxu1 %v4639_v57 }
 0x42b   : > { %1945 = vmatpush1.bf16.msra.mxu0 %v4043_v52  ;;  %1986 = vmatpush1.bf16.msra.mxu1 %v4640_v22  ;;  %v2948_v52 = vld [vmem:[#allocation9 + $0xe8] ss:$16 sps:$4 sm:$0xff]  }
 0x42c   : > { %1946 = vmatprep.subr.bf16.mxu0 %v4641_v49  ;;  %1987 = vmatprep.subr.bf16.mxu1 %v4052_v55  ;;  %v1933_v55 = vpack.c.bf16 %v4215_v39, %v4215_v39 }
 0x42f   : > { %1947 = vmatpush1.bf16.msra.mxu0 %v4055_v28  ;;  %1988 = vmatpush1.bf16.msra.mxu1 %v2946_v38  ;;  %v2950_v28 = vld [vmem:[#allocation12 + $0xc] ss:$16 sps:$4 sm:$0xff]  }
 0x430   : > { %1948 = vmatprep.subr.bf16.mxu0 %v4059_v61  ;;  %1989 = vmatprep.subr.bf16.mxu1 %v2947_v63  ;;  %v2951_v61 = vld [vmem:[#allocation12] ss:$16 sps:$4 sm:$0xff]  }
 0x433   : > { %1949 = vmatpush1.bf16.msra.mxu0 %v4069_v25  ;;  %1990 = vmatpush1.bf16.msra.mxu1 %v2948_v52  ;;  %v2955_v25 = vld [vmem:[#allocation12 + $0x20] ss:$16 sps:$4 sm:$0xff]  }
 0x434   : > { %2046 = vmatprep.subr.bf16.mxu0 %v2949_v62  ;;  %2087 = vmatprep.subr.bf16.mxu1 %v2950_v28 }
 0x436   : > { %1967 = vmatmul.mubr.bf16.vlgmr.msra.gmra.mrb[36].mxu0 %v1933_v55  ;;  %2008 = vmatmul.mubr.bf16.vlgmr.msra.gmra.mrb[36].mxu1 %v1933_v55 }
 0x437   : > { %2047 = vmatpush1.bf16.msra.mxu0 %v2951_v61  ;;  %2088 = vmatpush1.bf16.msra.mxu1 %v2952_v41 }
 0x438   : > { %2048 = vmatprep.subr.bf16.mxu0 %v2953_v1  ;;  %2089 = vmatprep.subr.bf16.mxu1 %v2954_v7 }
 0x439   : > { %2078 = vmatprep.mubr.bf16.mxu0 %v4489_v4  ;;  %2119 = vmatprep.mubr.bf16.mxu1 %v4489_v4 }
 0x43b   : > { %2049 = vmatpush1.bf16.msra.mxu0 %v2955_v25  ;;  %2090 = vmatpush1.bf16.msra.mxu1 %v2956_v54 }
 0x43c   : > { %2050 = vmatprep.subr.bf16.mxu0 %v2957_v42  ;;  %2091 = vmatprep.subr.bf16.mxu1 %v2958_v43 }
 0x43f   : > { %2051 = vmatpush1.bf16.msra.mxu0 %v2959_v44  ;;  %2092 = vmatpush1.bf16.msra.mxu1 %v2960_v45 }
 0x440   : > { %2052 = vmatprep.subr.bf16.mxu0 %v2961_v46  ;;  %2093 = vmatprep.subr.bf16.mxu1 %v2962_v21 }
 0x443   : > { %2053 = vmatpush1.bf16.msra.mxu0 %v2963_v48  ;;  %2094 = vmatpush1.bf16.msra.mxu1 %v2964_v50  ;;  %v2521_v48 = vld [vmem:[%s3470_s19 + $0x60] sm:$0xff] }
 0x444   : > { %2054 = vmatprep.subr.bf16.mxu0 %v2965_v6  ;;  %2095 = vmatprep.subr.bf16.mxu1 %v2966_v9  ;;  %v2522_v6 = vld [vmem:[%s3470_s19 + $0x68] sm:$0xff] }
 0x447   : > { %2055 = vmatpush1.bf16.msra.mxu0 %v2967_v10  ;;  %2096 = vmatpush1.bf16.msra.mxu1 %v2968_v11 }
 0x448   : > { %2056 = vmatprep.subr.bf16.mxu0 %v2969_v12  ;;  %2097 = vmatprep.subr.bf16.mxu1 %v2970_v13 }
 0x44b   : > { %2057 = vmatpush1.bf16.msra.mxu0 %v2971_v56  ;;  %2098 = vmatpush1.bf16.msra.mxu1 %v2972_v14 }
 0x44c   : > { %2058 = vmatprep.subr.bf16.mxu0 %v2973_v16  ;;  %2099 = vmatprep.subr.bf16.mxu1 %v2974_v17 }
 0x44f   : > { %2059 = vmatpush1.bf16.msra.mxu0 %v2975_v3  ;;  %2100 = vmatpush1.bf16.msra.mxu1 %v2976_v19 }
 0x450   : > { %2060 = vmatprep.subr.bf16.mxu0 %v2977_v20  ;;  %2101 = vmatprep.subr.bf16.mxu1 %v2978_v0 }
 0x453   : > { %2061 = vmatpush1.bf16.msra.mxu0 %v2979_v8  ;;  %2102 = vmatpush1.bf16.msra.mxu1 %v2980_v51 }
 0x454   : > { %2128 = vmatprep.subr.bf16.mxu0 %v2981_v2  ;;  %2169 = vmatprep.subr.bf16.mxu1 %v2982_v24 }
 0x4c9   : > { %v1761_v53 = vpop.f32.mrb[28].mxu0  ;;  %v1802_v26 = vpop.f32.mrb[28].mxu1 }
 0x4ca   : > { %v1763_v27 = vpop.f32.mrb[29].mxu0  ;;  %v1804_v29 = vpop.f32.mrb[29].mxu1 }
 0x4cb   : > { %v1765_v30 = vpop.f32.mrb[30].mxu0  ;;  %v1806_v31 = vpop.f32.mrb[30].mxu1 }
 0x4cc   : > { %v1766_v32 = vpop.f32.mrb[31].mxu0  ;;  %v1807_v36 = vpop.f32.mrb[31].mxu1 }
 0x4e9   : > { %v1843_v23 = vpop.f32.mrb[32].mxu0  ;;  %v1884_v33 = vpop.f32.mrb[32].mxu1 }
 0x4ea   : > { %v1844_v35 = vadd.f32 %v1843_v23, %v1761_v53  ;;  %v1885_v37 = vadd.f32 %v1884_v33, %v1802_v26  ;;  %v1845_v58 = vpop.f32.mrb[33].mxu0  ;;  %v1886_v57 = vpop.f32.mrb[33].mxu1  ;;  %v2523_v53 = vld [vmem:[%s3470_s19 + $0x70] sm:$0xff] }
 0x4eb   : > { %v1846_v22 = vadd.f32 %v1845_v58, %v1763_v27  ;;  %v1887_v49 = vadd.f32 %v1886_v57, %v1804_v29  ;;  %v1847_v38 = vpop.f32.mrb[34].mxu0  ;;  %v1888_v63 = vpop.f32.mrb[34].mxu1  ;;  %v2524_v27 = vld [vmem:[%s3470_s19 + $0x78] sm:$0xff]  ;;  %v2983_v57 = vld [vmem:[#allocation11] ss:$16 sps:$4 sm:$0xff]   ;;  %s4643_s19 = sld [smem:[#allocation73_spill]] }
 0x4ec   : > { %v1891_v52 = vadd.f32 %v1844_v35, %v3892_v59  ;;  %v1848_v55 = vpop.f32.mrb[35].mxu0  ;;  %v1889_v62 = vpop.f32.mrb[35].mxu1  ;;  %v1893_v1 = vadd.f32 %v1885_v37, %v3898_v60  ;;  %v2988_v38 = vld [vmem:[#allocation11 + $0x28] ss:$16 sps:$4 sm:$0xff]  }
 0x4ed   : > { %v1892_v28 = vadd.f32 %v1846_v22, %v3894_v47  ;;  %v1894_v7 = vadd.f32 %v1887_v49, %v3900_v15  ;;  %v2984_v22 = vld [vmem:[#allocation11 + $0x8] ss:$16 sps:$4 sm:$0xff]   ;;  %v2987_v49 = vld [vmem:[#allocation11 + $0x20] ss:$16 sps:$4 sm:$0xff]   ;;  %v2990_v55 = vld [vmem:[#allocation11 + $0x4c] ss:$16 sps:$4 sm:$0xff]  }
 0x4ee   : > { %v2518_v61 = vmul.f32 -1.442695, %v1891_v52  ;;  %v2520_v25 = vmul.f32 -1.442695, %v1893_v1  ;;  %v2989_v52 = vld [vmem:[#allocation11 + $0x44] ss:$16 sps:$4 sm:$0xff]  }
 0x4ef   : > { %v2519_v41 = vmul.f32 -1.442695, %v1892_v28  ;;  %v2992_v1 = vld [vmem:[#allocation11 + $0x48] ss:$16 sps:$4 sm:$0xff]  }
 0x4f0   : > { %2869 = vpow2.f32 %v2518_v61 }
 0x4f1   : > { %2871 = vpow2.f32 %v2519_v41  ;;  %v2991_v41 = vld [vmem:[#allocation11 + $0x40] ss:$16 sps:$4 sm:$0xff]  }
 0x4f2   : > { %2873 = vtanh.f32 %v1894_v7  ;;  %v4252_v7 = vstv %s2240_s10 }
 0x4f3   : > { %2875 = vpow2.f32 %v2520_v25  ;;  %vm2242_vm3 = vcmp.eq.s32.totalorder %v4252_v7, 1 }
 0x4fa   : > { %v2870_v54 = vpop.eup %2869 }
 0x4fb   : > { %v1904_v42 = vadd.f32 1.0, %v2870_v54  ;;  %v2872_v43 = vpop.eup %2871  ;;  %v2993_v54 = vld [vmem:[#allocation11 + $0x64] ss:$16 sps:$4 sm:$0xff]  }
 0x4fc   : > { %v1905_v44 = vadd.f32 1.0, %v2872_v43  ;;  %v2874_v45 = vpop.eup %2873 }
 0x4fd   : > { %2877 = vrcp.f32 %v1904_v42  ;;  %v2876_v46 = vpop.eup %2875  ;;  %v2994_v42 = vld [vmem:[#allocation11 + $0x6c] ss:$16 sps:$4 sm:$0xff]  }
 0x4fe   : > { %2879 = vrcp.f32 %v1905_v44  ;;  %v1906_v10 = vadd.f32 1.0, %v2876_v46  ;;  %v2996_v46 = vld [vmem:[#allocation11 + $0x68] ss:$16 sps:$4 sm:$0xff]  }
 0x500   : > { %2881 = vrcp.f32 %v1906_v10  ;;  %v3001_v10 = vld [vmem:[#allocation11 + $0xa4] ss:$16 sps:$4 sm:$0xff]  }
 0x507   : > { %v2878_v21 = vpop.eup %2877 }
 0x508   : > { %v1915_v50 = vmul.f32 %v2878_v21, %v2874_v45  ;;  %v2880_v9 = vpop.eup %2879  ;;  %v2995_v45 = vld [vmem:[#allocation11 + $0x60] ss:$16 sps:$4 sm:$0xff]   ;;  %v2997_v21 = vld [vmem:[#allocation11 + $0x84] ss:$16 sps:$4 sm:$0xff]  }
 0x509   : > { %v1968_v11 = vpop.f32.mrb[36].mxu0  ;;  %v2009_v12 = vpop.f32.mrb[36].mxu1  ;;  %v1914_v13 = vmul.f32 %v2880_v9, %v4123_v5  ;;  %v3000_v9 = vld [vmem:[#allocation11 + $0x88] ss:$16 sps:$4 sm:$0xff]  }
 0x50a   : > { %v2016_v56 = vadd.f32 %v2521_v48, %v1968_v11  ;;  %v1970_v14 = vpop.f32.mrb[37].mxu0  ;;  %v2011_v16 = vpop.f32.mrb[37].mxu1  ;;  %v2018_v26 = vadd.f32 %v2523_v53, %v2009_v12  ;;  %v2998_v48 = vld [vmem:[#allocation11 + $0x8c] ss:$16 sps:$4 sm:$0xff]   ;;  %v3003_v12 = vld [vmem:[#allocation11 + $0xa0] ss:$16 sps:$4 sm:$0xff]  }
 0x50b   : > { %v2017_v17 = vadd.f32 %v2522_v6, %v1970_v14  ;;  %v1972_v3 = vpop.f32.mrb[38].mxu0  ;;  %v2013_v19 = vpop.f32.mrb[38].mxu1  ;;  %v1916_v20 = vadd.f32 %v1915_v50, %v1914_v13  ;;  %v2019_v29 = vadd.f32 %v2524_v27, %v2011_v16  ;;  %v2999_v6 = vld [vmem:[#allocation11 + $0x80] ss:$16 sps:$4 sm:$0xff]   ;;  %v3002_v11 = vld [vmem:[#allocation11 + $0xac] ss:$16 sps:$4 sm:$0xff]  }
 0x50c   : > { %v2525_v0 = vmul.f32 -1.442695, %v2016_v56  ;;  %v1973_v8 = vpop.f32.mrb[39].mxu0  ;;  %v2014_v51 = vpop.f32.mrb[39].mxu1  ;;  %v2527_v31 = vmul.f32 -1.442695, %v2018_v26 }
 0x50d   : > { %v2526_v2 = vmul.f32 -1.442695, %v2017_v17  ;;  %2883 = vtanh.f32 %v1916_v20  ;;  %v4232_v24 = vsel %vm1923_vm2, %v1916_v20, %v4123_v5  ;;  %v2882_v30 = vpop.eup %2881  ;;  %v3004_v13 = vld [vmem:[#allocation11 + $0xa8] ss:$16 sps:$4 sm:$0xff]   ;;  %v3005_v56 = vld [vmem:[#allocation11 + $0xc4] ss:$16 sps:$4 sm:$0xff]  }
 0x50e   : > { %2885 = vpow2.f32 %v2525_v0  ;;  %v3006_v14 = vld [vmem:[#allocation11 + $0xcc] ss:$16 sps:$4 sm:$0xff]   ;;  %v3008_v3 = vld [vmem:[#allocation11 + $0xc8] ss:$16 sps:$4 sm:$0xff]   ;;  %v3009_v19 = vld [vmem:[#allocation11 + $0xe4] ss:$16 sps:$4 sm:$0xff]  }
 0x50f   : > { %2887 = vpow2.f32 %v2526_v2  ;;  %v3010_v20 = vld [vmem:[#allocation11 + $0xec] ss:$16 sps:$4 sm:$0xff]   ;;  %v3011_v51 = vld [vmem:[#allocation11 + $0xe0] ss:$16 sps:$4 sm:$0xff]   ;;  %v3012_v2 = vld [vmem:[#allocation11 + $0xe8] ss:$16 sps:$4 sm:$0xff]  }
 0x510   : > { %2889 = vtanh.f32 %v2019_v29 }
 0x511   : > { %2891 = vpow2.f32 %v2527_v31 }
 0x517   : > { %v2884_v32 = vpop.eup %2883 }
 0x518   : > { %v2886_v36 = vpop.eup %2885  ;;  %v1918_v23 = vmul.f32 %v2884_v32, %v2882_v30 }
 0x519   : > { %v2029_v33 = vadd.f32 1.0, %v2886_v36  ;;  %v2888_v35 = vpop.eup %2887 }
 0x51a   : > { %v4239_v5 = vsel %vm1923_vm2, %v1918_v23, %v4130_v34  ;;  %v2030_v37 = vadd.f32 1.0, %v2888_v35  ;;  %v2985_v34 = vld [vmem:[#allocation11 + $0x24] ss:$16 sps:$4 sm:$0xff]   ;;  %v2890_v63 = vpop.eup %2889 }
 0x51b   : > { %2893 = vrcp.f32 %v2029_v33  ;;  %v2045_v58 = vpack.c.bf16 %v4239_v5, %v4239_v5  ;;  %v2892_v62 = vpop.eup %2891 }
 0x51c   : > { %2895 = vrcp.f32 %v2030_v37  ;;  %v2031_v25 = vadd.f32 1.0, %v2892_v62 }
 0x51d   : > { %2079 = vmatmul.mubr.bf16.vlgmr.msra.gmra.mrb[40].mxu0 %v2045_v58  ;;  %2120 = vmatmul.mubr.bf16.vlgmr.msra.gmra.mrb[40].mxu1 %v2045_v58 }
 0x51e   : > { %2129 = vmatpush1.bf16.msra.mxu0 %v2983_v57  ;;  %2170 = vmatpush1.bf16.msra.mxu1 %v2984_v22  ;;  %2897 = vrcp.f32 %v2031_v25 }
 0x51f   : > { %2130 = vmatprep.subr.bf16.mxu0 %v2985_v34  ;;  %2171 = vmatprep.subr.bf16.mxu1 %v2986_v40 }
 0x520   : > { %2160 = vmatprep.mubr.bf16.mxu0 %v4489_v4  ;;  %2201 = vmatprep.mubr.bf16.mxu1 %v4489_v4 }
 0x522   : > { %2131 = vmatpush1.bf16.msra.mxu0 %v2987_v49  ;;  %2172 = vmatpush1.bf16.msra.mxu1 %v2988_v38 }
 0x523   : > { %2132 = vmatprep.subr.bf16.mxu0 %v2989_v52  ;;  %2173 = vmatprep.subr.bf16.mxu1 %v2990_v55 }
 0x525   : > { %v2894_v28 = vpop.eup %2893 }
 0x526   : > { %v2040_v61 = vmul.f32 %v2894_v28, %v2890_v63  ;;  %2133 = vmatpush1.bf16.msra.mxu0 %v2991_v41  ;;  %2174 = vmatpush1.bf16.msra.mxu1 %v2992_v1  ;;  %v2896_v4 = vpop.eup %2895 }
 0x527   : > { %2134 = vmatprep.subr.bf16.mxu0 %v2993_v54  ;;  %2175 = vmatprep.subr.bf16.mxu1 %v2994_v42  ;;  %v2039_v43 = vmul.f32 %v2896_v4, %v4166_v18 }
 0x528   : > { %v2898_v16 = vpop.eup %2897 }
 0x529   : > { %v2041_v44 = vadd.f32 %v2040_v61, %v2039_v43 }
 0x52a   : > { %2135 = vmatpush1.bf16.msra.mxu0 %v2995_v45  ;;  %2176 = vmatpush1.bf16.msra.mxu1 %v2996_v46 }
 0x52b   : > { %2136 = vmatprep.subr.bf16.mxu0 %v2997_v21  ;;  %2177 = vmatprep.subr.bf16.mxu1 %v2998_v48  ;;  %2899 = vtanh.f32 %v2041_v44  ;;  %v2244_v50 = vsel %vm2242_vm3, %v2041_v44, %v4166_v18  ;;  %v3007_v18 = vld [vmem:[#allocation11 + $0xc0] ss:$16 sps:$4 sm:$0xff]  }
 0x52c   : > { %2248 = vst [vmem:[#allocation3] sm:$0xff] %v2244_v50 }
 0x52e   : > { %2137 = vmatpush1.bf16.msra.mxu0 %v2999_v6  ;;  %2178 = vmatpush1.bf16.msra.mxu1 %v3000_v9  ;;  %v2531_v9 = vld [vmem:[%s4643_s19] ss:$0 sm:$0xff] }
 0x52f   : > { %2138 = vmatprep.subr.bf16.mxu0 %v3001_v10  ;;  %2179 = vmatprep.subr.bf16.mxu1 %v3002_v11 }
 0x532   : > { %2139 = vmatpush1.bf16.msra.mxu0 %v3003_v12  ;;  %2180 = vmatpush1.bf16.msra.mxu1 %v3004_v13  ;;  %v2532_v12 = vld [vmem:[#allocation6] ss:$0 sm:$0xff] }
 0x533   : > { %2140 = vmatprep.subr.bf16.mxu0 %v3005_v56  ;;  %2181 = vmatprep.subr.bf16.mxu1 %v3006_v14 }
 0x535   : > { %v2900_v17 = vpop.eup %2899 }
 0x536   : > { %2141 = vmatpush1.bf16.msra.mxu0 %v3007_v18  ;;  %2182 = vmatpush1.bf16.msra.mxu1 %v3008_v3  ;;  %v2043_v0 = vmul.f32 %v2900_v17, %v2898_v16 }
 0x537   : > { %2142 = vmatprep.subr.bf16.mxu0 %v3009_v19  ;;  %2183 = vmatprep.subr.bf16.mxu1 %v3010_v20 }
 0x538   : > { %v2243_v8 = vsel %vm2242_vm3, %v2043_v0, %v4215_v39  ;;  %v2044_v53 = vpack.c.bf16 %v2043_v0, %v2043_v0 }
 0x539   : > { %2247 = vst [vmem:[#allocation2] sm:$0xff] %v2243_v8 }
 0x53a   : > { %2143 = vmatpush1.bf16.msra.mxu0 %v3011_v51  ;;  %2184 = vmatpush1.bf16.msra.mxu1 %v3012_v2 }
 0x53d   : > { %2161 = vmatmul.mubr.bf16.vlgmr.msra.gmra.mrb[44].mxu0 %v2044_v53  ;;  %2202 = vmatmul.mubr.bf16.vlgmr.msra.gmra.mrb[44].mxu1 %v2044_v53 }
 0x5f0   : > { %v2080_v26 = vpop.f32.mrb[40].mxu0  ;;  %v2121_v27 = vpop.f32.mrb[40].mxu1 }
 0x5f1   : > { %v2082_v29 = vpop.f32.mrb[41].mxu0  ;;  %v2123_v30 = vpop.f32.mrb[41].mxu1 }
 0x5f2   : > { %v2084_v31 = vpop.f32.mrb[42].mxu0  ;;  %v2125_v32 = vpop.f32.mrb[42].mxu1 }
 0x5f3   : > { %v2085_v36 = vpop.f32.mrb[43].mxu0  ;;  %v2126_v23 = vpop.f32.mrb[43].mxu1 }
 0x610   : > { %v2162_v33 = vpop.f32.mrb[44].mxu0  ;;  %v2203_v35 = vpop.f32.mrb[44].mxu1 }
 0x611   : > { %v2163_v37 = vadd.f32 %v2162_v33, %v2080_v26  ;;  %v2204_v39 = vadd.f32 %v2203_v35, %v2121_v27  ;;  %v2164_v58 = vpop.f32.mrb[45].mxu0  ;;  %v2205_v57 = vpop.f32.mrb[45].mxu1 }
 0x612   : > { %v2165_v22 = vadd.f32 %v2164_v58, %v2082_v29  ;;  %v2206_v34 = vadd.f32 %v2205_v57, %v2123_v30  ;;  %v2166_v40 = vpop.f32.mrb[46].mxu0  ;;  %v2207_v49 = vpop.f32.mrb[46].mxu1 }
 0x613   : > { %v2210_v38 = vadd.f32 %v2163_v37, %v3892_v59  ;;  %v2167_v63 = vpop.f32.mrb[47].mxu0  ;;  %v2208_v52 = vpop.f32.mrb[47].mxu1  ;;  %v2212_v61 = vadd.f32 %v2204_v39, %v3898_v60 }
 0x614   : > { %v2211_v55 = vadd.f32 %v2165_v22, %v3894_v47  ;;  %v2213_v41 = vadd.f32 %v2206_v34, %v3900_v15 }
 0x615   : > { %v2528_v62 = vmul.f32 -1.442695, %v2210_v38  ;;  %v2530_v1 = vmul.f32 -1.442695, %v2212_v61 }
 0x616   : > { %v2529_v28 = vmul.f32 -1.442695, %v2211_v55 }
 0x617   : > { %2901 = vpow2.f32 %v2528_v62 }
 0x618   : > { %2903 = vpow2.f32 %v2529_v28 }
 0x619   : > { %2905 = vtanh.f32 %v2213_v41 }
 0x61a   : > { %2907 = vpow2.f32 %v2530_v1 }
 0x621   : > { %v2902_v4 = vpop.eup %2901 }
 0x622   : > { %v2223_v25 = vadd.f32 1.0, %v2902_v4  ;;  %v2904_v54 = vpop.eup %2903 }
 0x623   : > { %v2224_v59 = vadd.f32 1.0, %v2904_v54  ;;  %v2906_v42 = vpop.eup %2905 }
 0x624   : > { %2909 = vrcp.f32 %v2223_v25  ;;  %v2908_v43 = vpop.eup %2907 }
 0x625   : > { %2911 = vrcp.f32 %v2224_v59  ;;  %v2225_v46 = vadd.f32 1.0, %v2908_v43 }
 0x627   : > { %2913 = vrcp.f32 %v2225_v46 }
 0x62e   : > { %v2910_v47 = vpop.eup %2909 }
 0x62f   : > { %v2234_v44 = vmul.f32 %v2910_v47, %v2906_v42  ;;  %v2912_v45 = vpop.eup %2911 }
 0x630   : > { %v2233_v21 = vmul.f32 %v2912_v45, %v4232_v24 }
 0x631   : > { %v2914_v48 = vpop.eup %2913 }
 0x632   : > { %v2235_v60 = vadd.f32 %v2234_v44, %v2233_v21 }
 0x634   : > { %2915 = vtanh.f32 %v2235_v60  ;;  %v2246_v15 = vsel %vm2242_vm3, %v2235_v60, %v4232_v24 }
 0x635   : > { %2250 = vst [vmem:[#allocation5] sm:$0xff] %v2246_v15 }
 0x63e   : > { %v2916_v50 = vpop.eup %2915 }
 0x63f   : > { %v2237_v6 = vmul.f32 %v2916_v50, %v2914_v48 }
 0x641   : > { %v2245_v10 = vsel %vm2242_vm3, %v2237_v6, %v4239_v5 }
 0x642   : > { %2249 = vst [vmem:[#allocation4] sm:$0xff] %v2245_v10  ;;  %v2258_v11 = vmul.f32 %v2531_v9, %v2245_v10 }
 0x644   : > { %2259 = vadd.xlane.f32.xlu0 %v2258_v11 }
 0x6d1   : > { %v2260_v13 = vpop.xlane.xlu0 %2259 }
 0x6d2   : > { %v2268_v56 = vadd.f32 %v2532_v12, %v2260_v13 }
 0x6d4   : > { %2270 = vst.msk [vmem:[%s3489_s18] sm:$0xff] %vm2269_vm4, %v2268_v56 }
 0x6d5 PF: > { %s4644_s2 = sld [smem:[#allocation17_spill]]  ;;  %s4645_s13 = smov %s4655_s26 }
 0x6d6   : > { %s4646_s26 = smov %s3177_s27  ;;  %s4647_s27 = smov %s3181_s28 }
 0x6d7   : > { %s4648_s28 = smov %s3437_s15  ;;  %s4649_s29 = smov %s3193_s8 }
 0x6d8   : > { %s4650_s30 = smov %s3197_s9  ;;  %s4651_s8 = smov %s4645_s13 }
 0x6d9   : > { %s4652_s9 = smov %s4659_s6 }
 0x6db   : > { %s24_s14 = sadd.s32 1, %s4644_s2  }
 0x6dc   : > { %p21_p11 = scmp.ge.s32.totalorder %s24_s14, 6   ;;  %s4653_s6 = smov %s24_s14 }
 0x6de   :  { %23 = sbr.rel (!%p21_p11) target bundleno = 11 (0xb), region = 107 }
 0x6e5   :  { %2290 = vsyncpa [#allocation8], 1 }
 0x6e6   :  { %2292 = vsyncpa [#allocation8 + $0x1], 1 }
 0x6e7   :  { %2293 = vsyncpa [#allocation10], 1 }
 0x6e8   :  { %2294 = vsyncpa [#allocation13], 1 }

// kernel: tpu_custom_call.1
= control target key start
LH: loop header
LB: loop body
LE: loop exit
PB: predicated region body
PF: predicated region fallthrough
CT: control target
= control target key end

     0   :  { %s4301_s0 = inlined_call_operand.hbm [shape: f32[8,16,512], index: 0, kind: input, shape index: {}]   ;;  %s4302_s1 = inlined_call_operand.hbm [shape: bf16[128,512], index: 1, kind: input, shape index: {}]   ;;  %s4303_s2 = inlined_call_operand.hbm [shape: bf16[128,512], index: 2, kind: input, shape index: {}]   ;;  %s4304_s3 = inlined_call_operand.hbm [shape: bf16[128,512], index: 3, kind: input, shape index: {}]   ;;  %s4305_s4 = inlined_call_operand.vmem [shape: f32[1,512], index: 4, kind: input, shape index: {}]   ;;  %s4306_s5 = inlined_call_operand.vmem [shape: f32[1,128], index: 5, kind: input, shape index: {}]   ;;  %s4307_s6 = inlined_call_operand.<no memory space> [shape: f32[1,1], index: 6, kind: input, shape index: {}]   ;;  %s4308_s7 = inlined_call_operand.vmem [shape: f32[16,1], index: 7, kind: output, shape index: {}]  }
   0x1   :  { %4445 = sst [smem:[#allocation71_spill]] %s4302_s1  ;;  %v12_v0 = vstv %s4307_s6 }
   0x2   :  { %4446 = sst [smem:[#allocation72_spill]] %s4303_s2  ;;  %13 = vst [vmem:[#allocation6] sm:$0x1] %v12_v0 }
   0x3   :  { %4447 = sst [smem:[#allocation73_spill]] %s4306_s5 }
   0x4   :  { %14 = vsyncpa [#allocation8], 0 }
   0x5   :  { %16 = vsyncpa [#allocation8 + $0x1], 0 }
   0x6   :  { %17 = vsyncpa [#allocation10], 0 }
   0x7   :  { %18 = vsyncpa [#allocation13], 0  ;;  %s3257_s26 = smov 0   ;;  %s3259_s27 = smov 0  }
   0x8   :  { %s3261_s28 = smov 0   ;;  %s3263_s29 = smov 0  }
   0x9   :  { %s3265_s30 = smov 0   ;;  %s3267_s8 = smov 0  }
   0xa   :  { %s3269_s9 = smov 0   ;;  %s3271_s6 = smov 0  }
   0xb LB: > { %4448 = sst [smem:[#allocation17_spill]] %s3201_s6  ;;  %s2379_s10 = sadd.s32 4294967295, %s3201_s6   ;;  %s3201_s6 = sphi %s3271_s6, %s4653_s6   ;;  %s3197_s9 = sphi %s3269_s9, %s4652_s9   ;;  %s3193_s8 = sphi %s3267_s8, %s4651_s8   ;;  %s3189_s30 = sphi %s3265_s30, %s4650_s30   ;;  %s3185_s29 = sphi %s3263_s29, %s4649_s29   ;;  %s3181_s28 = sphi %s3261_s28, %s4648_s28   ;;  %s3177_s27 = sphi %s3259_s27, %s4647_s27   ;;  %s3173_s26 = sphi %s3257_s26, %s4646_s26  }
   0xc   : > { %p52_p0 = scmp.ne.s32.totalorder %s3181_s28, %s3177_s27  ;;  %p53_p1 = scmp.eq.s32.totalorder %s3201_s6, 0 }
   0xd   : > { %p58_p2 = scmp.ne.s32.totalorder %s3177_s27, %s3173_s26  ;;  %p3301_p3 = scmp.eq.s32.totalorder %s2379_s10, 0 }
   0xe   : > { %p54_p4 = por %p53_p1, %p52_p0  ;;  %p2381_p5 = scmp.ge.s32.totalorder %s3201_s6, 1 }
   0xf   : > { %s4449_s12 = scalar_select %p3301_p3, 1, 0 }
  0x10   : > { %p3308_p6 = por %p3301_p3, %p58_p2  ;;  %p221_p7 = scmp.lt.s32.totalorder %s3201_s6, 5 }
  0x11   : > { %s3203_s15 = smov [#allocation9]   ;;  %p2567_p10 = scmp.lt.s32.totalorder %s3201_s6, 4 }
  0x12   : > { %s4450_s13 = scalar_select %p3308_p6, 1, 0 }
  0x13   : > { %p3313_p8 = pnand %p2381_p5, %p221_p7  ;;  %s233_s16 = sshll.u32 %s3203_s15, 4  ;;  %s3317_s16 = int_to_ptr.vmem [resolvable:$true] %s233_s16 }
  0x14   : > { %p3328_p12 = pnand %p2567_p10, %p54_p4  ;;  %s3204_s19 = smov [#allocation11]  }
  0x15   : > { %s4451_s14 = scalar_select %p3313_p8, 1, 0 }
  0x16   : > { %p2550_p9 = pneg %p3313_p8  ;;  %s246_s20 = sshll.u32 %s3204_s19, 4  ;;  %s3332_s20 = int_to_ptr.vmem [resolvable:$true] %s246_s20 }
  0x17   : > { %s4453_s18 = scalar_select %p3328_p12, 1, 0 }
  0x18   : > { %p3324_p11 = pnand %p2550_p9, %p3301_p3  ;;  %s4454_s1 = sld [smem:[#allocation71_spill]] }
  0x1a   : > { %p3342_p0 = pneg %p3324_p11 }
  0x1e   : > { %s3013_s23 = scalar_lea.hbm %s4454_s1, 4096 }
  0x1f   : > { %p3014_p13 = scmp.ne.s32.totalorder %s4454_s1, %s3013_s23  ;;  %p3020_p4 = scmp.lt.u32.totalorder %s3013_s23, %s4454_s1 }
  0x21   : > { %p3016_p1 = pnand %p3342_p0, %p3014_p13 }
  0x23   : > { %p3017_p2 = pneg %p3016_p1 }
  0x25   : > { %p3022_p5 = pnand %p3020_p4, %p3017_p2 }
  0x27   : > { %3025 = shalt.err (!%p3022_p5)
}
  0x28   : > { %s3026_s19 = scalar_lea.vmem %s3317_s16, 4096  ;;  %p3034_p3 = scmp.lt.s32.totalorder %s3317_s16, %s3317_s16 }
  0x29   : > { %p3027_p7 = scmp.ne.s32.totalorder %s3317_s16, %s3026_s19  ;;  %p3035_p6 = scmp.lt.s32.totalorder %s3026_s19, %s3026_s19 }
  0x2b   : > { %p3029_p9 = pnand %p3027_p7, %p3342_p0  ;;  %p3036_p13 = por %p3035_p6, %p3034_p3 }
  0x2d   : > { %p3030_p10 = pneg %p3029_p9 }
  0x2f   : > { %p3037_p1 = pnand %p3036_p13, %p3030_p10 }
  0x31   : > { %3040 = shalt.err (!%p3037_p1)
}
  0x32   : > { %s3205_s21 = smov 256   ;;  %s3206_s22 = smov 16  }
  0x33   : > { %2553 = dma.hbm_to_vmem [thread:$0]  (!%p3324_p11), %s4454_s1, 4096, %s3317_s16, [#allocation10], %s3205_s21, %s3205_s21, %s3206_s22  }
  0x34   : > { %s4456_s2 = sld [smem:[#allocation72_spill]] }
  0x3a   : > { %s3041_s15 = scalar_lea.hbm %s4456_s2, 4096 }
  0x3b   : > { %p3042_p3 = scmp.ne.s32.totalorder %s4456_s2, %s3041_s15  ;;  %p3048_p4 = scmp.lt.u32.totalorder %s3041_s15, %s4456_s2 }
  0x3d   : > { %p3044_p6 = pnand %p3042_p3, %p3342_p0 }
  0x3f   : > { %p3045_p2 = pneg %p3044_p6 }
  0x41   : > { %p3050_p5 = pnand %p3048_p4, %p3045_p2 }
  0x43   : > { %3053 = shalt.err (!%p3050_p5)
}
  0x44   : > { %s3054_s16 = scalar_lea.vmem %s3332_s20, 4096  ;;  %p3062_p13 = scmp.lt.s32.totalorder %s3332_s20, %s3332_s20 }
  0x45   : > { %p3055_p7 = scmp.ne.s32.totalorder %s3332_s20, %s3054_s16  ;;  %p3063_p1 = scmp.lt.s32.totalorder %s3054_s16, %s3054_s16 }
  0x47   : > { %p3057_p9 = pnand %p3055_p7, %p3342_p0  ;;  %p3064_p3 = por %p3063_p1, %p3062_p13 }
  0x49   : > { %p3058_p10 = pneg %p3057_p9 }
  0x4b   : > { %p3065_p6 = pnand %p3064_p3, %p3058_p10 }
  0x4d   : > { %3068 = shalt.err (!%p3065_p6)
}
  0x4e   : > { %2556 = dma.hbm_to_vmem [thread:$0]  (!%p3324_p11), %s4456_s2, 4096, %s3332_s20, [#allocation10], %s3205_s21, %s3205_s21, %s3206_s22  }
  0x4f   : > { %s3207_s11 = smov [#allocation12]   ;;  %s3069_s10 = scalar_lea.hbm %s4304_s3, 4096 }
  0x50   : > { %s259_s23 = sshll.u32 %s3207_s11, 4  ;;  %p3070_p2 = scmp.ne.s32.totalorder %s4304_s3, %s3069_s10  ;;  %s260_s23 = int_to_ptr.vmem [resolvable:$true] %s259_s23 }
  0x51   : > { %p3076_p7 = scmp.lt.u32.totalorder %s3069_s10, %s4304_s3 }
  0x52   : > { %p3072_p4 = pnand %p3070_p2, %p3342_p0 }
  0x54   : > { %p3073_p5 = pneg %p3072_p4 }
  0x56   : > { %p3078_p9 = pnand %p3076_p7, %p3073_p5 }
  0x58   : > { %3081 = shalt.err (!%p3078_p9)
}
  0x59   : > { %s3082_s20 = scalar_lea.vmem %s260_s23, 4096  ;;  %p3090_p3 = scmp.lt.s32.totalorder %s260_s23, %s260_s23 }
  0x5a   : > { %p3083_p10 = scmp.ne.s32.totalorder %s260_s23, %s3082_s20  ;;  %p3091_p6 = scmp.lt.s32.totalorder %s3082_s20, %s3082_s20 }
  0x5c   : > { %p3085_p13 = pnand %p3083_p10, %p3342_p0  ;;  %p3092_p8 = por %p3091_p6, %p3090_p3 }
  0x5e   : > { %p3086_p1 = pneg %p3085_p13 }
  0x60   : > { %p3093_p12 = pnand %p3092_p8, %p3086_p1 }
  0x62   : > { %3096 = shalt.err (!%p3093_p12)
}
  0x63   : > { %2559 = dma.hbm_to_vmem [thread:$0]  (!%p3324_p11), %s4304_s3, 4096, %s260_s23, [#allocation13], %s3205_s21, %s3205_s21, %s3206_s22  }
  0x64   : > { %s33_s26 = sadd.s32 1, %s3193_s8  ;;  %s36_s6 = sadd.s32 1, %s3197_s9 }
  0x65   : > { %p34_p8 = scmp.ge.s32.totalorder %s33_s26, 2  ;;  %s282_s11 = sand.u32 1, %s3181_s28  }
  0x66   : > { %s2386_s17 = sshll.u32 %s282_s11, 7  ;;  %s2388_s25 = sshll.u32 %s3197_s9, 2 }
  0x67   : > { %s4655_s26 = smov (%p34_p8, %s33_s26), 0  ;;  %s4657_s6 = smov (!%p34_p8, %s36_s6), %s3197_s9 }
  0x68   : > { %s40_s24 = ssub.s32 %s3193_s8, %s4655_s26  ;;  %p38_p12 = scmp.ge.s32.totalorder %s4657_s6, 2 }
  0x69   : > { %s2535_s10 = sshll.u32 %s3193_s8, 5  ;;  %s286_s15 = scalar_lea.vmem [#allocation7], %s2386_s17 }
  0x6a   : > { %s296_s21 = sshll.u32 %s286_s15, 4  ;;  %s4659_s6 = smov (%p38_p12, %s4657_s6), 0  ;;  %s3425_s21 = int_to_ptr.vmem [resolvable:$true] %s296_s21 }
  0x6b   : > { %s293_s22 = sadd.s32 %s2535_s10, %s2388_s25  ;;  %s41_s23 = ssub.s32 %s3197_s9, %s4659_s6 }
  0x6c   : > { %s2390_s19 = sshll.u32 %s293_s22, 7  ;;  %s42_s16 = sor.u32 %s41_s23, %s40_s24 }
  0x6d   : > { %s3432_s5 = scalar_lea.hbm %s4301_s0, %s2390_s19  ;;  %p43_p11 = scmp.eq.s32.totalorder %s42_s16, 0 }
  0x6e   : > { %s4457_s17 = sadd.s32 1, %s3181_s28  ;;  %s3439_s2 = scalar_lea.sflag [#allocation8], %s282_s11 }
  0x6f   : > { %s3437_s15 = scalar_select %p43_p11, %s3181_s28, %s4457_s17  }
  0x70   : > { %s3097_s25 = scalar_lea.hbm %s3432_s5, 2048  ;;  %p4458_p2 = scmp.ne.s32.totalorder %s4453_s18, 0 }
  0x71   : > { %p3098_p0 = scmp.ne.s32.totalorder %s3432_s5, %s3097_s25  ;;  %s3102_s22 = scalar_lea.hbm %s4301_s0, 8192 }
  0x72   : > { %p3099_p4 = pneg %p4458_p2  ;;  %p3103_p9 = scmp.lt.u32.totalorder %s3432_s5, %s4301_s0 }
  0x73   : > { %p3104_p10 = scmp.lt.u32.totalorder %s3102_s22, %s3097_s25  ;;  %p3106_p1 = scmp.lt.u32.totalorder %s3097_s25, %s3432_s5 }
  0x74   : > { %p3100_p5 = pnand %p3099_p4, %p3098_p0 }
  0x75   : > { %p3105_p13 = por %p3104_p10, %p3103_p9 }
  0x76   : > { %p3101_p7 = pneg %p3100_p5 }
  0x77   : > { %p3107_p3 = por %p3106_p1, %p3105_p13 }
  0x79   : > { %p3108_p6 = pnand %p3107_p3, %p3101_p7 }
  0x7b   : > { %3111 = shalt.err (!%p3108_p6)
}
  0x7c   : > { %s3112_s11 = scalar_lea.vmem %s3425_s21, 2048  ;;  %s3208_s16 = smov [#allocation7]  }
  0x7d   : > { %p3113_p8 = scmp.ne.s32.totalorder %s3425_s21, %s3112_s11  ;;  %s3117_s20 = sshll.u32 %s3208_s16, 4  ;;  %s3118_s20 = int_to_ptr.vmem [resolvable:$false] %s3117_s20 }
  0x7e   : > { %s3119_s1 = scalar_lea.vmem %s3118_s20, 4096  ;;  %p3120_p0 = scmp.lt.s32.totalorder %s3425_s21, %s3118_s20 }
  0x7f   : > { %p3115_p12 = pnand %p3113_p8, %p3099_p4  ;;  %p3121_p5 = scmp.lt.s32.totalorder %s3119_s1, %s3112_s11 }
  0x81   : > { %p3116_p11 = pneg %p3115_p12  ;;  %p3122_p9 = por %p3121_p5, %p3120_p0 }
  0x83   : > { %p3123_p10 = pnand %p3122_p9, %p3116_p11 }
  0x85   : > { %3126 = shalt.err (!%p3123_p10)
}
  0x86   : > { %s3209_s17 = smov 1024   ;;  %s3210_s25 = smov 512  }
  0x87   : > { %s3211_s24 = smov 32   ;;  %p4459_p4 = scmp.ne.s32.totalorder %s4451_s14, 0 }
  0x88   : > { %2563 = dma.hbm_to_vmem [thread:$0]  (!%p4458_p2), %s3432_s5, 2048, %s3425_s21, %s3439_s2, %s3209_s17, %s3210_s25, %s3211_s24  }
  0x89   : > { %308 = sbr.rel (%p4459_p4) target bundleno = 1749 (0x6d5), region = 48 }
  0x90   : > { %s310_s10 = sand.u32 1, %s3177_s27   ;;  %p4460_p7 = scmp.ne.s32.totalorder %s4450_s13, 0 }
  0x91   : > { %s2392_s22 = sshll.u32 %s310_s10, 7  ;;  %s311_s23 = scalar_lea.sflag [#allocation8], %s310_s10 }
  0x92   : > { %s3470_s19 = scalar_lea.vmem [#allocation7], %s2392_s22 }
  0x93   : > { %3160 = dma.done.wait (%p4460_p7), %s311_s23, 2048  }
  0x94   : > { %3162 = vsyncadd (%p4460_p7), %s311_s23, 4294965248  ;;  %p4461_p13 = scmp.ne.s32.totalorder %s4449_s12, 0 }
  0x96   : > { %3164 = dma.done.wait (%p4461_p13), [#allocation10], 8192  }
  0x97   : > { %3166 = vsyncadd (%p4461_p13), [#allocation10], 4294959104 }
  0x98   : > { %3168 = dma.done.wait (%p4461_p13), [#allocation13], 4096  }
  0x99   : > { %3170 = vsyncadd (%p4461_p13), [#allocation13], 4294963200  ;;  %p357_p2 = scmp.lt.s32.totalorder %s3189_s30, 1  ;;  %p2397_p1 = scmp.ne.s32.totalorder %s3185_s29, 0 }
  0x9a   : > { %v3212_v1 = vmov (!%p2397_p1), 0.0  }
  0x9b   : > { %s4661_s30 = smov (!%p357_p2, %s3189_s30), 1  ;;  %365 = sbr.rel (%p2397_p1) target bundleno = 162 (0xa2), region = 68 }
  0x9c   : > { %s2396_s2 = sshll.u32 %s4661_s30, 3  ;;  %366 = vst [vmem:[#allocation2] sm:$0xff] (!%p2397_p1), %v3212_v1  ;;  %367 = vst [vmem:[#allocation3] sm:$0xff] (!%p2397_p1), %v3212_v1 }
  0x9d   : > { %s3489_s18 = scalar_lea.vmem %s4308_s7, %s2396_s2  ;;  %368 = vst [vmem:[#allocation4] sm:$0xff] (!%p2397_p1), %v3212_v1  ;;  %369 = vst [vmem:[#allocation5] sm:$0xff] (!%p2397_p1), %v3212_v1 }
  0xa2 PF: > { %v3492_v2 = vld [vmem:[#allocation9 + $0x4] ss:$16 sps:$4 sm:$0xff]   ;;  %v3494_v3 = vld [vmem:[#allocation9] ss:$16 sps:$4 sm:$0xff]   ;;  %v4315_v4 = vmov 0   ;;  %s3821_s30 = sshll.u32 %s3185_s29, 2 }
  0xa3   : > { %690 = vmatprep.mubr.bf16.mxu0 %v4315_v4  ;;  %731 = vmatprep.mubr.bf16.mxu1 %v4315_v4  ;;  %v3499_v5 = vld [vmem:[#allocation9 + $0x24] ss:$16 sps:$4 sm:$0xff]   ;;  %v3502_v6 = vld [vmem:[#allocation9 + $0x20] ss:$16 sps:$4 sm:$0xff]   ;;  %v3507_v8 = vld [vmem:[#allocation9 + $0xc] ss:$16 sps:$4 sm:$0xff]  }
  0xa4   : > { %658 = vmatprep.subr.bf16.mxu0 %v3492_v2  ;;  %v3505_v7 = vld [vmem:[#allocation9 + $0x44] ss:$16 sps:$4 sm:$0xff]   ;;  %v3509_v9 = vld [vmem:[#allocation9 + $0x8] ss:$16 sps:$4 sm:$0xff]   ;;  %v3512_v10 = vld [vmem:[#allocation9 + $0x40] ss:$16 sps:$4 sm:$0xff]   ;;  %699 = vmatprep.subr.bf16.mxu1 %v3507_v8 }
  0xa5   : > { %659 = vmatpush1.bf16.msra.mxu0 %v3494_v3  ;;  %v3516_v11 = vld [vmem:[#allocation9 + $0x64] ss:$16 sps:$4 sm:$0xff]   ;;  %700 = vmatpush1.bf16.msra.mxu1 %v3509_v9  ;;  %v3519_v12 = vld [vmem:[#allocation9 + $0x2c] ss:$16 sps:$4 sm:$0xff]   ;;  %v3521_v13 = vld [vmem:[#allocation9 + $0x28] ss:$16 sps:$4 sm:$0xff]  }
  0xa6   : > { %660 = vmatprep.subr.bf16.mxu0 %v3499_v5  ;;  %701 = vmatprep.subr.bf16.mxu1 %v3519_v12  ;;  %v3525_v14 = vld [vmem:[#allocation9 + $0x60] ss:$16 sps:$4 sm:$0xff]   ;;  %v3527_v15 = vld [vmem:[#allocation9 + $0x84] ss:$16 sps:$4 sm:$0xff]   ;;  %v3529_v16 = vld [vmem:[#allocation9 + $0x4c] ss:$16 sps:$4 sm:$0xff]  }
  0xa7   : > { %v3533_v17 = vld [vmem:[#allocation9 + $0x48] ss:$16 sps:$4 sm:$0xff]   ;;  %v3536_v18 = vld [vmem:[#allocation9 + $0x6c] ss:$16 sps:$4 sm:$0xff]   ;;  %v3539_v19 = vld [vmem:[#allocation9 + $0x80] ss:$16 sps:$4 sm:$0xff]  }
  0xa8   : > { %v3542_v20 = vld [vmem:[#allocation9 + $0xa4] ss:$16 sps:$4 sm:$0xff]   ;;  %v3545_v21 = vld [vmem:[#allocation9 + $0x68] ss:$16 sps:$4 sm:$0xff]   ;;  %v3548_v22 = vld [vmem:[#allocation9 + $0x8c] ss:$16 sps:$4 sm:$0xff]  }
  0xa9   : > { %661 = vmatpush1.bf16.msra.mxu0 %v3502_v6  ;;  %702 = vmatpush1.bf16.msra.mxu1 %v3521_v13  ;;  %v3550_v23 = vld [vmem:[#allocation9 + $0xa0] ss:$16 sps:$4 sm:$0xff]   ;;  %v3553_v24 = vld [vmem:[#allocation9 + $0xc4] ss:$16 sps:$4 sm:$0xff]   ;;  %v3557_v25 = vld [vmem:[#allocation9 + $0x88] ss:$16 sps:$4 sm:$0xff]  }
  0xaa   : > { %662 = vmatprep.subr.bf16.mxu0 %v3505_v7  ;;  %703 = vmatprep.subr.bf16.mxu1 %v3529_v16  ;;  %v3560_v26 = vld [vmem:[#allocation9 + $0xac] ss:$16 sps:$4 sm:$0xff]   ;;  %v3562_v27 = vld [vmem:[#allocation9 + $0xc0] ss:$16 sps:$4 sm:$0xff]   ;;  %v3565_v28 = vld [vmem:[#allocation9 + $0xe4] ss:$16 sps:$4 sm:$0xff]  }
  0xab   : > { %v3569_v29 = vld [vmem:[#allocation9 + $0xa8] ss:$16 sps:$4 sm:$0xff]   ;;  %v3572_v30 = vld [vmem:[#allocation9 + $0xcc] ss:$16 sps:$4 sm:$0xff]   ;;  %v3574_v31 = vld [vmem:[#allocation9 + $0xe0] ss:$16 sps:$4 sm:$0xff]  }
  0xac   : > { %v3576_v32 = vld [vmem:[#allocation2] sm:$0xff]  ;;  %v3579_v33 = vld [vmem:[#allocation9 + $0xc8] ss:$16 sps:$4 sm:$0xff]   ;;  %p1282_p3 = scmp.lt.s32.totalorder %s3821_s30, 7  ;;  %s1600_s5 = sadd.s32 1, %s3821_s30  ;;  %vm2269_vm4 = vcmask 7168  }
  0xad   : > { %663 = vmatpush1.bf16.msra.mxu0 %v3512_v10  ;;  %704 = vmatpush1.bf16.msra.mxu1 %v3533_v17  ;;  %v3583_v34 = vld [vmem:[#allocation12 + $0x4] ss:$16 sps:$4 sm:$0xff]   ;;  %v3586_v35 = vld [vmem:[#allocation9 + $0xec] ss:$16 sps:$4 sm:$0xff]   ;;  %v497_v36 = vpack.c.bf16 %v3576_v32, %v3576_v32  ;;  %v3590_v37 = vld [vmem:[#allocation9 + $0xe8] ss:$16 sps:$4 sm:$0xff]  }
  0xae   : > { %664 = vmatprep.subr.bf16.mxu0 %v3516_v11  ;;  %705 = vmatprep.subr.bf16.mxu1 %v3536_v18  ;;  %v3593_v38 = vld [vmem:[#allocation12] ss:$16 sps:$4 sm:$0xff]   ;;  %v3597_v39 = vld [vmem:[#allocation12 + $0x24] ss:$16 sps:$4 sm:$0xff]   ;;  %v3600_v40 = vld [vmem:[#allocation12 + $0xc] ss:$16 sps:$4 sm:$0xff]  }
  0xaf   : > { %v3602_v41 = vld [vmem:[#allocation12 + $0x20] ss:$16 sps:$4 sm:$0xff]   ;;  %v3604_v42 = vld [vmem:[#allocation12 + $0x8] ss:$16 sps:$4 sm:$0xff]   ;;  %v3606_v43 = vld [vmem:[#allocation12 + $0x44] ss:$16 sps:$4 sm:$0xff]  }
  0xb0   : > { %v3609_v44 = vld [vmem:[#allocation12 + $0x2c] ss:$16 sps:$4 sm:$0xff]   ;;  %v3615_v45 = vld [vmem:[#allocation12 + $0x40] ss:$16 sps:$4 sm:$0xff]   ;;  %v3617_v46 = vld [vmem:[#allocation12 + $0x28] ss:$16 sps:$4 sm:$0xff]  }
  0xb1   : > { %665 = vmatpush1.bf16.msra.mxu0 %v3525_v14  ;;  %706 = vmatpush1.bf16.msra.mxu1 %v3545_v21  ;;  %v3619_v47 = vld [vmem:[#allocation12 + $0x64] ss:$16 sps:$4 sm:$0xff]   ;;  %v3622_v48 = vld [vmem:[#allocation12 + $0x4c] ss:$16 sps:$4 sm:$0xff]   ;;  %v3627_v49 = vld [vmem:[#allocation12 + $0x60] ss:$16 sps:$4 sm:$0xff]  }
  0xb2   : > { %666 = vmatprep.subr.bf16.mxu0 %v3527_v15  ;;  %707 = vmatprep.subr.bf16.mxu1 %v3548_v22  ;;  %4462 = vst [vmem:[#allocation18_spill] sm:$0xff] %v3619_v47  ;;  %4463 = vst [vmem:[#allocation19_spill] sm:$0xff] %v3627_v49  ;;  %v3630_v50 = vld [vmem:[#allocation12 + $0x48] ss:$16 sps:$4 sm:$0xff]   ;;  %v3632_v51 = vld [vmem:[#allocation12 + $0x84] ss:$16 sps:$4 sm:$0xff]  }
  0xb3   : > { %4464 = vst [vmem:[#allocation20_spill] sm:$0xff] %v3632_v51  ;;  %v3635_v52 = vld [vmem:[#allocation12 + $0x6c] ss:$16 sps:$4 sm:$0xff]   ;;  %v3640_v53 = vld [vmem:[#allocation12 + $0x68] ss:$16 sps:$4 sm:$0xff]   ;;  %p3924_p6 = scmp.lt.s32.totalorder %s1600_s5, 7 }
  0xb4   : > { %4465 = vst [vmem:[#allocation21_spill] sm:$0xff] %v3635_v52  ;;  %4466 = vst [vmem:[#allocation22_spill] sm:$0xff] %v3640_v53  ;;  %v3647_v54 = vld [vmem:[#allocation12 + $0x80] ss:$16 sps:$4 sm:$0xff]   ;;  %v3649_v55 = vld [vmem:[#allocation12 + $0x8c] ss:$16 sps:$4 sm:$0xff]  }
  0xb5   : > { %667 = vmatpush1.bf16.msra.mxu0 %v3539_v19  ;;  %708 = vmatpush1.bf16.msra.mxu1 %v3557_v25  ;;  %4467 = vst [vmem:[#allocation23_spill] sm:$0xff] %v3647_v54  ;;  %4468 = vst [vmem:[#allocation24_spill] sm:$0xff] %v3649_v55  ;;  %v3651_v56 = vld [vmem:[#allocation12 + $0x88] ss:$16 sps:$4 sm:$0xff]   ;;  %v3656_v57 = vld [vmem:[#allocation12 + $0xa4] ss:$16 sps:$4 sm:$0xff]  }
  0xb6   : > { %668 = vmatprep.subr.bf16.mxu0 %v3542_v20  ;;  %709 = vmatprep.subr.bf16.mxu1 %v3560_v26  ;;  %4469 = vst [vmem:[#allocation25_spill] sm:$0xff] %v3651_v56  ;;  %4470 = vst [vmem:[#allocation26_spill] sm:$0xff] %v3656_v57  ;;  %v3658_v58 = vld [vmem:[#allocation12 + $0xa0] ss:$16 sps:$4 sm:$0xff]   ;;  %v3660_v59 = vld [vmem:[#allocation12 + $0xac] ss:$16 sps:$4 sm:$0xff]  }
  0xb7   : > { %4471 = vst [vmem:[#allocation27_spill] sm:$0xff] %v3658_v58  ;;  %4472 = vst [vmem:[#allocation28_spill] sm:$0xff] %v3660_v59  ;;  %v3663_v60 = vld [vmem:[#allocation12 + $0xa8] ss:$16 sps:$4 sm:$0xff]   ;;  %v3668_v61 = vld [vmem:[#allocation12 + $0xc4] ss:$16 sps:$4 sm:$0xff]  }
  0xb8   : > { %4473 = vst [vmem:[#allocation29_spill] sm:$0xff] %v3663_v60  ;;  %4474 = vst [vmem:[#allocation30_spill] sm:$0xff] %v3668_v61  ;;  %v3670_v62 = vld [vmem:[#allocation12 + $0xc0] ss:$16 sps:$4 sm:$0xff]   ;;  %v3672_v63 = vld [vmem:[#allocation12 + $0xcc] ss:$16 sps:$4 sm:$0xff]  }
  0xb9   : > { %669 = vmatpush1.bf16.msra.mxu0 %v3550_v23  ;;  %710 = vmatpush1.bf16.msra.mxu1 %v3569_v29  ;;  %4475 = vst [vmem:[#allocation31_spill] sm:$0xff] %v3670_v62  ;;  %4476 = vst [vmem:[#allocation32_spill] sm:$0xff] %v3672_v63  ;;  %v3675_v0 = vld [vmem:[#allocation12 + $0xc8] ss:$16 sps:$4 sm:$0xff]   ;;  %v3680_v1 = vld [vmem:[#allocation12 + $0xe4] ss:$16 sps:$4 sm:$0xff]  }
  0xba   : > { %670 = vmatprep.subr.bf16.mxu0 %v3553_v24  ;;  %711 = vmatprep.subr.bf16.mxu1 %v3572_v30  ;;  %4477 = vst [vmem:[#allocation33_spill] sm:$0xff] %v3675_v0  ;;  %4478 = vst [vmem:[#allocation34_spill] sm:$0xff] %v3680_v1  ;;  %s1283_s29 = scalar_select %p1282_p3, 1, 0 }
  0xbb   : > { %s1602_s16 = scalar_select %p3924_p6, 1, 0 }
  0xbc   : > { %s1919_s20 = sadd.s32 2, %s3821_s30  ;;  %s2238_s25 = sadd.s32 3, %s3821_s30 }
  0xbd   : > { %671 = vmatpush1.bf16.msra.mxu0 %v3562_v27  ;;  %712 = vmatpush1.bf16.msra.mxu1 %v3579_v33  ;;  %p4137_p8 = scmp.lt.s32.totalorder %s1919_s20, 7  ;;  %p4244_p12 = scmp.lt.s32.totalorder %s2238_s25, 7 }
  0xbe   : > { %672 = vmatprep.subr.bf16.mxu0 %v3565_v28  ;;  %713 = vmatprep.subr.bf16.mxu1 %v3586_v35 }
  0xbf   : > { %s1921_s17 = scalar_select %p4137_p8, 1, 0 }
  0xc0   : > { %s2240_s10 = scalar_select %p4244_p12, 1, 0 }
  0xc1   : > { %673 = vmatpush1.bf16.msra.mxu0 %v3574_v31  ;;  %714 = vmatpush1.bf16.msra.mxu1 %v3590_v37 }
  0xc2   : > { %930 = vmatprep.subr.bf16.mxu0 %v3583_v34  ;;  %971 = vmatprep.subr.bf16.mxu1 %v3600_v40 }
  0xc4   : > { %691 = vmatmul.mubr.bf16.vlgmr.msra.gmra.mrb[0].mxu0 %v497_v36  ;;  %732 = vmatmul.mubr.bf16.vlgmr.msra.gmra.mrb[0].mxu1 %v497_v36  ;;  %v3682_v36 = vld [vmem:[#allocation12 + $0xe0] ss:$16 sps:$4 sm:$0xff]  }
  0xc5   : > { %931 = vmatpush1.bf16.msra.mxu0 %v3593_v38  ;;  %962 = vmatprep.mubr.bf16.mxu0 %v4315_v4  ;;  %4479 = vst [vmem:[#allocation35_spill] sm:$0xff] %v3682_v36 }
  0xc6   : > { %932 = vmatprep.subr.bf16.mxu0 %v3597_v39  ;;  %972 = vmatpush1.bf16.msra.mxu1 %v3604_v42 }
  0xc7   : > { %973 = vmatprep.subr.bf16.mxu1 %v3609_v44  ;;  %1003 = vmatprep.mubr.bf16.mxu1 %v4315_v4  ;;  %v3684_v4 = vld [vmem:[#allocation12 + $0xec] ss:$16 sps:$4 sm:$0xff]  }
  0xc8   : > { %4480 = vst [vmem:[#allocation36_spill] sm:$0xff] %v3684_v4 }
  0xc9   : > { %933 = vmatpush1.bf16.msra.mxu0 %v3602_v41 }
  0xca   : > { %934 = vmatprep.subr.bf16.mxu0 %v3606_v43  ;;  %974 = vmatpush1.bf16.msra.mxu1 %v3617_v46 }
  0xcb   : > { %975 = vmatprep.subr.bf16.mxu1 %v3622_v48 }
  0xcd   : > { %935 = vmatpush1.bf16.msra.mxu0 %v3615_v45 }
  0xce   : > { %936 = vmatprep.subr.bf16.mxu0 %v3619_v47  ;;  %976 = vmatpush1.bf16.msra.mxu1 %v3630_v50 }
  0xcf   : > { %977 = vmatprep.subr.bf16.mxu1 %v3635_v52 }
  0xd1   : > { %937 = vmatpush1.bf16.msra.mxu0 %v3627_v49 }
  0xd2   : > { %938 = vmatprep.subr.bf16.mxu0 %v3632_v51  ;;  %978 = vmatpush1.bf16.msra.mxu1 %v3640_v53 }
  0xd3   : > { %979 = vmatprep.subr.bf16.mxu1 %v3649_v55 }
  0xd5   : > { %939 = vmatpush1.bf16.msra.mxu0 %v3647_v54 }
  0xd6   : > { %980 = vmatpush1.bf16.msra.mxu1 %v3651_v56  ;;  %940 = vmatprep.subr.bf16.mxu0 %v3656_v57  ;;  %v3768_v57 = vld [vmem:[#allocation11 + $0xcc] ss:$16 sps:$4 sm:$0xff]  }
  0xd7   : > { %981 = vmatprep.subr.bf16.mxu1 %v3660_v59  ;;  %v3715_v59 = vld [vmem:[#allocation11 + $0x28] ss:$16 sps:$4 sm:$0xff]   ;;  %4509 = vst [vmem:[#allocation64_spill] sm:$0xff] %v3768_v57 }
  0xd8   : > { %4491 = vst [vmem:[#allocation46_spill] sm:$0xff] %v3715_v59 }
  0xd9   : > { %941 = vmatpush1.bf16.msra.mxu0 %v3658_v58  ;;  %v3700_v58 = vld [vmem:[#allocation11] ss:$16 sps:$4 sm:$0xff]  }
  0xda   : > { %982 = vmatpush1.bf16.msra.mxu1 %v3663_v60  ;;  %942 = vmatprep.subr.bf16.mxu0 %v3668_v61  ;;  %v3687_v60 = vld [vmem:[#allocation12 + $0xe8] ss:$16 sps:$4 sm:$0xff]   ;;  %v3691_v61 = vld [vmem:[#allocation4] sm:$0xff]  ;;  %4485 = vst [vmem:[#allocation41_spill] sm:$0xff] %v3700_v58 }
  0xdb   : > { %983 = vmatprep.subr.bf16.mxu1 %v3672_v63  ;;  %4481 = vst [vmem:[#allocation37_spill] sm:$0xff] %v3687_v60  ;;  %4482 = vst [vmem:[#allocation38_spill] sm:$0xff] %v3691_v61  ;;  %v3698_v63 = vld [vmem:[#allocation11 + $0xc] ss:$16 sps:$4 sm:$0xff]  }
  0xdc   : > { %4484 = vst [vmem:[#allocation40_spill] sm:$0xff] %v3698_v63 }
  0xdd   : > { %943 = vmatpush1.bf16.msra.mxu0 %v3670_v62  ;;  %v3696_v62 = vld [vmem:[#allocation11 + $0x4] ss:$16 sps:$4 sm:$0xff]  }
  0xde   : > { %984 = vmatpush1.bf16.msra.mxu1 %v3675_v0  ;;  %944 = vmatprep.subr.bf16.mxu0 %v3680_v1  ;;  %v769_v0 = vpack.c.bf16 %v3691_v61, %v3691_v61  ;;  %4483 = vst [vmem:[#allocation39_spill] sm:$0xff] %v3696_v62  ;;  %v3710_v61 = vld [vmem:[#allocation11 + $0x2c] ss:$16 sps:$4 sm:$0xff]   ;;  %v3713_v1 = vld [vmem:[#allocation11 + $0x20] ss:$16 sps:$4 sm:$0xff]  }
  0xdf   : > { %985 = vmatprep.subr.bf16.mxu1 %v3684_v4  ;;  %4488 = vst [vmem:[#allocation44_spill] sm:$0xff] %v3710_v61  ;;  %v4489_v4 = vmov 0   ;;  %4490 = vst [vmem:[#allocation45_spill] sm:$0xff] %v3713_v1 }
  0xe1   : > { %945 = vmatpush1.bf16.msra.mxu0 %v3682_v36  ;;  %v3704_v36 = vld [vmem:[#allocation11 + $0x8] ss:$16 sps:$4 sm:$0xff]  }
  0xe2   : > { %986 = vmatpush1.bf16.msra.mxu1 %v3687_v60  ;;  %1172 = vmatprep.subr.bf16.mxu0 %v3696_v62  ;;  %4486 = vst [vmem:[#allocation42_spill] sm:$0xff] %v3704_v36  ;;  %v3708_v60 = vld [vmem:[#allocation11 + $0x24] ss:$16 sps:$4 sm:$0xff]  }
  0xe3   : > { %1213 = vmatprep.subr.bf16.mxu1 %v3698_v63  ;;  %4487 = vst [vmem:[#allocation43_spill] sm:$0xff] %v3708_v60  ;;  %v3728_v63 = vld [vmem:[#allocation11 + $0x48] ss:$16 sps:$4 sm:$0xff]   ;;  %v3766_v62 = vld [vmem:[#allocation11 + $0xc4] ss:$16 sps:$4 sm:$0xff]  }
  0xe4   : > { %963 = vmatmul.mubr.bf16.vlgmr.msra.gmra.mrb[4].mxu0 %v769_v0  ;;  %4495 = vst [vmem:[#allocation50_spill] sm:$0xff] %v3728_v63  ;;  %4508 = vst [vmem:[#allocation63_spill] sm:$0xff] %v3766_v62 }
  0xe5   : > { %1004 = vmatmul.mubr.bf16.vlgmr.msra.gmra.mrb[4].mxu1 %v769_v0  ;;  %1173 = vmatpush1.bf16.msra.mxu0 %v3700_v58  ;;  %v3722_v0 = vld [vmem:[#allocation11 + $0x44] ss:$16 sps:$4 sm:$0xff]   ;;  %v3726_v58 = vld [vmem:[#allocation11 + $0x40] ss:$16 sps:$4 sm:$0xff]  }
  0xe6   : > { %1214 = vmatpush1.bf16.msra.mxu1 %v3704_v36  ;;  %1204 = vmatprep.mubr.bf16.mxu0 %v4489_v4  ;;  %4492 = vst [vmem:[#allocation47_spill] sm:$0xff] %v3722_v0  ;;  %v3724_v36 = vld [vmem:[#allocation11 + $0x4c] ss:$16 sps:$4 sm:$0xff]   ;;  %4494 = vst [vmem:[#allocation49_spill] sm:$0xff] %v3726_v58 }
  0xe7   : > { %1245 = vmatprep.mubr.bf16.mxu1 %v4489_v4  ;;  %1174 = vmatprep.subr.bf16.mxu0 %v3708_v60  ;;  %4493 = vst [vmem:[#allocation48_spill] sm:$0xff] %v3724_v36  ;;  %v3740_v60 = vld [vmem:[#allocation11 + $0x68] ss:$16 sps:$4 sm:$0xff]  }
  0xe8   : > { %1215 = vmatprep.subr.bf16.mxu1 %v3710_v61  ;;  %v3734_v61 = vld [vmem:[#allocation11 + $0x64] ss:$16 sps:$4 sm:$0xff]   ;;  %4499 = vst [vmem:[#allocation54_spill] sm:$0xff] %v3740_v60 }
  0xe9   : > { %1175 = vmatpush1.bf16.msra.mxu0 %v3713_v1  ;;  %4496 = vst [vmem:[#allocation51_spill] sm:$0xff] %v3734_v61  ;;  %v3736_v1 = vld [vmem:[#allocation11 + $0x6c] ss:$16 sps:$4 sm:$0xff]  }
  0xea   : > { %1216 = vmatpush1.bf16.msra.mxu1 %v3715_v59  ;;  %1176 = vmatprep.subr.bf16.mxu0 %v3722_v0  ;;  %4497 = vst [vmem:[#allocation52_spill] sm:$0xff] %v3736_v1  ;;  %v3738_v59 = vld [vmem:[#allocation11 + $0x60] ss:$16 sps:$4 sm:$0xff]   ;;  %v3752_v0 = vld [vmem:[#allocation11 + $0x88] ss:$16 sps:$4 sm:$0xff]  }
  0xeb   : > { %1217 = vmatprep.subr.bf16.mxu1 %v3724_v36  ;;  %4498 = vst [vmem:[#allocation53_spill] sm:$0xff] %v3738_v59  ;;  %v3746_v36 = vld [vmem:[#allocation11 + $0x84] ss:$16 sps:$4 sm:$0xff]   ;;  %4503 = vst [vmem:[#allocation58_spill] sm:$0xff] %v3752_v0 }
  0xec   : > { %4500 = vst [vmem:[#allocation55_spill] sm:$0xff] %v3746_v36 }
  0xed   : > { %1177 = vmatpush1.bf16.msra.mxu0 %v3726_v58  ;;  %v3748_v58 = vld [vmem:[#allocation11 + $0x8c] ss:$16 sps:$4 sm:$0xff]  }
  0xee   : > { %1218 = vmatpush1.bf16.msra.mxu1 %v3728_v63  ;;  %1178 = vmatprep.subr.bf16.mxu0 %v3734_v61  ;;  %4501 = vst [vmem:[#allocation56_spill] sm:$0xff] %v3748_v58  ;;  %v3750_v63 = vld [vmem:[#allocation11 + $0x80] ss:$16 sps:$4 sm:$0xff]   ;;  %v3764_v61 = vld [vmem:[#allocation11 + $0xa8] ss:$16 sps:$4 sm:$0xff]  }
  0xef   : > { %1219 = vmatprep.subr.bf16.mxu1 %v3736_v1  ;;  %4502 = vst [vmem:[#allocation57_spill] sm:$0xff] %v3750_v63  ;;  %v3758_v1 = vld [vmem:[#allocation11 + $0xa4] ss:$16 sps:$4 sm:$0xff]   ;;  %4507 = vst [vmem:[#allocation62_spill] sm:$0xff] %v3764_v61 }
  0xf0   : > { %4504 = vst [vmem:[#allocation59_spill] sm:$0xff] %v3758_v1 }
  0xf1   : > { %1179 = vmatpush1.bf16.msra.mxu0 %v3738_v59  ;;  %v3760_v59 = vld [vmem:[#allocation11 + $0xac] ss:$16 sps:$4 sm:$0xff]  }
  0xf2   : > { %1220 = vmatpush1.bf16.msra.mxu1 %v3740_v60  ;;  %1180 = vmatprep.subr.bf16.mxu0 %v3746_v36  ;;  %4505 = vst [vmem:[#allocation60_spill] sm:$0xff] %v3760_v59  ;;  %v3762_v60 = vld [vmem:[#allocation11 + $0xa0] ss:$16 sps:$4 sm:$0xff]   ;;  %v3782_v36 = vld [vmem:[#allocation11 + $0xec] ss:$16 sps:$4 sm:$0xff]  }
  0xf3   : > { %1221 = vmatprep.subr.bf16.mxu1 %v3748_v58  ;;  %4506 = vst [vmem:[#allocation61_spill] sm:$0xff] %v3762_v60  ;;  %v3779_v58 = vld [vmem:[#allocation11 + $0xe4] ss:$16 sps:$4 sm:$0xff]   ;;  %4513 = vst [vmem:[#allocation68_spill] sm:$0xff] %v3782_v36 }
  0xf4   : > { %4512 = vst [vmem:[#allocation67_spill] sm:$0xff] %v3779_v58 }
  0xf5   : > { %1181 = vmatpush1.bf16.msra.mxu0 %v3750_v63  ;;  %v3773_v63 = vld [vmem:[#allocation11 + $0xc0] ss:$16 sps:$4 sm:$0xff]  }
  0xf6   : > { %1222 = vmatpush1.bf16.msra.mxu1 %v3752_v0  ;;  %1182 = vmatprep.subr.bf16.mxu0 %v3758_v1  ;;  %4510 = vst [vmem:[#allocation65_spill] sm:$0xff] %v3773_v63  ;;  %v3777_v0 = vld [vmem:[#allocation11 + $0xc8] ss:$16 sps:$4 sm:$0xff]  }
  0xf7   : > { %1223 = vmatprep.subr.bf16.mxu1 %v3760_v59  ;;  %4511 = vst [vmem:[#allocation66_spill] sm:$0xff] %v3777_v0  ;;  %v3785_v59 = vld [vmem:[#allocation11 + $0xe0] ss:$16 sps:$4 sm:$0xff]  }
  0xf8   : > { %4514 = vst [vmem:[#allocation69_spill] sm:$0xff] %v3785_v59 }
  0xf9   : > { %1183 = vmatpush1.bf16.msra.mxu0 %v3762_v60 }
  0xfa   : > { %1224 = vmatpush1.bf16.msra.mxu1 %v3764_v61  ;;  %1184 = vmatprep.subr.bf16.mxu0 %v3766_v62  ;;  %v3789_v61 = vld [vmem:[#allocation11 + $0xe8] ss:$16 sps:$4 sm:$0xff]  }
  0xfb   : > { %1225 = vmatprep.subr.bf16.mxu1 %v3768_v57  ;;  %4515 = vst [vmem:[#allocation70_spill] sm:$0xff] %v3789_v61  ;;  %v494_v57 = vld [vmem:[%s3470_s19 + $0x8] sm:$0xff] }
  0xfd   : > { %1185 = vmatpush1.bf16.msra.mxu0 %v3773_v63  ;;  %v493_v63 = vld [vmem:[%s3470_s19] sm:$0xff] }
  0xfe   : > { %1226 = vmatpush1.bf16.msra.mxu1 %v3777_v0  ;;  %1186 = vmatprep.subr.bf16.mxu0 %v3779_v58 }
  0xff   : > { %1227 = vmatprep.subr.bf16.mxu1 %v3782_v36  ;;  %v495_v36 = vld [vmem:[%s3470_s19 + $0x10] sm:$0xff] }
 0x101   : > { %1187 = vmatpush1.bf16.msra.mxu0 %v3785_v59 }
 0x102   : > { %1228 = vmatpush1.bf16.msra.mxu1 %v3789_v61  ;;  %1296 = vmatprep.subr.bf16.mxu0 %v3492_v2 }
 0x103   : > { %1337 = vmatprep.subr.bf16.mxu1 %v3507_v8  ;;  %v496_v8 = vld [vmem:[%s3470_s19 + $0x18] sm:$0xff] }
 0x197   : > { %v692_v62 = vpop.f32.mrb[0].mxu0  ;;  %v733_v59 = vpop.f32.mrb[0].mxu1 }
 0x198   : > { %v740_v0 = vadd.f32 %v692_v62, %v493_v63  ;;  %v694_v60 = vpop.f32.mrb[1].mxu0  ;;  %v735_v61 = vpop.f32.mrb[1].mxu1  ;;  %v742_v51 = vadd.f32 %v733_v59, %v495_v36  ;;  %v4534_v36 = vld [vmem:[#allocation34_spill] sm:$0xff] }
 0x199   : > { %v741_v58 = vadd.f32 %v694_v60, %v494_v57  ;;  %v696_v1 = vpop.f32.mrb[2].mxu0  ;;  %v737_v2 = vpop.f32.mrb[2].mxu1  ;;  %v743_v52 = vadd.f32 %v735_v61, %v496_v8  ;;  %v4537_v8 = vld [vmem:[#allocation37_spill] sm:$0xff] }
 0x19a   : > { %v2431_v56 = vmul.f32 -1.442695, %v740_v0  ;;  %v697_v54 = vpop.f32.mrb[3].mxu0  ;;  %v738_v53 = vpop.f32.mrb[3].mxu1  ;;  %v2433_v49 = vmul.f32 -1.442695, %v742_v51 }
 0x19b   : > { %v2432_v55 = vmul.f32 -1.442695, %v741_v58  ;;  %v4535_v0 = vld [vmem:[#allocation36_spill] sm:$0xff]  ;;  %v4536_v2 = vld [vmem:[#allocation35_spill] sm:$0xff] }
 0x19c   : > { %2789 = vpow2.f32 %v2431_v56  ;;  %v3800_v56 = vld [vmem:[#allocation3] sm:$0xff] }
 0x19d   : > { %2791 = vpow2.f32 %v2432_v55 }
 0x19e   : > { %2793 = vpow2.f32 %v2433_v49 }
 0x19f   : > { %2795 = vtanh.f32 %v743_v52 }
 0x1a6   : > { %v2790_v47 = vpop.eup %2789 }
 0x1a7   : > { %v2792_v62 = vpop.eup %2791  ;;  %v753_v63 = vadd.f32 1.0, %v2790_v47 }
 0x1a8   : > { %v754_v57 = vadd.f32 1.0, %v2792_v62  ;;  %v2794_v54 = vpop.eup %2793  ;;  %v4538_v62 = vld [vmem:[#allocation39_spill] sm:$0xff] }
 0x1a9   : > { %2797 = vrcp.f32 %v753_v63  ;;  %v2796_v58 = vpop.eup %2795  ;;  %v755_v60 = vadd.f32 1.0, %v2794_v54  ;;  %v4539_v63 = vld [vmem:[#allocation40_spill] sm:$0xff] }
 0x1aa   : > { %2799 = vrcp.f32 %v754_v57  ;;  %v468_v57 = vlaneseq }
 0x1ab   : > { %2801 = vrcp.f32 %v755_v60 }
 0x1ac   : > { %v469_v54 = vshrl.u32 %v468_v57, 7 }
 0x1ae   : > { %v474_v60 = vsub.s32 1, %v469_v54  ;;  %v478_v57 = vsub.s32 2, %v469_v54 }
 0x1b3   : > { %v2798_v55 = vpop.eup %2797 }
 0x1b4   : > { %v2800_v59 = vpop.eup %2799  ;;  %v764_v1 = vmul.f32 %v2798_v55, %v2796_v58  ;;  %v470_v58 = vsub.s32 0, %v469_v54  ;;  %v466_v55 = vld [vmem:[%s4305_s4] sm:$0xf] }
 0x1b5   : > { %v763_v53 = vmul.f32 %v2800_v59, %v3800_v56  ;;  %v2802_v47 = vpop.eup %2801 }
 0x1b6   : > { %v3892_v59 = vrot.slane %v466_v55, %v470_v58 }
 0x1b7   : > { %v3803_v51 = vadd.f32 %v764_v1, %v763_v53 }
 0x1b9   : > { %2803 = vtanh.f32 %v3803_v51 }
 0x1c3   : > { %v2804_v49 = vpop.eup %2803 }
 0x1c4   : > { %v767_v52 = vmul.f32 %v2804_v49, %v2802_v47  ;;  %v3894_v47 = vrot.slane %v466_v55, %v474_v60  ;;  %v3898_v60 = vrot.slane %v466_v55, %v478_v57 }
 0x1c6   : > { %v768_v61 = vpack.c.bf16 %v767_v52, %v767_v52 }
 0x1c8   : > { %1205 = vmatmul.mubr.bf16.vlgmr.msra.gmra.mrb[8].mxu0 %v768_v61  ;;  %1246 = vmatmul.mubr.bf16.vlgmr.msra.gmra.mrb[8].mxu1 %v768_v61 }
 0x1c9   : > { %1297 = vmatpush1.bf16.msra.mxu0 %v3494_v3  ;;  %1338 = vmatpush1.bf16.msra.mxu1 %v3509_v9  ;;  %v1284_v3 = vstv %s1283_s29  ;;  %v4518_v9 = vld [vmem:[#allocation18_spill] sm:$0xff] }
 0x1ca   : > { %1298 = vmatprep.subr.bf16.mxu0 %v3499_v5  ;;  %1339 = vmatprep.subr.bf16.mxu1 %v3519_v12  ;;  %vm3840_vm0 = vcmp.eq.s32.totalorder %v1284_v3, 1  ;;  %v4521_v12 = vld [vmem:[#allocation22_spill] sm:$0xff] }
 0x1cb   : > { %1328 = vmatprep.mubr.bf16.mxu0 %v4489_v4  ;;  %1369 = vmatprep.mubr.bf16.mxu1 %v4489_v4 }
 0x1cd   : > { %1299 = vmatpush1.bf16.msra.mxu0 %v3502_v6  ;;  %1340 = vmatpush1.bf16.msra.mxu1 %v3521_v13  ;;  %v3847_v6 = vsel %vm3840_vm0, %v767_v52, %v3576_v32  ;;  %v4522_v13 = vld [vmem:[#allocation20_spill] sm:$0xff]  ;;  %v4533_v32 = vld [vmem:[#allocation33_spill] sm:$0xff] }
 0x1ce   : > { %1300 = vmatprep.subr.bf16.mxu0 %v3505_v7  ;;  %1341 = vmatprep.subr.bf16.mxu1 %v3529_v16  ;;  %v1295_v7 = vpack.c.bf16 %v3847_v6, %v3847_v6  ;;  %v4524_v16 = vld [vmem:[#allocation23_spill] sm:$0xff] }
 0x1d1   : > { %1301 = vmatpush1.bf16.msra.mxu0 %v3512_v10  ;;  %1342 = vmatpush1.bf16.msra.mxu1 %v3533_v17  ;;  %v4519_v10 = vld [vmem:[#allocation21_spill] sm:$0xff] }
 0x1d2   : > { %1302 = vmatprep.subr.bf16.mxu0 %v3516_v11  ;;  %1343 = vmatprep.subr.bf16.mxu1 %v3536_v18  ;;  %v4520_v11 = vld [vmem:[#allocation19_spill] sm:$0xff]  ;;  %v4525_v17 = vld [vmem:[#allocation25_spill] sm:$0xff] }
 0x1d5   : > { %1303 = vmatpush1.bf16.msra.mxu0 %v3525_v14  ;;  %1344 = vmatpush1.bf16.msra.mxu1 %v3545_v21  ;;  %v4523_v14 = vld [vmem:[#allocation24_spill] sm:$0xff] }
 0x1d6   : > { %1304 = vmatprep.subr.bf16.mxu0 %v3527_v15  ;;  %1345 = vmatprep.subr.bf16.mxu1 %v3548_v22  ;;  %v964_v15 = vpop.f32.mrb[4].mxu0  ;;  %v1005_v22 = vpop.f32.mrb[4].mxu1 }
 0x1d7   : > { %v966_v18 = vpop.f32.mrb[5].mxu0 }
 0x1d8   : > { %v968_v21 = vpop.f32.mrb[6].mxu0 }
 0x1d9   : > { %1305 = vmatpush1.bf16.msra.mxu0 %v3539_v19  ;;  %1346 = vmatpush1.bf16.msra.mxu1 %v3557_v25  ;;  %v4526_v19 = vld [vmem:[#allocation26_spill] sm:$0xff] }
 0x1da   : > { %1306 = vmatprep.subr.bf16.mxu0 %v3542_v20  ;;  %1347 = vmatprep.subr.bf16.mxu1 %v3560_v26  ;;  %v4527_v20 = vld [vmem:[#allocation28_spill] sm:$0xff]  ;;  %v4528_v26 = vld [vmem:[#allocation27_spill] sm:$0xff] }
 0x1dd   : > { %1307 = vmatpush1.bf16.msra.mxu0 %v3550_v23  ;;  %1348 = vmatpush1.bf16.msra.mxu1 %v3569_v29  ;;  %v969_v23 = vpop.f32.mrb[7].mxu0  ;;  %v4530_v29 = vld [vmem:[#allocation30_spill] sm:$0xff] }
 0x1de   : > { %1308 = vmatprep.subr.bf16.mxu0 %v3553_v24  ;;  %1349 = vmatprep.subr.bf16.mxu1 %v3572_v30  ;;  %v1007_v24 = vpop.f32.mrb[5].mxu1  ;;  %v4531_v30 = vld [vmem:[#allocation32_spill] sm:$0xff] }
 0x1df   : > { %v1009_v25 = vpop.f32.mrb[6].mxu1 }
 0x1e1   : > { %1309 = vmatpush1.bf16.msra.mxu0 %v3562_v27  ;;  %1350 = vmatpush1.bf16.msra.mxu1 %v3579_v33  ;;  %v4529_v27 = vld [vmem:[#allocation29_spill] sm:$0xff] }
 0x1e2   : > { %1310 = vmatprep.subr.bf16.mxu0 %v3565_v28  ;;  %1351 = vmatprep.subr.bf16.mxu1 %v3586_v35  ;;  %v1010_v28 = vpop.f32.mrb[7].mxu1 }
 0x1e5   : > { %1311 = vmatpush1.bf16.msra.mxu0 %v3574_v31  ;;  %1352 = vmatpush1.bf16.msra.mxu1 %v3590_v37  ;;  %v4532_v31 = vld [vmem:[#allocation31_spill] sm:$0xff] }
 0x1e6   : > { %1408 = vmatprep.subr.bf16.mxu0 %v3583_v34  ;;  %1449 = vmatprep.subr.bf16.mxu1 %v3600_v40 }
 0x1e8   : > { %1329 = vmatmul.mubr.bf16.vlgmr.msra.gmra.mrb[12].mxu0 %v1295_v7  ;;  %1370 = vmatmul.mubr.bf16.vlgmr.msra.gmra.mrb[12].mxu1 %v1295_v7 }
 0x1e9   : > { %1409 = vmatpush1.bf16.msra.mxu0 %v3593_v38  ;;  %1450 = vmatpush1.bf16.msra.mxu1 %v3604_v42 }
 0x1ea   : > { %1410 = vmatprep.subr.bf16.mxu0 %v3597_v39  ;;  %1451 = vmatprep.subr.bf16.mxu1 %v3609_v44 }
 0x1eb   : > { %1440 = vmatprep.mubr.bf16.mxu0 %v4489_v4  ;;  %1481 = vmatprep.mubr.bf16.mxu1 %v4489_v4 }
 0x1ed   : > { %1411 = vmatpush1.bf16.msra.mxu0 %v3602_v41  ;;  %1452 = vmatpush1.bf16.msra.mxu1 %v3617_v46 }
 0x1ee   : > { %1412 = vmatprep.subr.bf16.mxu0 %v3606_v43  ;;  %1453 = vmatprep.subr.bf16.mxu1 %v3622_v48 }
 0x1f1   : > { %1413 = vmatpush1.bf16.msra.mxu0 %v3615_v45  ;;  %1454 = vmatpush1.bf16.msra.mxu1 %v3630_v50 }
 0x1f2   : > { %1414 = vmatprep.subr.bf16.mxu0 %v4518_v9  ;;  %1455 = vmatprep.subr.bf16.mxu1 %v4519_v10 }
 0x1f5   : > { %1415 = vmatpush1.bf16.msra.mxu0 %v4520_v11  ;;  %1456 = vmatpush1.bf16.msra.mxu1 %v4521_v12 }
 0x1f6   : > { %1416 = vmatprep.subr.bf16.mxu0 %v4522_v13  ;;  %1457 = vmatprep.subr.bf16.mxu1 %v4523_v14 }
 0x1f9   : > { %1417 = vmatpush1.bf16.msra.mxu0 %v4524_v16  ;;  %1458 = vmatpush1.bf16.msra.mxu1 %v4525_v17 }
 0x1fa   : > { %1418 = vmatprep.subr.bf16.mxu0 %v4526_v19  ;;  %1459 = vmatprep.subr.bf16.mxu1 %v4527_v20 }
 0x1fd   : > { %1419 = vmatpush1.bf16.msra.mxu0 %v4528_v26  ;;  %1460 = vmatpush1.bf16.msra.mxu1 %v4529_v27 }
 0x1fe   : > { %1420 = vmatprep.subr.bf16.mxu0 %v4530_v29  ;;  %1461 = vmatprep.subr.bf16.mxu1 %v4531_v30 }
 0x201   : > { %1421 = vmatpush1.bf16.msra.mxu0 %v4532_v31  ;;  %1462 = vmatpush1.bf16.msra.mxu1 %v4533_v32 }
 0x202   : > { %1422 = vmatprep.subr.bf16.mxu0 %v4534_v36  ;;  %1463 = vmatprep.subr.bf16.mxu1 %v4535_v0  ;;  %v482_v0 = vsub.s32 3, %v469_v54 }
 0x205   : > { %1423 = vmatpush1.bf16.msra.mxu0 %v4536_v2  ;;  %1464 = vmatpush1.bf16.msra.mxu1 %v4537_v8 }
 0x206   : > { %1490 = vmatprep.subr.bf16.mxu0 %v4538_v62  ;;  %1531 = vmatprep.subr.bf16.mxu1 %v4539_v63 }
 0x29b   : > { %v1206_v1 = vpop.f32.mrb[8].mxu0  ;;  %v1247_v53 = vpop.f32.mrb[8].mxu1 }
 0x29c   : > { %v1207_v49 = vadd.f32 %v1206_v1, %v964_v15  ;;  %v1248_v52 = vadd.f32 %v1247_v53, %v1005_v22  ;;  %v1208_v61 = vpop.f32.mrb[9].mxu0  ;;  %v1249_v3 = vpop.f32.mrb[9].mxu1  ;;  %v3900_v15 = vrot.slane %v466_v55, %v482_v0  ;;  %v3904_v0 = vld [vmem:[#allocation5] sm:$0xff]  ;;  %v2501_v55 = vld [vmem:[%s3470_s19 + $0x20] sm:$0xff] }
 0x29d   : > { %v1209_v7 = vadd.f32 %v1208_v61, %v966_v18  ;;  %v1250_v21 = vadd.f32 %v1249_v3, %v1007_v24  ;;  %v1210_v23 = vpop.f32.mrb[10].mxu0  ;;  %v1251_v25 = vpop.f32.mrb[10].mxu1 }
 0x29e   : > { %v1254_v28 = vadd.f32 %v1207_v49, %v3892_v59  ;;  %v1211_v63 = vpop.f32.mrb[11].mxu0  ;;  %v1252_v62 = vpop.f32.mrb[11].mxu1  ;;  %v1256_v18 = vadd.f32 %v1248_v52, %v3898_v60  ;;  %v2502_v52 = vld [vmem:[%s3470_s19 + $0x28] sm:$0xff] }
 0x29f   : > { %v1255_v58 = vadd.f32 %v1209_v7, %v3894_v47  ;;  %v1257_v22 = vadd.f32 %v1250_v21, %v3900_v15 }
 0x2a0   : > { %v2498_v8 = vmul.f32 -1.442695, %v1254_v28  ;;  %v2500_v24 = vmul.f32 -1.442695, %v1256_v18 }
 0x2a1   : > { %v2499_v2 = vmul.f32 -1.442695, %v1255_v58 }
 0x2a2   : > { %2805 = vpow2.f32 %v2498_v8 }
 0x2a3   : > { %2807 = vpow2.f32 %v2499_v2 }
 0x2a4   : > { %2809 = vtanh.f32 %v1257_v22 }
 0x2a5   : > { %2811 = vpow2.f32 %v2500_v24 }
 0x2ac   : > { %v2806_v63 = vpop.eup %2805 }
 0x2ad   : > { %v1267_v62 = vadd.f32 1.0, %v2806_v63  ;;  %v2808_v1 = vpop.eup %2807 }
 0x2ae   : > { %v1268_v54 = vadd.f32 1.0, %v2808_v1  ;;  %v2810_v8 = vpop.eup %2809 }
 0x2af   : > { %2813 = vrcp.f32 %v1267_v62  ;;  %v2812_v53 = vpop.eup %2811 }
 0x2b0   : > { %2815 = vrcp.f32 %v1268_v54  ;;  %v1269_v3 = vadd.f32 1.0, %v2812_v53 }
 0x2b2   : > { %2817 = vrcp.f32 %v1269_v3  ;;  %v4540_v3 = vld [vmem:[#allocation38_spill] sm:$0xff] }
 0x2b9   : > { %v2814_v2 = vpop.eup %2813 }
 0x2ba   : > { %v1278_v49 = vmul.f32 %v2814_v2, %v2810_v8  ;;  %v2816_v61 = vpop.eup %2815  ;;  %v2503_v8 = vld [vmem:[%s3470_s19 + $0x30] sm:$0xff]  ;;  %v2504_v2 = vld [vmem:[%s3470_s19 + $0x38] sm:$0xff] }
 0x2bb   : > { %v1330_v7 = vpop.f32.mrb[12].mxu0  ;;  %v1371_v21 = vpop.f32.mrb[12].mxu1  ;;  %v1277_v23 = vmul.f32 %v2816_v61, %v3904_v0 }
 0x2bc   : > { %v1378_v25 = vadd.f32 %v2501_v55, %v1330_v7  ;;  %v1332_v28 = vpop.f32.mrb[13].mxu0  ;;  %v1373_v57 = vpop.f32.mrb[13].mxu1  ;;  %v1380_v53 = vadd.f32 %v2503_v8, %v1371_v21 }
 0x2bd   : > { %v1379_v58 = vadd.f32 %v2502_v52, %v1332_v28  ;;  %v1334_v18 = vpop.f32.mrb[14].mxu0  ;;  %v1375_v22 = vpop.f32.mrb[14].mxu1  ;;  %v3909_v24 = vadd.f32 %v1278_v49, %v1277_v23  ;;  %v1381_v55 = vadd.f32 %v2504_v2, %v1373_v57  ;;  %v4541_v57 = vld [vmem:[#allocation41_spill] sm:$0xff]  ;;  %v4549_v2 = vld [vmem:[#allocation48_spill] sm:$0xff] }
 0x2be   : > { %v2505_v63 = vmul.f32 -1.442695, %v1378_v25  ;;  %v1335_v62 = vpop.f32.mrb[15].mxu0  ;;  %v1376_v1 = vpop.f32.mrb[15].mxu1  ;;  %v2507_v52 = vmul.f32 -1.442695, %v1380_v53 }
 0x2bf   : > { %v2506_v54 = vmul.f32 -1.442695, %v1379_v58  ;;  %2819 = vtanh.f32 %v3909_v24  ;;  %v2818_v61 = vpop.eup %2817  ;;  %v4542_v22 = vld [vmem:[#allocation42_spill] sm:$0xff]  ;;  %v4545_v62 = vld [vmem:[#allocation44_spill] sm:$0xff]  ;;  %v4546_v1 = vld [vmem:[#allocation45_spill] sm:$0xff] }
 0x2c0   : > { %2821 = vpow2.f32 %v2505_v63  ;;  %v4544_v63 = vld [vmem:[#allocation43_spill] sm:$0xff] }
 0x2c1   : > { %2823 = vpow2.f32 %v2506_v54  ;;  %v4547_v54 = vld [vmem:[#allocation46_spill] sm:$0xff]  ;;  %v4548_v53 = vld [vmem:[#allocation47_spill] sm:$0xff] }
 0x2c2   : > { %2825 = vtanh.f32 %v1381_v55 }
 0x2c3   : > { %2827 = vpow2.f32 %v2507_v52 }
 0x2c9   : > { %v2820_v7 = vpop.eup %2819 }
 0x2ca   : > { %v2822_v28 = vpop.eup %2821  ;;  %v1281_v49 = vmul.f32 %v2820_v7, %v2818_v61  ;;  %v4550_v7 = vld [vmem:[#allocation49_spill] sm:$0xff] }
 0x2cb   : > { %v1391_v23 = vadd.f32 1.0, %v2822_v28  ;;  %v2824_v25 = vpop.eup %2823  ;;  %v4551_v28 = vld [vmem:[#allocation50_spill] sm:$0xff] }
 0x2cc   : > { %v3917_v58 = vsel %vm3840_vm0, %v1281_v49, %v4540_v3  ;;  %v1392_v18 = vadd.f32 1.0, %v2824_v25  ;;  %v2826_v8 = vpop.eup %2825  ;;  %v3940_v49 = vstv %s1602_s16  ;;  %v1287_v25 = vsel %vm3840_vm0, %v3803_v51, %v3800_v56  ;;  %v4558_v51 = vld [vmem:[#allocation57_spill] sm:$0xff] }
 0x2cd   : > { %2829 = vrcp.f32 %v1391_v23  ;;  %v1407_v21 = vpack.c.bf16 %v3917_v58, %v3917_v58  ;;  %v2828_v55 = vpop.eup %2827  ;;  %vm1604_vm1 = vcmp.eq.s32.totalorder %v3940_v49, 1 }
 0x2ce   : > { %2831 = vrcp.f32 %v1392_v18  ;;  %v1393_v3 = vadd.f32 1.0, %v2828_v55  ;;  %v4552_v18 = vld [vmem:[#allocation51_spill] sm:$0xff]  ;;  %v4559_v55 = vld [vmem:[#allocation58_spill] sm:$0xff] }
 0x2cf   : > { %1441 = vmatmul.mubr.bf16.vlgmr.msra.gmra.mrb[16].mxu0 %v1407_v21  ;;  %1482 = vmatmul.mubr.bf16.vlgmr.msra.gmra.mrb[16].mxu1 %v1407_v21  ;;  %v4553_v21 = vld [vmem:[#allocation52_spill] sm:$0xff] }
 0x2d0   : > { %1491 = vmatpush1.bf16.msra.mxu0 %v4541_v57  ;;  %1532 = vmatpush1.bf16.msra.mxu1 %v4542_v22  ;;  %2833 = vrcp.f32 %v1393_v3  ;;  %v4563_v3 = vld [vmem:[#allocation62_spill] sm:$0xff] }
 0x2d1   : > { %1492 = vmatprep.subr.bf16.mxu0 %v4544_v63  ;;  %1533 = vmatprep.subr.bf16.mxu1 %v4545_v62 }
 0x2d2   : > { %1522 = vmatprep.mubr.bf16.mxu0 %v4489_v4  ;;  %1563 = vmatprep.mubr.bf16.mxu1 %v4489_v4 }
 0x2d4   : > { %1493 = vmatpush1.bf16.msra.mxu0 %v4546_v1  ;;  %1534 = vmatpush1.bf16.msra.mxu1 %v4547_v54 }
 0x2d5   : > { %1494 = vmatprep.subr.bf16.mxu0 %v4548_v53  ;;  %1535 = vmatprep.subr.bf16.mxu1 %v4549_v2  ;;  %v4557_v53 = vld [vmem:[#allocation56_spill] sm:$0xff] }
 0x2d7   : > { %v2830_v61 = vpop.eup %2829 }
 0x2d8   : > { %v1402_v52 = vmul.f32 %v2830_v61, %v2826_v8  ;;  %1495 = vmatpush1.bf16.msra.mxu0 %v4550_v7  ;;  %1536 = vmatpush1.bf16.msra.mxu1 %v4551_v28  ;;  %v2832_v23 = vpop.eup %2831  ;;  %v4554_v61 = vld [vmem:[#allocation53_spill] sm:$0xff]  ;;  %v4555_v28 = vld [vmem:[#allocation54_spill] sm:$0xff]  ;;  %v4556_v7 = vld [vmem:[#allocation55_spill] sm:$0xff] }
 0x2d9   : > { %1496 = vmatprep.subr.bf16.mxu0 %v4552_v18  ;;  %1537 = vmatprep.subr.bf16.mxu1 %v4553_v21  ;;  %v1401_v2 = vmul.f32 %v2832_v23, %v1287_v25  ;;  %v4560_v23 = vld [vmem:[#allocation59_spill] sm:$0xff] }
 0x2db   : > { %v1403_v8 = vadd.f32 %v1402_v52, %v1401_v2  ;;  %v4561_v2 = vld [vmem:[#allocation60_spill] sm:$0xff]  ;;  %v4562_v52 = vld [vmem:[#allocation61_spill] sm:$0xff] }
 0x2dc   : > { %1497 = vmatpush1.bf16.msra.mxu0 %v4554_v61  ;;  %1538 = vmatpush1.bf16.msra.mxu1 %v4555_v28  ;;  %v2834_v28 = vpop.eup %2833 }
 0x2dd   : > { %1498 = vmatprep.subr.bf16.mxu0 %v4556_v7  ;;  %1539 = vmatprep.subr.bf16.mxu1 %v4557_v53  ;;  %2835 = vtanh.f32 %v1403_v8  ;;  %v3955_v56 = vsel %vm1604_vm1, %v1403_v8, %v1287_v25  ;;  %v4564_v7 = vld [vmem:[#allocation63_spill] sm:$0xff]  ;;  %v4565_v53 = vld [vmem:[#allocation64_spill] sm:$0xff]  ;;  %v4566_v25 = vld [vmem:[#allocation65_spill] sm:$0xff] }
 0x2de   : > { %v4567_v8 = vld [vmem:[#allocation66_spill] sm:$0xff] }
 0x2e0   : > { %1499 = vmatpush1.bf16.msra.mxu0 %v4558_v51  ;;  %1540 = vmatpush1.bf16.msra.mxu1 %v4559_v55  ;;  %v4568_v51 = vld [vmem:[#allocation67_spill] sm:$0xff]  ;;  %v4569_v55 = vld [vmem:[#allocation68_spill] sm:$0xff] }
 0x2e1   : > { %1500 = vmatprep.subr.bf16.mxu0 %v4560_v23  ;;  %1541 = vmatprep.subr.bf16.mxu1 %v4561_v2  ;;  %v4570_v2 = vld [vmem:[#allocation69_spill] sm:$0xff] }
 0x2e4   : > { %1501 = vmatpush1.bf16.msra.mxu0 %v4562_v52  ;;  %1542 = vmatpush1.bf16.msra.mxu1 %v4563_v3  ;;  %v4571_v52 = vld [vmem:[#allocation70_spill] sm:$0xff] }
 0x2e5   : > { %1502 = vmatprep.subr.bf16.mxu0 %v4564_v7  ;;  %1543 = vmatprep.subr.bf16.mxu1 %v4565_v53  ;;  %v3975_v53 = vld [vmem:[#allocation9 + $0x4] ss:$16 sps:$4 sm:$0xff]  }
 0x2e7   : > { %v2836_v61 = vpop.eup %2835 }
 0x2e8   : > { %1503 = vmatpush1.bf16.msra.mxu0 %v4566_v25  ;;  %1544 = vmatpush1.bf16.msra.mxu1 %v4567_v8  ;;  %v3969_v23 = vmul.f32 %v2836_v61, %v2834_v28  ;;  %v3978_v25 = vld [vmem:[#allocation9 + $0xc] ss:$16 sps:$4 sm:$0xff]   ;;  %v3984_v28 = vld [vmem:[#allocation9 + $0x8] ss:$16 sps:$4 sm:$0xff]   ;;  %v3987_v61 = vld [vmem:[#allocation9 + $0x24] ss:$16 sps:$4 sm:$0xff]  }
 0x2e9   : > { %1504 = vmatprep.subr.bf16.mxu0 %v4568_v51  ;;  %1545 = vmatprep.subr.bf16.mxu1 %v4569_v55  ;;  %4572 = vst [vmem:[#allocation18_spill] sm:$0xff] %v3978_v25  ;;  %v3981_v55 = vld [vmem:[#allocation9] ss:$16 sps:$4 sm:$0xff]   ;;  %4574 = vst [vmem:[#allocation19_spill] sm:$0xff] %v3984_v28 }
 0x2ea   : > { %v1406_v7 = vpack.c.bf16 %v3969_v23, %v3969_v23  ;;  %4573 = vst [vmem:[#allocation21_spill] sm:$0xff] %v3981_v55  ;;  %4575 = vst [vmem:[#allocation22_spill] sm:$0xff] %v3987_v61 }
 0x2ec   : > { %1505 = vmatpush1.bf16.msra.mxu0 %v4570_v2  ;;  %1546 = vmatpush1.bf16.msra.mxu1 %v4571_v52  ;;  %v3990_v52 = vld [vmem:[#allocation9 + $0x2c] ss:$16 sps:$4 sm:$0xff]  }
 0x2ed   : > { %1615 = vmatprep.subr.bf16.mxu0 %v3975_v53  ;;  %1656 = vmatprep.subr.bf16.mxu1 %v3978_v25  ;;  %4576 = vst [vmem:[#allocation20_spill] sm:$0xff] %v3990_v52  ;;  %v4010_v25 = vld [vmem:[#allocation9 + $0x48] ss:$16 sps:$4 sm:$0xff]  }
 0x2ee   : > { %4582 = vst [vmem:[#allocation27_spill] sm:$0xff] %v4010_v25 }
 0x2ef   : > { %1523 = vmatmul.mubr.bf16.vlgmr.msra.gmra.mrb[20].mxu0 %v1406_v7  ;;  %1564 = vmatmul.mubr.bf16.vlgmr.msra.gmra.mrb[20].mxu1 %v1406_v7  ;;  %v3995_v7 = vld [vmem:[#allocation9 + $0x20] ss:$16 sps:$4 sm:$0xff]  }
 0x2f0   : > { %1616 = vmatpush1.bf16.msra.mxu0 %v3981_v55  ;;  %1657 = vmatpush1.bf16.msra.mxu1 %v3984_v28  ;;  %4577 = vst [vmem:[#allocation24_spill] sm:$0xff] %v3995_v7  ;;  %v3998_v55 = vld [vmem:[#allocation9 + $0x28] ss:$16 sps:$4 sm:$0xff]   ;;  %v4001_v28 = vld [vmem:[#allocation9 + $0x44] ss:$16 sps:$4 sm:$0xff]  }
 0x2f1   : > { %1617 = vmatprep.subr.bf16.mxu0 %v3987_v61  ;;  %1658 = vmatprep.subr.bf16.mxu1 %v3990_v52  ;;  %4578 = vst [vmem:[#allocation23_spill] sm:$0xff] %v3998_v55  ;;  %4579 = vst [vmem:[#allocation25_spill] sm:$0xff] %v4001_v28  ;;  %v4004_v61 = vld [vmem:[#allocation9 + $0x4c] ss:$16 sps:$4 sm:$0xff]   ;;  %v4007_v52 = vld [vmem:[#allocation9 + $0x40] ss:$16 sps:$4 sm:$0xff]  }
 0x2f2   : > { %1647 = vmatprep.mubr.bf16.mxu0 %v4489_v4  ;;  %1688 = vmatprep.mubr.bf16.mxu1 %v4489_v4  ;;  %4580 = vst [vmem:[#allocation26_spill] sm:$0xff] %v4004_v61  ;;  %4581 = vst [vmem:[#allocation28_spill] sm:$0xff] %v4007_v52 }
 0x2f4   : > { %1618 = vmatpush1.bf16.msra.mxu0 %v3995_v7  ;;  %1659 = vmatpush1.bf16.msra.mxu1 %v3998_v55  ;;  %v4013_v7 = vld [vmem:[#allocation9 + $0x64] ss:$16 sps:$4 sm:$0xff]   ;;  %v4016_v55 = vld [vmem:[#allocation9 + $0x6c] ss:$16 sps:$4 sm:$0xff]  }
 0x2f5   : > { %1619 = vmatprep.subr.bf16.mxu0 %v4001_v28  ;;  %1660 = vmatprep.subr.bf16.mxu1 %v4004_v61  ;;  %4583 = vst [vmem:[#allocation29_spill] sm:$0xff] %v4013_v7  ;;  %4584 = vst [vmem:[#allocation30_spill] sm:$0xff] %v4016_v55  ;;  %v4019_v28 = vld [vmem:[#allocation9 + $0x60] ss:$16 sps:$4 sm:$0xff]   ;;  %v4022_v61 = vld [vmem:[#allocation9 + $0x68] ss:$16 sps:$4 sm:$0xff]  }
 0x2f6   : > { %4585 = vst [vmem:[#allocation32_spill] sm:$0xff] %v4019_v28  ;;  %4586 = vst [vmem:[#allocation31_spill] sm:$0xff] %v4022_v61 }
 0x2f8   : > { %1620 = vmatpush1.bf16.msra.mxu0 %v4007_v52  ;;  %1661 = vmatpush1.bf16.msra.mxu1 %v4010_v25  ;;  %v4025_v52 = vld [vmem:[#allocation9 + $0x84] ss:$16 sps:$4 sm:$0xff]   ;;  %v4028_v25 = vld [vmem:[#allocation9 + $0x8c] ss:$16 sps:$4 sm:$0xff]  }
 0x2f9   : > { %1621 = vmatprep.subr.bf16.mxu0 %v4013_v7  ;;  %1662 = vmatprep.subr.bf16.mxu1 %v4016_v55  ;;  %4587 = vst [vmem:[#allocation33_spill] sm:$0xff] %v4025_v52  ;;  %4588 = vst [vmem:[#allocation34_spill] sm:$0xff] %v4028_v25  ;;  %v4031_v7 = vld [vmem:[#allocation9 + $0x80] ss:$16 sps:$4 sm:$0xff]   ;;  %v4034_v55 = vld [vmem:[#allocation9 + $0x88] ss:$16 sps:$4 sm:$0xff]  }
 0x2fa   : > { %4589 = vst [vmem:[#allocation38_spill] sm:$0xff] %v4031_v7  ;;  %4590 = vst [vmem:[#allocation41_spill] sm:$0xff] %v4034_v55 }
 0x2fc   : > { %1622 = vmatpush1.bf16.msra.mxu0 %v4019_v28  ;;  %1663 = vmatpush1.bf16.msra.mxu1 %v4022_v61  ;;  %v4037_v28 = vld [vmem:[#allocation9 + $0xa4] ss:$16 sps:$4 sm:$0xff]   ;;  %v4040_v61 = vld [vmem:[#allocation9 + $0xac] ss:$16 sps:$4 sm:$0xff]  }
 0x2fd   : > { %1623 = vmatprep.subr.bf16.mxu0 %v4025_v52  ;;  %1664 = vmatprep.subr.bf16.mxu1 %v4028_v25  ;;  %4591 = vst [vmem:[#allocation42_spill] sm:$0xff] %v4037_v28  ;;  %4592 = vst [vmem:[#allocation43_spill] sm:$0xff] %v4040_v61  ;;  %v4043_v52 = vld [vmem:[#allocation9 + $0xa0] ss:$16 sps:$4 sm:$0xff]   ;;  %v4046_v25 = vld [vmem:[#allocation9 + $0xa8] ss:$16 sps:$4 sm:$0xff]  }
 0x2fe   : > { %4593 = vst [vmem:[#allocation44_spill] sm:$0xff] %v4046_v25 }
 0x300   : > { %1624 = vmatpush1.bf16.msra.mxu0 %v4031_v7  ;;  %1665 = vmatpush1.bf16.msra.mxu1 %v4034_v55  ;;  %v4049_v7 = vld [vmem:[#allocation9 + $0xc4] ss:$16 sps:$4 sm:$0xff]   ;;  %v4052_v55 = vld [vmem:[#allocation9 + $0xcc] ss:$16 sps:$4 sm:$0xff]  }
 0x301   : > { %1625 = vmatprep.subr.bf16.mxu0 %v4037_v28  ;;  %1666 = vmatprep.subr.bf16.mxu1 %v4040_v61  ;;  %4594 = vst [vmem:[#allocation45_spill] sm:$0xff] %v4049_v7  ;;  %v4055_v28 = vld [vmem:[#allocation9 + $0xc0] ss:$16 sps:$4 sm:$0xff]   ;;  %v4059_v61 = vld [vmem:[#allocation9 + $0xe4] ss:$16 sps:$4 sm:$0xff]  }
 0x304   : > { %1626 = vmatpush1.bf16.msra.mxu0 %v4043_v52  ;;  %1667 = vmatpush1.bf16.msra.mxu1 %v4046_v25  ;;  %v4069_v25 = vld [vmem:[#allocation9 + $0xe0] ss:$16 sps:$4 sm:$0xff]  }
 0x305   : > { %1627 = vmatprep.subr.bf16.mxu0 %v4049_v7  ;;  %1668 = vmatprep.subr.bf16.mxu1 %v4052_v55  ;;  %v4067_v7 = vsel %vm1604_vm1, %v3969_v23, %v3847_v6 }
 0x308   : > { %1628 = vmatpush1.bf16.msra.mxu0 %v4055_v28  ;;  %1669 = vmatpush1.bf16.msra.mxu1 %v3579_v33  ;;  %v1614_v33 = vpack.c.bf16 %v4067_v7, %v4067_v7 }
 0x309   : > { %1629 = vmatprep.subr.bf16.mxu0 %v4059_v61  ;;  %1670 = vmatprep.subr.bf16.mxu1 %v3586_v35  ;;  %v4596_v35 = vld [vmem:[#allocation35_spill] sm:$0xff] }
 0x30c   : > { %1630 = vmatpush1.bf16.msra.mxu0 %v4069_v25  ;;  %1671 = vmatpush1.bf16.msra.mxu1 %v3590_v37  ;;  %v4597_v37 = vld [vmem:[#allocation37_spill] sm:$0xff] }
 0x30d   : > { %1727 = vmatprep.subr.bf16.mxu0 %v3583_v34  ;;  %1768 = vmatprep.subr.bf16.mxu1 %v3600_v40  ;;  %v4595_v34 = vld [vmem:[#allocation36_spill] sm:$0xff] }
 0x30f   : > { %1648 = vmatmul.mubr.bf16.vlgmr.msra.gmra.mrb[24].mxu0 %v1614_v33  ;;  %1689 = vmatmul.mubr.bf16.vlgmr.msra.gmra.mrb[24].mxu1 %v1614_v33 }
 0x310   : > { %1728 = vmatpush1.bf16.msra.mxu0 %v3593_v38  ;;  %1769 = vmatpush1.bf16.msra.mxu1 %v3604_v42  ;;  %v4598_v38 = vld [vmem:[#allocation39_spill] sm:$0xff] }
 0x311   : > { %1729 = vmatprep.subr.bf16.mxu0 %v3597_v39  ;;  %1770 = vmatprep.subr.bf16.mxu1 %v3609_v44  ;;  %v4599_v39 = vld [vmem:[#allocation40_spill] sm:$0xff] }
 0x312   : > { %1759 = vmatprep.mubr.bf16.mxu0 %v4489_v4  ;;  %1800 = vmatprep.mubr.bf16.mxu1 %v4489_v4 }
 0x314   : > { %1730 = vmatpush1.bf16.msra.mxu0 %v3602_v41  ;;  %1771 = vmatpush1.bf16.msra.mxu1 %v3617_v46 }
 0x315   : > { %1731 = vmatprep.subr.bf16.mxu0 %v3606_v43  ;;  %1772 = vmatprep.subr.bf16.mxu1 %v3622_v48 }
 0x318   : > { %1732 = vmatpush1.bf16.msra.mxu0 %v3615_v45  ;;  %1773 = vmatpush1.bf16.msra.mxu1 %v3630_v50 }
 0x319   : > { %1733 = vmatprep.subr.bf16.mxu0 %v4518_v9  ;;  %1774 = vmatprep.subr.bf16.mxu1 %v4519_v10 }
 0x31c   : > { %1734 = vmatpush1.bf16.msra.mxu0 %v4520_v11  ;;  %1775 = vmatpush1.bf16.msra.mxu1 %v4521_v12 }
 0x31d   : > { %1735 = vmatprep.subr.bf16.mxu0 %v4522_v13  ;;  %1776 = vmatprep.subr.bf16.mxu1 %v4523_v14 }
 0x320   : > { %1736 = vmatpush1.bf16.msra.mxu0 %v4524_v16  ;;  %1777 = vmatpush1.bf16.msra.mxu1 %v4525_v17 }
 0x321   : > { %1737 = vmatprep.subr.bf16.mxu0 %v4526_v19  ;;  %1778 = vmatprep.subr.bf16.mxu1 %v4527_v20 }
 0x324   : > { %1738 = vmatpush1.bf16.msra.mxu0 %v4528_v26  ;;  %1779 = vmatpush1.bf16.msra.mxu1 %v4529_v27 }
 0x325   : > { %1739 = vmatprep.subr.bf16.mxu0 %v4530_v29  ;;  %1780 = vmatprep.subr.bf16.mxu1 %v4531_v30 }
 0x328   : > { %1740 = vmatpush1.bf16.msra.mxu0 %v4532_v31  ;;  %1781 = vmatpush1.bf16.msra.mxu1 %v4533_v32 }
 0x329   : > { %1741 = vmatprep.subr.bf16.mxu0 %v4534_v36  ;;  %1782 = vmatprep.subr.bf16.mxu1 %v4595_v34 }
 0x32c   : > { %1742 = vmatpush1.bf16.msra.mxu0 %v4596_v35  ;;  %1783 = vmatpush1.bf16.msra.mxu1 %v4597_v37 }
 0x32d   : > { %1809 = vmatprep.subr.bf16.mxu0 %v4598_v38  ;;  %1850 = vmatprep.subr.bf16.mxu1 %v4599_v39 }
 0x3a2   : > { %v1442_v40 = vpop.f32.mrb[16].mxu0  ;;  %v1483_v41 = vpop.f32.mrb[16].mxu1 }
 0x3a3   : > { %v1444_v42 = vpop.f32.mrb[17].mxu0  ;;  %v1485_v43 = vpop.f32.mrb[17].mxu1 }
 0x3a4   : > { %v1446_v44 = vpop.f32.mrb[18].mxu0  ;;  %v1487_v45 = vpop.f32.mrb[18].mxu1 }
 0x3a5   : > { %v1447_v46 = vpop.f32.mrb[19].mxu0  ;;  %v1488_v48 = vpop.f32.mrb[19].mxu1  ;;  %v1289_v45 = vsel %vm3840_vm0, %v3909_v24, %v3904_v0  ;;  %v2513_v0 = vld [vmem:[%s3470_s19 + $0x50] sm:$0xff] }
 0x3c2   : > { %v1524_v50 = vpop.f32.mrb[20].mxu0  ;;  %v1565_v6 = vpop.f32.mrb[20].mxu1 }
 0x3c3   : > { %v1525_v9 = vadd.f32 %v1524_v50, %v1442_v40  ;;  %v1566_v10 = vadd.f32 %v1565_v6, %v1483_v41  ;;  %v1526_v11 = vpop.f32.mrb[21].mxu0  ;;  %v1567_v12 = vpop.f32.mrb[21].mxu1  ;;  %v2511_v40 = vld [vmem:[%s3470_s19 + $0x40] sm:$0xff] }
 0x3c4   : > { %v1527_v13 = vadd.f32 %v1526_v11, %v1444_v42  ;;  %v1568_v14 = vadd.f32 %v1567_v12, %v1485_v43  ;;  %v1528_v16 = vpop.f32.mrb[22].mxu0  ;;  %v1569_v17 = vpop.f32.mrb[22].mxu1  ;;  %v2512_v42 = vld [vmem:[%s3470_s19 + $0x48] sm:$0xff] }
 0x3c5   : > { %v1572_v19 = vadd.f32 %v1525_v9, %v3892_v59  ;;  %v1529_v20 = vpop.f32.mrb[23].mxu0  ;;  %v1570_v26 = vpop.f32.mrb[23].mxu1  ;;  %v1574_v31 = vadd.f32 %v1566_v10, %v3898_v60 }
 0x3c6   : > { %v1573_v27 = vadd.f32 %v1527_v13, %v3894_v47  ;;  %v1575_v32 = vadd.f32 %v1568_v14, %v3900_v15  ;;  %v2514_v26 = vld [vmem:[%s3470_s19 + $0x58] sm:$0xff] }
 0x3c7   : > { %v2508_v29 = vmul.f32 -1.442695, %v1572_v19  ;;  %v2510_v36 = vmul.f32 -1.442695, %v1574_v31 }
 0x3c8   : > { %v2509_v30 = vmul.f32 -1.442695, %v1573_v27 }
 0x3c9   : > { %2837 = vpow2.f32 %v2508_v29 }
 0x3ca   : > { %2839 = vpow2.f32 %v2509_v30 }
 0x3cb   : > { %2841 = vtanh.f32 %v1575_v32 }
 0x3cc   : > { %2843 = vpow2.f32 %v2510_v36 }
 0x3d3   : > { %v2838_v23 = vpop.eup %2837 }
 0x3d4   : > { %v1585_v33 = vadd.f32 1.0, %v2838_v23  ;;  %v2840_v34 = vpop.eup %2839 }
 0x3d5   : > { %v1586_v35 = vadd.f32 1.0, %v2840_v34  ;;  %v2842_v37 = vpop.eup %2841 }
 0x3d6   : > { %2845 = vrcp.f32 %v1585_v33  ;;  %v2844_v38 = vpop.eup %2843 }
 0x3d7   : > { %2847 = vrcp.f32 %v1586_v35  ;;  %v1587_v44 = vadd.f32 1.0, %v2844_v38 }
 0x3d9   : > { %2849 = vrcp.f32 %v1587_v44  ;;  %v4606_v44 = vld [vmem:[#allocation54_spill] sm:$0xff] }
 0x3e0   : > { %v2846_v39 = vpop.eup %2845 }
 0x3e1   : > { %v1596_v41 = vmul.f32 %v2846_v39, %v2842_v37  ;;  %v2848_v43 = vpop.eup %2847  ;;  %v4603_v39 = vld [vmem:[#allocation49_spill] sm:$0xff] }
 0x3e2   : > { %v1649_v46 = vpop.f32.mrb[24].mxu0  ;;  %v1690_v48 = vpop.f32.mrb[24].mxu1  ;;  %v1595_v50 = vmul.f32 %v2848_v43, %v1289_v45  ;;  %v4605_v43 = vld [vmem:[#allocation53_spill] sm:$0xff] }
 0x3e3   : > { %v1697_v6 = vadd.f32 %v2511_v40, %v1649_v46  ;;  %v1651_v9 = vpop.f32.mrb[25].mxu0  ;;  %v1692_v10 = vpop.f32.mrb[25].mxu1  ;;  %v1699_v24 = vadd.f32 %v2513_v0, %v1690_v48  ;;  %v4153_v40 = vstv %s1921_s17  ;;  %v4608_v46 = vld [vmem:[#allocation56_spill] sm:$0xff]  ;;  %v4610_v48 = vld [vmem:[#allocation58_spill] sm:$0xff]  ;;  %v4621_v0 = vld [vmem:[#allocation19_spill] sm:$0xff] }
 0x3e4   : > { %v1698_v11 = vadd.f32 %v2512_v42, %v1651_v9  ;;  %v1653_v12 = vpop.f32.mrb[26].mxu0  ;;  %v1694_v13 = vpop.f32.mrb[26].mxu1  ;;  %v1597_v14 = vadd.f32 %v1596_v41, %v1595_v50  ;;  %v1700_v27 = vadd.f32 %v2514_v26, %v1692_v10  ;;  %vm1923_vm2 = vcmp.eq.s32.totalorder %v4153_v40, 1  ;;  %v4611_v50 = vld [vmem:[#allocation59_spill] sm:$0xff]  ;;  %v4613_v9 = vld [vmem:[#allocation61_spill] sm:$0xff]  ;;  %v4627_v26 = vld [vmem:[#allocation26_spill] sm:$0xff] }
 0x3e5   : > { %v2515_v16 = vmul.f32 -1.442695, %v1697_v6  ;;  %v1654_v17 = vpop.f32.mrb[27].mxu0  ;;  %v1695_v19 = vpop.f32.mrb[27].mxu1  ;;  %v2517_v30 = vmul.f32 -1.442695, %v1699_v24 }
 0x3e6   : > { %v2516_v20 = vmul.f32 -1.442695, %v1698_v11  ;;  %2851 = vtanh.f32 %v1597_v14  ;;  %v4123_v5 = vsel %vm1604_vm1, %v1597_v14, %v1289_v45  ;;  %v2850_v29 = vpop.eup %2849  ;;  %v4607_v45 = vld [vmem:[#allocation55_spill] sm:$0xff]  ;;  %v4612_v6 = vld [vmem:[#allocation60_spill] sm:$0xff]  ;;  %v4618_v17 = vld [vmem:[#allocation70_spill] sm:$0xff] }
 0x3e7   : > { %2853 = vpow2.f32 %v2515_v16  ;;  %v4614_v10 = vld [vmem:[#allocation63_spill] sm:$0xff]  ;;  %v4615_v11 = vld [vmem:[#allocation64_spill] sm:$0xff]  ;;  %v4619_v19 = vld [vmem:[#allocation18_spill] sm:$0xff] }
 0x3e8   : > { %2855 = vpow2.f32 %v2516_v20  ;;  %v4617_v14 = vld [vmem:[#allocation68_spill] sm:$0xff]  ;;  %v4620_v20 = vld [vmem:[#allocation21_spill] sm:$0xff]  ;;  %v4625_v24 = vld [vmem:[#allocation23_spill] sm:$0xff] }
 0x3e9   : > { %2857 = vtanh.f32 %v1700_v27  ;;  %v4628_v27 = vld [vmem:[#allocation28_spill] sm:$0xff]  ;;  %v2986_v40 = vld [vmem:[#allocation11 + $0x2c] ss:$16 sps:$4 sm:$0xff]  }
 0x3ea   : > { %2859 = vpow2.f32 %v2517_v30  ;;  %v4630_v30 = vld [vmem:[#allocation29_spill] sm:$0xff] }
 0x3f0   : > { %v2852_v31 = vpop.eup %2851 }
 0x3f1   : > { %v2854_v32 = vpop.eup %2853  ;;  %v1599_v36 = vmul.f32 %v2852_v31, %v2850_v29  ;;  %v4629_v29 = vld [vmem:[#allocation27_spill] sm:$0xff]  ;;  %v4631_v31 = vld [vmem:[#allocation30_spill] sm:$0xff] }
 0x3f2   : > { %v1710_v23 = vadd.f32 1.0, %v2854_v32  ;;  %v2856_v33 = vpop.eup %2855  ;;  %v4632_v32 = vld [vmem:[#allocation32_spill] sm:$0xff] }
 0x3f3   : > { %v4130_v34 = vsel %vm1604_vm1, %v1599_v36, %v3917_v58  ;;  %v1711_v35 = vadd.f32 1.0, %v2856_v33  ;;  %v2858_v58 = vpop.eup %2857  ;;  %v4633_v36 = vld [vmem:[#allocation31_spill] sm:$0xff]  ;;  %v4635_v33 = vld [vmem:[#allocation34_spill] sm:$0xff] }
 0x3f4   : > { %2861 = vrcp.f32 %v1710_v23  ;;  %v1726_v37 = vpack.c.bf16 %v4130_v34, %v4130_v34  ;;  %v2860_v49 = vpop.eup %2859  ;;  %v4634_v23 = vld [vmem:[#allocation33_spill] sm:$0xff] }
 0x3f5   : > { %2863 = vrcp.f32 %v1711_v35  ;;  %v4636_v35 = vld [vmem:[#allocation38_spill] sm:$0xff] }
 0x3f6   : > { %1760 = vmatmul.mubr.bf16.vlgmr.msra.gmra.mrb[28].mxu0 %v1726_v37  ;;  %1801 = vmatmul.mubr.bf16.vlgmr.msra.gmra.mrb[28].mxu1 %v1726_v37  ;;  %v4637_v37 = vld [vmem:[#allocation41_spill] sm:$0xff] }
 0x3f7   : > { %1810 = vmatpush1.bf16.msra.mxu0 %v4541_v57  ;;  %1851 = vmatpush1.bf16.msra.mxu1 %v4542_v22  ;;  %v4601_v57 = vld [vmem:[#allocation47_spill] sm:$0xff]  ;;  %v4602_v22 = vld [vmem:[#allocation48_spill] sm:$0xff] }
 0x3f8   : > { %1811 = vmatprep.subr.bf16.mxu0 %v4544_v63  ;;  %1852 = vmatprep.subr.bf16.mxu1 %v4545_v62  ;;  %v4604_v62 = vld [vmem:[#allocation50_spill] sm:$0xff] }
 0x3f9   : > { %1841 = vmatprep.mubr.bf16.mxu0 %v4489_v4  ;;  %1882 = vmatprep.mubr.bf16.mxu1 %v4489_v4 }
 0x3fb   : > { %1812 = vmatpush1.bf16.msra.mxu0 %v4546_v1  ;;  %1853 = vmatpush1.bf16.msra.mxu1 %v4547_v54  ;;  %v1712_v1 = vadd.f32 1.0, %v2860_v49  ;;  %v4641_v49 = vld [vmem:[#allocation45_spill] sm:$0xff] }
 0x3fc   : > { %1813 = vmatprep.subr.bf16.mxu0 %v4601_v57  ;;  %1854 = vmatprep.subr.bf16.mxu1 %v4602_v22  ;;  %v4639_v57 = vld [vmem:[#allocation43_spill] sm:$0xff]  ;;  %v4640_v22 = vld [vmem:[#allocation44_spill] sm:$0xff] }
 0x3fd   : > { %2865 = vrcp.f32 %v1712_v1  ;;  %v2953_v1 = vld [vmem:[#allocation12 + $0x24] ss:$16 sps:$4 sm:$0xff]  }
 0x3fe   : > { %v2862_v38 = vpop.eup %2861 }
 0x3ff   : > { %v1721_v63 = vmul.f32 %v2862_v38, %v2858_v58  ;;  %1814 = vmatpush1.bf16.msra.mxu0 %v4603_v39  ;;  %1855 = vmatpush1.bf16.msra.mxu1 %v4604_v62  ;;  %v2864_v41 = vpop.eup %2863  ;;  %v4638_v58 = vld [vmem:[#allocation42_spill] sm:$0xff]  ;;  %v2946_v38 = vld [vmem:[#allocation9 + $0xc8] ss:$16 sps:$4 sm:$0xff]  }
 0x400   : > { %1815 = vmatprep.subr.bf16.mxu0 %v4552_v18  ;;  %1856 = vmatprep.subr.bf16.mxu1 %v4553_v21  ;;  %v1720_v54 = vmul.f32 %v2864_v41, %v3955_v56  ;;  %v4609_v21 = vld [vmem:[#allocation57_spill] sm:$0xff]  ;;  %v2949_v62 = vld [vmem:[#allocation12 + $0x4] ss:$16 sps:$4 sm:$0xff]  }
 0x401   : > { %v2952_v41 = vld [vmem:[#allocation12 + $0x8] ss:$16 sps:$4 sm:$0xff]  }
 0x402   : > { %v1722_v42 = vadd.f32 %v1721_v63, %v1720_v54  ;;  %v2947_v63 = vld [vmem:[#allocation9 + $0xec] ss:$16 sps:$4 sm:$0xff]   ;;  %v2956_v54 = vld [vmem:[#allocation12 + $0x28] ss:$16 sps:$4 sm:$0xff]  }
 0x403   : > { %1816 = vmatpush1.bf16.msra.mxu0 %v4605_v43  ;;  %1857 = vmatpush1.bf16.msra.mxu1 %v4606_v44  ;;  %v2958_v43 = vld [vmem:[#allocation12 + $0x4c] ss:$16 sps:$4 sm:$0xff]   ;;  %v2959_v44 = vld [vmem:[#allocation12 + $0x40] ss:$16 sps:$4 sm:$0xff]  }
 0x404   : > { %1817 = vmatprep.subr.bf16.mxu0 %v4607_v45  ;;  %1858 = vmatprep.subr.bf16.mxu1 %v4608_v46  ;;  %2867 = vtanh.f32 %v1722_v42  ;;  %v4166_v18 = vsel %vm1923_vm2, %v1722_v42, %v3955_v56  ;;  %v4616_v56 = vld [vmem:[#allocation65_spill] sm:$0xff]  ;;  %v2957_v42 = vld [vmem:[#allocation12 + $0x44] ss:$16 sps:$4 sm:$0xff]  }
 0x405   : > { %v2960_v45 = vld [vmem:[#allocation12 + $0x48] ss:$16 sps:$4 sm:$0xff]   ;;  %v2961_v46 = vld [vmem:[#allocation12 + $0x64] ss:$16 sps:$4 sm:$0xff]  }
 0x407   : > { %1818 = vmatpush1.bf16.msra.mxu0 %v4609_v21  ;;  %1859 = vmatpush1.bf16.msra.mxu1 %v4610_v48  ;;  %v2866_v12 = vpop.eup %2865  ;;  %v2962_v21 = vld [vmem:[#allocation12 + $0x6c] ss:$16 sps:$4 sm:$0xff]   ;;  %v2963_v48 = vld [vmem:[#allocation12 + $0x60] ss:$16 sps:$4 sm:$0xff]  }
 0x408   : > { %1819 = vmatprep.subr.bf16.mxu0 %v4611_v50  ;;  %1860 = vmatprep.subr.bf16.mxu1 %v4612_v6  ;;  %v2964_v50 = vld [vmem:[#allocation12 + $0x68] ss:$16 sps:$4 sm:$0xff]   ;;  %v2965_v6 = vld [vmem:[#allocation12 + $0x84] ss:$16 sps:$4 sm:$0xff]  }
 0x40b   : > { %1820 = vmatpush1.bf16.msra.mxu0 %v4613_v9  ;;  %1861 = vmatpush1.bf16.msra.mxu1 %v4563_v3  ;;  %v2966_v9 = vld [vmem:[#allocation12 + $0x8c] ss:$16 sps:$4 sm:$0xff]  }
 0x40c   : > { %1821 = vmatprep.subr.bf16.mxu0 %v4614_v10  ;;  %1862 = vmatprep.subr.bf16.mxu1 %v4615_v11  ;;  %v2967_v10 = vld [vmem:[#allocation12 + $0x80] ss:$16 sps:$4 sm:$0xff]   ;;  %v2968_v11 = vld [vmem:[#allocation12 + $0x88] ss:$16 sps:$4 sm:$0xff]  }
 0x40e   : > { %v2868_v13 = vpop.eup %2867 }
 0x40f   : > { %1822 = vmatpush1.bf16.msra.mxu0 %v4616_v56  ;;  %1863 = vmatpush1.bf16.msra.mxu1 %v4567_v8  ;;  %v1724_v16 = vmul.f32 %v2868_v13, %v2866_v12  ;;  %v4622_v8 = vld [vmem:[#allocation22_spill] sm:$0xff]  ;;  %v2970_v13 = vld [vmem:[#allocation12 + $0xac] ss:$16 sps:$4 sm:$0xff]  }
 0x410   : > { %1823 = vmatprep.subr.bf16.mxu0 %v4568_v51  ;;  %1864 = vmatprep.subr.bf16.mxu1 %v4617_v14  ;;  %v4623_v51 = vld [vmem:[#allocation20_spill] sm:$0xff]  ;;  %v2972_v14 = vld [vmem:[#allocation12 + $0xa8] ss:$16 sps:$4 sm:$0xff]  }
 0x411   : > { %v1725_v3 = vpack.c.bf16 %v1724_v16, %v1724_v16  ;;  %v4215_v39 = vsel %vm1923_vm2, %v1724_v16, %v4067_v7  ;;  %v2954_v7 = vld [vmem:[#allocation12 + $0x2c] ss:$16 sps:$4 sm:$0xff]   ;;  %v2969_v12 = vld [vmem:[#allocation12 + $0xa4] ss:$16 sps:$4 sm:$0xff]   ;;  %v2971_v56 = vld [vmem:[#allocation12 + $0xa0] ss:$16 sps:$4 sm:$0xff]  }
 0x412   : > { %v2973_v16 = vld [vmem:[#allocation12 + $0xc4] ss:$16 sps:$4 sm:$0xff]  }
 0x413   : > { %1824 = vmatpush1.bf16.msra.mxu0 %v4570_v2  ;;  %1865 = vmatpush1.bf16.msra.mxu1 %v4618_v17  ;;  %v4624_v2 = vld [vmem:[#allocation24_spill] sm:$0xff]  ;;  %v2974_v17 = vld [vmem:[#allocation12 + $0xcc] ss:$16 sps:$4 sm:$0xff]  }
 0x414   : > { %1934 = vmatprep.subr.bf16.mxu0 %v3975_v53  ;;  %1975 = vmatprep.subr.bf16.mxu1 %v4619_v19  ;;  %v4626_v53 = vld [vmem:[#allocation25_spill] sm:$0xff] }
 0x415   : > { %v2976_v19 = vld [vmem:[#allocation12 + $0xc8] ss:$16 sps:$4 sm:$0xff]  }
 0x416   : > { %1842 = vmatmul.mubr.bf16.vlgmr.msra.gmra.mrb[32].mxu0 %v1725_v3  ;;  %1883 = vmatmul.mubr.bf16.vlgmr.msra.gmra.mrb[32].mxu1 %v1725_v3  ;;  %v2975_v3 = vld [vmem:[#allocation12 + $0xc0] ss:$16 sps:$4 sm:$0xff]  }
 0x417   : > { %1935 = vmatpush1.bf16.msra.mxu0 %v4620_v20  ;;  %1976 = vmatpush1.bf16.msra.mxu1 %v4621_v0  ;;  %v2977_v20 = vld [vmem:[#allocation12 + $0xe4] ss:$16 sps:$4 sm:$0xff]   ;;  %v2978_v0 = vld [vmem:[#allocation12 + $0xec] ss:$16 sps:$4 sm:$0xff]  }
 0x418   : > { %1936 = vmatprep.subr.bf16.mxu0 %v4622_v8  ;;  %1977 = vmatprep.subr.bf16.mxu1 %v4623_v51  ;;  %v2979_v8 = vld [vmem:[#allocation12 + $0xe0] ss:$16 sps:$4 sm:$0xff]   ;;  %v2980_v51 = vld [vmem:[#allocation12 + $0xe8] ss:$16 sps:$4 sm:$0xff]  }
 0x419   : > { %1966 = vmatprep.mubr.bf16.mxu0 %v4489_v4  ;;  %2007 = vmatprep.mubr.bf16.mxu1 %v4489_v4 }
 0x41b   : > { %1937 = vmatpush1.bf16.msra.mxu0 %v4624_v2  ;;  %1978 = vmatpush1.bf16.msra.mxu1 %v4625_v24  ;;  %v2981_v2 = vld [vmem:[#allocation11 + $0x4] ss:$16 sps:$4 sm:$0xff]   ;;  %v2982_v24 = vld [vmem:[#allocation11 + $0xc] ss:$16 sps:$4 sm:$0xff]  }
 0x41c   : > { %1938 = vmatprep.subr.bf16.mxu0 %v4626_v53  ;;  %1979 = vmatprep.subr.bf16.mxu1 %v4627_v26 }
 0x41f   : > { %1939 = vmatpush1.bf16.msra.mxu0 %v4628_v27  ;;  %1980 = vmatpush1.bf16.msra.mxu1 %v4629_v29 }
 0x420   : > { %1940 = vmatprep.subr.bf16.mxu0 %v4630_v30  ;;  %1981 = vmatprep.subr.bf16.mxu1 %v4631_v31 }
 0x423   : > { %1941 = vmatpush1.bf16.msra.mxu0 %v4632_v32  ;;  %1982 = vmatpush1.bf16.msra.mxu1 %v4633_v36 }
 0x424   : > { %1942 = vmatprep.subr.bf16.mxu0 %v4634_v23  ;;  %1983 = vmatprep.subr.bf16.mxu1 %v4635_v33 }
 0x427   : > { %1943 = vmatpush1.bf16.msra.mxu0 %v4636_v35  ;;  %1984 = vmatpush1.bf16.msra.mxu1 %v4637_v37 }
 0x428   : > { %1944 = vmatprep.subr.bf16.mxu0 %v4638_v58  ;;  %1985 = vmatprep.subr.bf16.mxu1 %v4639_v57 }
 0x42b   : > { %1945 = vmatpush1.bf16.msra.mxu0 %v4043_v52  ;;  %1986 = vmatpush1.bf16.msra.mxu1 %v4640_v22  ;;  %v2948_v52 = vld [vmem:[#allocation9 + $0xe8] ss:$16 sps:$4 sm:$0xff]  }
 0x42c   : > { %1946 = vmatprep.subr.bf16.mxu0 %v4641_v49  ;;  %1987 = vmatprep.subr.bf16.mxu1 %v4052_v55  ;;  %v1933_v55 = vpack.c.bf16 %v4215_v39, %v4215_v39 }
 0x42f   : > { %1947 = vmatpush1.bf16.msra.mxu0 %v4055_v28  ;;  %1988 = vmatpush1.bf16.msra.mxu1 %v2946_v38  ;;  %v2950_v28 = vld [vmem:[#allocation12 + $0xc] ss:$16 sps:$4 sm:$0xff]  }
 0x430   : > { %1948 = vmatprep.subr.bf16.mxu0 %v4059_v61  ;;  %1989 = vmatprep.subr.bf16.mxu1 %v2947_v63  ;;  %v2951_v61 = vld [vmem:[#allocation12] ss:$16 sps:$4 sm:$0xff]  }
 0x433   : > { %1949 = vmatpush1.bf16.msra.mxu0 %v4069_v25  ;;  %1990 = vmatpush1.bf16.msra.mxu1 %v2948_v52  ;;  %v2955_v25 = vld [vmem:[#allocation12 + $0x20] ss:$16 sps:$4 sm:$0xff]  }
 0x434   : > { %2046 = vmatprep.subr.bf16.mxu0 %v2949_v62  ;;  %2087 = vmatprep.subr.bf16.mxu1 %v2950_v28 }
 0x436   : > { %1967 = vmatmul.mubr.bf16.vlgmr.msra.gmra.mrb[36].mxu0 %v1933_v55  ;;  %2008 = vmatmul.mubr.bf16.vlgmr.msra.gmra.mrb[36].mxu1 %v1933_v55 }
 0x437   : > { %2047 = vmatpush1.bf16.msra.mxu0 %v2951_v61  ;;  %2088 = vmatpush1.bf16.msra.mxu1 %v2952_v41 }
 0x438   : > { %2048 = vmatprep.subr.bf16.mxu0 %v2953_v1  ;;  %2089 = vmatprep.subr.bf16.mxu1 %v2954_v7 }
 0x439   : > { %2078 = vmatprep.mubr.bf16.mxu0 %v4489_v4  ;;  %2119 = vmatprep.mubr.bf16.mxu1 %v4489_v4 }
 0x43b   : > { %2049 = vmatpush1.bf16.msra.mxu0 %v2955_v25  ;;  %2090 = vmatpush1.bf16.msra.mxu1 %v2956_v54 }
 0x43c   : > { %2050 = vmatprep.subr.bf16.mxu0 %v2957_v42  ;;  %2091 = vmatprep.subr.bf16.mxu1 %v2958_v43 }
 0x43f   : > { %2051 = vmatpush1.bf16.msra.mxu0 %v2959_v44  ;;  %2092 = vmatpush1.bf16.msra.mxu1 %v2960_v45 }
 0x440   : > { %2052 = vmatprep.subr.bf16.mxu0 %v2961_v46  ;;  %2093 = vmatprep.subr.bf16.mxu1 %v2962_v21 }
 0x443   : > { %2053 = vmatpush1.bf16.msra.mxu0 %v2963_v48  ;;  %2094 = vmatpush1.bf16.msra.mxu1 %v2964_v50  ;;  %v2521_v48 = vld [vmem:[%s3470_s19 + $0x60] sm:$0xff] }
 0x444   : > { %2054 = vmatprep.subr.bf16.mxu0 %v2965_v6  ;;  %2095 = vmatprep.subr.bf16.mxu1 %v2966_v9  ;;  %v2522_v6 = vld [vmem:[%s3470_s19 + $0x68] sm:$0xff] }
 0x447   : > { %2055 = vmatpush1.bf16.msra.mxu0 %v2967_v10  ;;  %2096 = vmatpush1.bf16.msra.mxu1 %v2968_v11 }
 0x448   : > { %2056 = vmatprep.subr.bf16.mxu0 %v2969_v12  ;;  %2097 = vmatprep.subr.bf16.mxu1 %v2970_v13 }
 0x44b   : > { %2057 = vmatpush1.bf16.msra.mxu0 %v2971_v56  ;;  %2098 = vmatpush1.bf16.msra.mxu1 %v2972_v14 }
 0x44c   : > { %2058 = vmatprep.subr.bf16.mxu0 %v2973_v16  ;;  %2099 = vmatprep.subr.bf16.mxu1 %v2974_v17 }
 0x44f   : > { %2059 = vmatpush1.bf16.msra.mxu0 %v2975_v3  ;;  %2100 = vmatpush1.bf16.msra.mxu1 %v2976_v19 }
 0x450   : > { %2060 = vmatprep.subr.bf16.mxu0 %v2977_v20  ;;  %2101 = vmatprep.subr.bf16.mxu1 %v2978_v0 }
 0x453   : > { %2061 = vmatpush1.bf16.msra.mxu0 %v2979_v8  ;;  %2102 = vmatpush1.bf16.msra.mxu1 %v2980_v51 }
 0x454   : > { %2128 = vmatprep.subr.bf16.mxu0 %v2981_v2  ;;  %2169 = vmatprep.subr.bf16.mxu1 %v2982_v24 }
 0x4c9   : > { %v1761_v53 = vpop.f32.mrb[28].mxu0  ;;  %v1802_v26 = vpop.f32.mrb[28].mxu1 }
 0x4ca   : > { %v1763_v27 = vpop.f32.mrb[29].mxu0  ;;  %v1804_v29 = vpop.f32.mrb[29].mxu1 }
 0x4cb   : > { %v1765_v30 = vpop.f32.mrb[30].mxu0  ;;  %v1806_v31 = vpop.f32.mrb[30].mxu1 }
 0x4cc   : > { %v1766_v32 = vpop.f32.mrb[31].mxu0  ;;  %v1807_v36 = vpop.f32.mrb[31].mxu1 }
 0x4e9   : > { %v1843_v23 = vpop.f32.mrb[32].mxu0  ;;  %v1884_v33 = vpop.f32.mrb[32].mxu1 }
 0x4ea   : > { %v1844_v35 = vadd.f32 %v1843_v23, %v1761_v53  ;;  %v1885_v37 = vadd.f32 %v1884_v33, %v1802_v26  ;;  %v1845_v58 = vpop.f32.mrb[33].mxu0  ;;  %v1886_v57 = vpop.f32.mrb[33].mxu1  ;;  %v2523_v53 = vld [vmem:[%s3470_s19 + $0x70] sm:$0xff] }
 0x4eb   : > { %v1846_v22 = vadd.f32 %v1845_v58, %v1763_v27  ;;  %v1887_v49 = vadd.f32 %v1886_v57, %v1804_v29  ;;  %v1847_v38 = vpop.f32.mrb[34].mxu0  ;;  %v1888_v63 = vpop.f32.mrb[34].mxu1  ;;  %v2524_v27 = vld [vmem:[%s3470_s19 + $0x78] sm:$0xff]  ;;  %v2983_v57 = vld [vmem:[#allocation11] ss:$16 sps:$4 sm:$0xff]   ;;  %s4643_s19 = sld [smem:[#allocation73_spill]] }
 0x4ec   : > { %v1891_v52 = vadd.f32 %v1844_v35, %v3892_v59  ;;  %v1848_v55 = vpop.f32.mrb[35].mxu0  ;;  %v1889_v62 = vpop.f32.mrb[35].mxu1  ;;  %v1893_v1 = vadd.f32 %v1885_v37, %v3898_v60  ;;  %v2988_v38 = vld [vmem:[#allocation11 + $0x28] ss:$16 sps:$4 sm:$0xff]  }
 0x4ed   : > { %v1892_v28 = vadd.f32 %v1846_v22, %v3894_v47  ;;  %v1894_v7 = vadd.f32 %v1887_v49, %v3900_v15  ;;  %v2984_v22 = vld [vmem:[#allocation11 + $0x8] ss:$16 sps:$4 sm:$0xff]   ;;  %v2987_v49 = vld [vmem:[#allocation11 + $0x20] ss:$16 sps:$4 sm:$0xff]   ;;  %v2990_v55 = vld [vmem:[#allocation11 + $0x4c] ss:$16 sps:$4 sm:$0xff]  }
 0x4ee   : > { %v2518_v61 = vmul.f32 -1.442695, %v1891_v52  ;;  %v2520_v25 = vmul.f32 -1.442695, %v1893_v1  ;;  %v2989_v52 = vld [vmem:[#allocation11 + $0x44] ss:$16 sps:$4 sm:$0xff]  }
 0x4ef   : > { %v2519_v41 = vmul.f32 -1.442695, %v1892_v28  ;;  %v2992_v1 = vld [vmem:[#allocation11 + $0x48] ss:$16 sps:$4 sm:$0xff]  }
 0x4f0   : > { %2869 = vpow2.f32 %v2518_v61 }
 0x4f1   : > { %2871 = vpow2.f32 %v2519_v41  ;;  %v2991_v41 = vld [vmem:[#allocation11 + $0x40] ss:$16 sps:$4 sm:$0xff]  }
 0x4f2   : > { %2873 = vtanh.f32 %v1894_v7  ;;  %v4252_v7 = vstv %s2240_s10 }
 0x4f3   : > { %2875 = vpow2.f32 %v2520_v25  ;;  %vm2242_vm3 = vcmp.eq.s32.totalorder %v4252_v7, 1 }
 0x4fa   : > { %v2870_v54 = vpop.eup %2869 }
 0x4fb   : > { %v1904_v42 = vadd.f32 1.0, %v2870_v54  ;;  %v2872_v43 = vpop.eup %2871  ;;  %v2993_v54 = vld [vmem:[#allocation11 + $0x64] ss:$16 sps:$4 sm:$0xff]  }
 0x4fc   : > { %v1905_v44 = vadd.f32 1.0, %v2872_v43  ;;  %v2874_v45 = vpop.eup %2873 }
 0x4fd   : > { %2877 = vrcp.f32 %v1904_v42  ;;  %v2876_v46 = vpop.eup %2875  ;;  %v2994_v42 = vld [vmem:[#allocation11 + $0x6c] ss:$16 sps:$4 sm:$0xff]  }
 0x4fe   : > { %2879 = vrcp.f32 %v1905_v44  ;;  %v1906_v10 = vadd.f32 1.0, %v2876_v46  ;;  %v2996_v46 = vld [vmem:[#allocation11 + $0x68] ss:$16 sps:$4 sm:$0xff]  }
 0x500   : > { %2881 = vrcp.f32 %v1906_v10  ;;  %v3001_v10 = vld [vmem:[#allocation11 + $0xa4] ss:$16 sps:$4 sm:$0xff]  }
 0x507   : > { %v2878_v21 = vpop.eup %2877 }
 0x508   : > { %v1915_v50 = vmul.f32 %v2878_v21, %v2874_v45  ;;  %v2880_v9 = vpop.eup %2879  ;;  %v2995_v45 = vld [vmem:[#allocation11 + $0x60] ss:$16 sps:$4 sm:$0xff]   ;;  %v2997_v21 = vld [vmem:[#allocation11 + $0x84] ss:$16 sps:$4 sm:$0xff]  }
 0x509   : > { %v1968_v11 = vpop.f32.mrb[36].mxu0  ;;  %v2009_v12 = vpop.f32.mrb[36].mxu1  ;;  %v1914_v13 = vmul.f32 %v2880_v9, %v4123_v5  ;;  %v3000_v9 = vld [vmem:[#allocation11 + $0x88] ss:$16 sps:$4 sm:$0xff]  }
 0x50a   : > { %v2016_v56 = vadd.f32 %v2521_v48, %v1968_v11  ;;  %v1970_v14 = vpop.f32.mrb[37].mxu0  ;;  %v2011_v16 = vpop.f32.mrb[37].mxu1  ;;  %v2018_v26 = vadd.f32 %v2523_v53, %v2009_v12  ;;  %v2998_v48 = vld [vmem:[#allocation11 + $0x8c] ss:$16 sps:$4 sm:$0xff]   ;;  %v3003_v12 = vld [vmem:[#allocation11 + $0xa0] ss:$16 sps:$4 sm:$0xff]  }
 0x50b   : > { %v2017_v17 = vadd.f32 %v2522_v6, %v1970_v14  ;;  %v1972_v3 = vpop.f32.mrb[38].mxu0  ;;  %v2013_v19 = vpop.f32.mrb[38].mxu1  ;;  %v1916_v20 = vadd.f32 %v1915_v50, %v1914_v13  ;;  %v2019_v29 = vadd.f32 %v2524_v27, %v2011_v16  ;;  %v2999_v6 = vld [vmem:[#allocation11 + $0x80] ss:$16 sps:$4 sm:$0xff]   ;;  %v3002_v11 = vld [vmem:[#allocation11 + $0xac] ss:$16 sps:$4 sm:$0xff]  }
 0x50c   : > { %v2525_v0 = vmul.f32 -1.442695, %v2016_v56  ;;  %v1973_v8 = vpop.f32.mrb[39].mxu0  ;;  %v2014_v51 = vpop.f32.mrb[39].mxu1  ;;  %v2527_v31 = vmul.f32 -1.442695, %v2018_v26 }
 0x50d   : > { %v2526_v2 = vmul.f32 -1.442695, %v2017_v17  ;;  %2883 = vtanh.f32 %v1916_v20  ;;  %v4232_v24 = vsel %vm1923_vm2, %v1916_v20, %v4123_v5  ;;  %v2882_v30 = vpop.eup %2881  ;;  %v3004_v13 = vld [vmem:[#allocation11 + $0xa8] ss:$16 sps:$4 sm:$0xff]   ;;  %v3005_v56 = vld [vmem:[#allocation11 + $0xc4] ss:$16 sps:$4 sm:$0xff]  }
 0x50e   : > { %2885 = vpow2.f32 %v2525_v0  ;;  %v3006_v14 = vld [vmem:[#allocation11 + $0xcc] ss:$16 sps:$4 sm:$0xff]   ;;  %v3008_v3 = vld [vmem:[#allocation11 + $0xc8] ss:$16 sps:$4 sm:$0xff]   ;;  %v3009_v19 = vld [vmem:[#allocation11 + $0xe4] ss:$16 sps:$4 sm:$0xff]  }
 0x50f   : > { %2887 = vpow2.f32 %v2526_v2  ;;  %v3010_v20 = vld [vmem:[#allocation11 + $0xec] ss:$16 sps:$4 sm:$0xff]   ;;  %v3011_v51 = vld [vmem:[#allocation11 + $0xe0] ss:$16 sps:$4 sm:$0xff]   ;;  %v3012_v2 = vld [vmem:[#allocation11 + $0xe8] ss:$16 sps:$4 sm:$0xff]  }
 0x510   : > { %2889 = vtanh.f32 %v2019_v29 }
 0x511   : > { %2891 = vpow2.f32 %v2527_v31 }
 0x517   : > { %v2884_v32 = vpop.eup %2883 }
 0x518   : > { %v2886_v36 = vpop.eup %2885  ;;  %v1918_v23 = vmul.f32 %v2884_v32, %v2882_v30 }
 0x519   : > { %v2029_v33 = vadd.f32 1.0, %v2886_v36  ;;  %v2888_v35 = vpop.eup %2887 }
 0x51a   : > { %v4239_v5 = vsel %vm1923_vm2, %v1918_v23, %v4130_v34  ;;  %v2030_v37 = vadd.f32 1.0, %v2888_v35  ;;  %v2985_v34 = vld [vmem:[#allocation11 + $0x24] ss:$16 sps:$4 sm:$0xff]   ;;  %v2890_v63 = vpop.eup %2889 }
 0x51b   : > { %2893 = vrcp.f32 %v2029_v33  ;;  %v2045_v58 = vpack.c.bf16 %v4239_v5, %v4239_v5  ;;  %v2892_v62 = vpop.eup %2891 }
 0x51c   : > { %2895 = vrcp.f32 %v2030_v37  ;;  %v2031_v25 = vadd.f32 1.0, %v2892_v62 }
 0x51d   : > { %2079 = vmatmul.mubr.bf16.vlgmr.msra.gmra.mrb[40].mxu0 %v2045_v58  ;;  %2120 = vmatmul.mubr.bf16.vlgmr.msra.gmra.mrb[40].mxu1 %v2045_v58 }
 0x51e   : > { %2129 = vmatpush1.bf16.msra.mxu0 %v2983_v57  ;;  %2170 = vmatpush1.bf16.msra.mxu1 %v2984_v22  ;;  %2897 = vrcp.f32 %v2031_v25 }
 0x51f   : > { %2130 = vmatprep.subr.bf16.mxu0 %v2985_v34  ;;  %2171 = vmatprep.subr.bf16.mxu1 %v2986_v40 }
 0x520   : > { %2160 = vmatprep.mubr.bf16.mxu0 %v4489_v4  ;;  %2201 = vmatprep.mubr.bf16.mxu1 %v4489_v4 }
 0x522   : > { %2131 = vmatpush1.bf16.msra.mxu0 %v2987_v49  ;;  %2172 = vmatpush1.bf16.msra.mxu1 %v2988_v38 }
 0x523   : > { %2132 = vmatprep.subr.bf16.mxu0 %v2989_v52  ;;  %2173 = vmatprep.subr.bf16.mxu1 %v2990_v55 }
 0x525   : > { %v2894_v28 = vpop.eup %2893 }
 0x526   : > { %v2040_v61 = vmul.f32 %v2894_v28, %v2890_v63  ;;  %2133 = vmatpush1.bf16.msra.mxu0 %v2991_v41  ;;  %2174 = vmatpush1.bf16.msra.mxu1 %v2992_v1  ;;  %v2896_v4 = vpop.eup %2895 }
 0x527   : > { %2134 = vmatprep.subr.bf16.mxu0 %v2993_v54  ;;  %2175 = vmatprep.subr.bf16.mxu1 %v2994_v42  ;;  %v2039_v43 = vmul.f32 %v2896_v4, %v4166_v18 }
 0x528   : > { %v2898_v16 = vpop.eup %2897 }
 0x529   : > { %v2041_v44 = vadd.f32 %v2040_v61, %v2039_v43 }
 0x52a   : > { %2135 = vmatpush1.bf16.msra.mxu0 %v2995_v45  ;;  %2176 = vmatpush1.bf16.msra.mxu1 %v2996_v46 }
 0x52b   : > { %2136 = vmatprep.subr.bf16.mxu0 %v2997_v21  ;;  %2177 = vmatprep.subr.bf16.mxu1 %v2998_v48  ;;  %2899 = vtanh.f32 %v2041_v44  ;;  %v2244_v50 = vsel %vm2242_vm3, %v2041_v44, %v4166_v18  ;;  %v3007_v18 = vld [vmem:[#allocation11 + $0xc0] ss:$16 sps:$4 sm:$0xff]  }
 0x52c   : > { %2248 = vst [vmem:[#allocation3] sm:$0xff] %v2244_v50 }
 0x52e   : > { %2137 = vmatpush1.bf16.msra.mxu0 %v2999_v6  ;;  %2178 = vmatpush1.bf16.msra.mxu1 %v3000_v9  ;;  %v2531_v9 = vld [vmem:[%s4643_s19] ss:$0 sm:$0xff] }
 0x52f   : > { %2138 = vmatprep.subr.bf16.mxu0 %v3001_v10  ;;  %2179 = vmatprep.subr.bf16.mxu1 %v3002_v11 }
 0x532   : > { %2139 = vmatpush1.bf16.msra.mxu0 %v3003_v12  ;;  %2180 = vmatpush1.bf16.msra.mxu1 %v3004_v13  ;;  %v2532_v12 = vld [vmem:[#allocation6] ss:$0 sm:$0xff] }
 0x533   : > { %2140 = vmatprep.subr.bf16.mxu0 %v3005_v56  ;;  %2181 = vmatprep.subr.bf16.mxu1 %v3006_v14 }
 0x535   : > { %v2900_v17 = vpop.eup %2899 }
 0x536   : > { %2141 = vmatpush1.bf16.msra.mxu0 %v3007_v18  ;;  %2182 = vmatpush1.bf16.msra.mxu1 %v3008_v3  ;;  %v2043_v0 = vmul.f32 %v2900_v17, %v2898_v16 }
 0x537   : > { %2142 = vmatprep.subr.bf16.mxu0 %v3009_v19  ;;  %2183 = vmatprep.subr.bf16.mxu1 %v3010_v20 }
 0x538   : > { %v2243_v8 = vsel %vm2242_vm3, %v2043_v0, %v4215_v39  ;;  %v2044_v53 = vpack.c.bf16 %v2043_v0, %v2043_v0 }
 0x539   : > { %2247 = vst [vmem:[#allocation2] sm:$0xff] %v2243_v8 }
 0x53a   : > { %2143 = vmatpush1.bf16.msra.mxu0 %v3011_v51  ;;  %2184 = vmatpush1.bf16.msra.mxu1 %v3012_v2 }
 0x53d   : > { %2161 = vmatmul.mubr.bf16.vlgmr.msra.gmra.mrb[44].mxu0 %v2044_v53  ;;  %2202 = vmatmul.mubr.bf16.vlgmr.msra.gmra.mrb[44].mxu1 %v2044_v53 }
 0x5f0   : > { %v2080_v26 = vpop.f32.mrb[40].mxu0  ;;  %v2121_v27 = vpop.f32.mrb[40].mxu1 }
 0x5f1   : > { %v2082_v29 = vpop.f32.mrb[41].mxu0  ;;  %v2123_v30 = vpop.f32.mrb[41].mxu1 }
 0x5f2   : > { %v2084_v31 = vpop.f32.mrb[42].mxu0  ;;  %v2125_v32 = vpop.f32.mrb[42].mxu1 }
 0x5f3   : > { %v2085_v36 = vpop.f32.mrb[43].mxu0  ;;  %v2126_v23 = vpop.f32.mrb[43].mxu1 }
 0x610   : > { %v2162_v33 = vpop.f32.mrb[44].mxu0  ;;  %v2203_v35 = vpop.f32.mrb[44].mxu1 }
 0x611   : > { %v2163_v37 = vadd.f32 %v2162_v33, %v2080_v26  ;;  %v2204_v39 = vadd.f32 %v2203_v35, %v2121_v27  ;;  %v2164_v58 = vpop.f32.mrb[45].mxu0  ;;  %v2205_v57 = vpop.f32.mrb[45].mxu1 }
 0x612   : > { %v2165_v22 = vadd.f32 %v2164_v58, %v2082_v29  ;;  %v2206_v34 = vadd.f32 %v2205_v57, %v2123_v30  ;;  %v2166_v40 = vpop.f32.mrb[46].mxu0  ;;  %v2207_v49 = vpop.f32.mrb[46].mxu1 }
 0x613   : > { %v2210_v38 = vadd.f32 %v2163_v37, %v3892_v59  ;;  %v2167_v63 = vpop.f32.mrb[47].mxu0  ;;  %v2208_v52 = vpop.f32.mrb[47].mxu1  ;;  %v2212_v61 = vadd.f32 %v2204_v39, %v3898_v60 }
 0x614   : > { %v2211_v55 = vadd.f32 %v2165_v22, %v3894_v47  ;;  %v2213_v41 = vadd.f32 %v2206_v34, %v3900_v15 }
 0x615   : > { %v2528_v62 = vmul.f32 -1.442695, %v2210_v38  ;;  %v2530_v1 = vmul.f32 -1.442695, %v2212_v61 }
 0x616   : > { %v2529_v28 = vmul.f32 -1.442695, %v2211_v55 }
 0x617   : > { %2901 = vpow2.f32 %v2528_v62 }
 0x618   : > { %2903 = vpow2.f32 %v2529_v28 }
 0x619   : > { %2905 = vtanh.f32 %v2213_v41 }
 0x61a   : > { %2907 = vpow2.f32 %v2530_v1 }
 0x621   : > { %v2902_v4 = vpop.eup %2901 }
 0x622   : > { %v2223_v25 = vadd.f32 1.0, %v2902_v4  ;;  %v2904_v54 = vpop.eup %2903 }
 0x623   : > { %v2224_v59 = vadd.f32 1.0, %v2904_v54  ;;  %v2906_v42 = vpop.eup %2905 }
 0x624   : > { %2909 = vrcp.f32 %v2223_v25  ;;  %v2908_v43 = vpop.eup %2907 }
 0x625   : > { %2911 = vrcp.f32 %v2224_v59  ;;  %v2225_v46 = vadd.f32 1.0, %v2908_v43 }
 0x627   : > { %2913 = vrcp.f32 %v2225_v46 }
 0x62e   : > { %v2910_v47 = vpop.eup %2909 }
 0x62f   : > { %v2234_v44 = vmul.f32 %v2910_v47, %v2906_v42  ;;  %v2912_v45 = vpop.eup %2911 }
 0x630   : > { %v2233_v21 = vmul.f32 %v2912_v45, %v4232_v24 }
 0x631   : > { %v2914_v48 = vpop.eup %2913 }
 0x632   : > { %v2235_v60 = vadd.f32 %v2234_v44, %v2233_v21 }
 0x634   : > { %2915 = vtanh.f32 %v2235_v60  ;;  %v2246_v15 = vsel %vm2242_vm3, %v2235_v60, %v4232_v24 }
 0x635   : > { %2250 = vst [vmem:[#allocation5] sm:$0xff] %v2246_v15 }
 0x63e   : > { %v2916_v50 = vpop.eup %2915 }
 0x63f   : > { %v2237_v6 = vmul.f32 %v2916_v50, %v2914_v48 }
 0x641   : > { %v2245_v10 = vsel %vm2242_vm3, %v2237_v6, %v4239_v5 }
 0x642   : > { %2249 = vst [vmem:[#allocation4] sm:$0xff] %v2245_v10  ;;  %v2258_v11 = vmul.f32 %v2531_v9, %v2245_v10 }
 0x644   : > { %2259 = vadd.xlane.f32.xlu0 %v2258_v11 }
 0x6d1   : > { %v2260_v13 = vpop.xlane.xlu0 %2259 }
 0x6d2   : > { %v2268_v56 = vadd.f32 %v2532_v12, %v2260_v13 }
 0x6d4   : > { %2270 = vst.msk [vmem:[%s3489_s18] sm:$0xff] %vm2269_vm4, %v2268_v56 }
 0x6d5 PF: > { %s4644_s2 = sld [smem:[#allocation17_spill]]  ;;  %s4645_s13 = smov %s4655_s26 }
 0x6d6   : > { %s4646_s26 = smov %s3177_s27  ;;  %s4647_s27 = smov %s3181_s28 }
 0x6d7   : > { %s4648_s28 = smov %s3437_s15  ;;  %s4649_s29 = smov %s3193_s8 }
 0x6d8   : > { %s4650_s30 = smov %s3197_s9  ;;  %s4651_s8 = smov %s4645_s13 }
 0x6d9   : > { %s4652_s9 = smov %s4659_s6 }
 0x6db   : > { %s24_s14 = sadd.s32 1, %s4644_s2  }
 0x6dc   : > { %p21_p11 = scmp.ge.s32.totalorder %s24_s14, 6   ;;  %s4653_s6 = smov %s24_s14 }
 0x6de   :  { %23 = sbr.rel (!%p21_p11) target bundleno = 11 (0xb), region = 107 }
 0x6e5   :  { %2290 = vsyncpa [#allocation8], 1 }
 0x6e6   :  { %2292 = vsyncpa [#allocation8 + $0x1], 1 }
 0x6e7   :  { %2293 = vsyncpa [#allocation10], 1 }
 0x6e8   :  { %2294 = vsyncpa [#allocation13], 1 }

</bundles_post_ra>
